<compile_context>
chip_gen: v6e
topology: v6e:2x2x1
jax: 0.10.0
libtpu: 0.0.40
codegen_flags: <defaults>
</compile_context>

<pallas_src>
import math
import functools

import jax
import jax.numpy as jnp
from jax.experimental import pallas as pl
from jax.experimental.pallas import tpu as pltpu

# ---- small-but-TPU-friendly config (analog of GPTConfig) ----
BATCH   = 2
SEQ     = 128     # T
N_EMBD  = 128     # C
N_HEAD  = 4
HEAD_D  = N_EMBD // N_HEAD
LN_EPS  = 1e-5


def _layernorm(h, w, b):
    mu  = jnp.mean(h, axis=-1, keepdims=True)
    var = jnp.mean((h - mu) ** 2, axis=-1, keepdims=True)
    return (h - mu) * jax.lax.rsqrt(var + LN_EPS) * w + b


def _gelu_tanh(x):
    # GELU(approximate='tanh')
    c = 0.7978845608028654  # sqrt(2/pi)
    return 0.5 * x * (1.0 + jnp.tanh(c * (x + 0.044715 * x * x * x)))


def block_kernel(x_ref,
                 ln1w_ref, ln1b_ref,
                 wqkv_ref, bqkv_ref,
                 wao_ref, bao_ref,
                 ln2w_ref, ln2b_ref,
                 wfc_ref, bfc_ref,
                 wpr_ref, bpr_ref,
                 o_ref,
                 *, n_head):
    x = x_ref[0]                     # (T, C) f32 for the current batch element
    T, C = x.shape
    D = C // n_head

    # ----- attention branch: ln1 -> qkv proj -> per-head SDPA -> out proj -----
    h = _layernorm(x, ln1w_ref[...], ln1b_ref[...])                 # f32
    # wqkv is bf16 and already carries the 1/sqrt(D) scale on its q columns.
    qkv = jnp.dot(h.astype(jnp.bfloat16), wqkv_ref[...],
                  preferred_element_type=jnp.float32) + bqkv_ref[...]  # (T,3C) f32
    qkv_bf = qkv.astype(jnp.bfloat16)            # single cast of the whole slab

    # One 2-D causal mask, built once and reused for every head.
    row = jax.lax.broadcasted_iota(jnp.int32, (T, T), 0)
    col = jax.lax.broadcasted_iota(jnp.int32, (T, T), 1)
    causal = col <= row

    ys = []
    for hd in range(n_head):                       # static unrolled head loop
        lo = hd * D
        q_h = qkv_bf[:, 0 * C + lo: 0 * C + lo + D]                 # (T, D) bf16
        k_h = qkv_bf[:, 1 * C + lo: 1 * C + lo + D]
        v_h = qkv_bf[:, 2 * C + lo: 2 * C + lo + D]

        # scores: contract on D for both operands (no explicit k transpose)
        s = jnp.einsum('td,sd->ts', q_h, k_h,
                       preferred_element_type=jnp.float32)           # (T, T) f32
        s = jnp.where(causal, s, -jnp.inf)
        m = jnp.max(s, axis=-1, keepdims=True)
        p = jnp.exp(s - m)                                           # f32 (EUP)
        inv = pl.reciprocal(jnp.sum(p, axis=-1, keepdims=True), approx=True)
        # deferred normalization: scale the (T, D) result, not the (T, T) slab
        y_h = jnp.dot(p.astype(jnp.bfloat16), v_h,
                      preferred_element_type=jnp.float32) * inv      # (T, D) f32
        ys.append(y_h)

    # Assemble (T, C) in registers and run ONE K=C output projection matmul.
    y = jnp.concatenate(ys, axis=-1)                                 # (T, C) f32
    att = jnp.dot(y.astype(jnp.bfloat16), wao_ref[...],
                  preferred_element_type=jnp.float32) + bao_ref[...] # (T, C) f32

    x1 = x + att                                                     # residual 1

    # ----- MLP branch: ln2 -> fc -> GELU -> proj -----
    h2 = _layernorm(x1, ln2w_ref[...], ln2b_ref[...])                # f32
    f = jnp.dot(h2.astype(jnp.bfloat16), wfc_ref[...],
                preferred_element_type=jnp.float32) + bfc_ref[...]   # (T, 4C)
    g = _gelu_tanh(f)                                                # f32
    mo = jnp.dot(g.astype(jnp.bfloat16), wpr_ref[...],
                 preferred_element_type=jnp.float32) + bpr_ref[...]  # (T, C)

    o_ref[0] = x1 + mo                                               # residual 2


def gpt2_block(x, params, *, n_head=N_HEAD):
    B, T, C = x.shape
    D = C // n_head
    (ln1w, ln1b, wqkv, bqkv, wao, bao,
     ln2w, ln2b, wfc, bfc, wpr, bpr) = params

    # Kernel-side weight prep (outside the kernel, once):
    #  * fold the 1/sqrt(D) attention scale into the q columns of wqkv / bqkv
    #  * cast all matmul weights to bf16 (MXU operands; halves weight traffic)
    scale = 1.0 / math.sqrt(D)
    wqkv = wqkv.at[:, :C].multiply(scale)
    bqkv = bqkv.at[:, :C].multiply(scale)
    wqkv_bf = wqkv.astype(jnp.bfloat16)
    wao_bf  = wao.astype(jnp.bfloat16)
    wfc_bf  = wfc.astype(jnp.bfloat16)
    wpr_bf  = wpr.astype(jnp.bfloat16)

    # Grid-invariant full-array blocks (index_map constant -> DMA'd once).
    def full(a):
        return pl.BlockSpec(a.shape, lambda b, _nd=a.ndim: (0,) * _nd)

    grid_spec = pltpu.PrefetchScalarGridSpec(
        num_scalar_prefetch=0,
        grid=(B,),
        in_specs=[
            pl.BlockSpec((1, T, C), lambda b: (b, 0, 0)),   # x
            full(ln1w), full(ln1b),
            full(wqkv_bf), full(bqkv),
            full(wao_bf),  full(bao),
            full(ln2w), full(ln2b),
            full(wfc_bf),  full(bfc),
            full(wpr_bf),  full(bpr),
        ],
        out_specs=pl.BlockSpec((1, T, C), lambda b: (b, 0, 0)),
    )

    return pl.pallas_call(
        functools.partial(block_kernel, n_head=n_head),
        out_shape=jax.ShapeDtypeStruct((B, T, C), jnp.float32),
        grid_spec=grid_spec,
        compiler_params=pltpu.CompilerParams(
            dimension_semantics=("parallel",)),   # one sequence per TC on v7x
    )(x, ln1w, ln1b, wqkv_bf, bqkv, wao_bf, bao,
      ln2w, ln2b, wfc_bf, bfc, wpr_bf, bpr)


def make_params(key, C):
    ks = jax.random.split(key, 4)
    std = 0.02
    # LayerNorm: weight=1, bias=0 (PyTorch default)
    ln1w = jnp.ones((1, C), jnp.float32)
    ln1b = jnp.zeros((1, C), jnp.float32)
    ln2w = jnp.ones((1, C), jnp.float32)
    ln2b = jnp.zeros((1, C), jnp.float32)
    # Linear weights stored as (in, out); biases as (1, out)
    wqkv = jax.random.normal(ks[0], (C, 3 * C), jnp.float32) * std
    bqkv = jnp.zeros((1, 3 * C), jnp.float32)
    wao  = jax.random.normal(ks[1], (C, C), jnp.float32) * std
    bao  = jnp.zeros((1, C), jnp.float32)
    wfc  = jax.random.normal(ks[2], (C, 4 * C), jnp.float32) * std
    bfc  = jnp.zeros((1, 4 * C), jnp.float32)
    wpr  = jax.random.normal(ks[3], (4 * C, C), jnp.float32) * std
    bpr  = jnp.zeros((1, C), jnp.float32)
    return (ln1w, ln1b, wqkv, bqkv, wao, bao, ln2w, ln2b, wfc, bfc, wpr, bpr)


def reference_block(x, params, n_head=N_HEAD):
    """Pure-JAX f32 reference mirroring the PyTorch forward."""
    (ln1w, ln1b, wqkv, bqkv, wao, bao,
     ln2w, ln2b, wfc, bfc, wpr, bpr) = params
    B, T, C = x.shape
    H, D = n_head, C // n_head

    def ln(h, w, b):
        mu = h.mean(-1, keepdims=True)
        var = ((h - mu) ** 2).mean(-1, keepdims=True)
        return (h - mu) / jnp.sqrt(var + LN_EPS) * w + b

    h = ln(x, ln1w, ln1b)
    qkv = h @ wqkv + bqkv
    q, k, v = jnp.split(qkv, 3, axis=-1)
    q = q.reshape(B, T, H, D).transpose(0, 2, 1, 3)
    k = k.reshape(B, T, H, D).transpose(0, 2, 1, 3)
    v = v.reshape(B, T, H, D).transpose(0, 2, 1, 3)
    s = (q @ jnp.swapaxes(k, -1, -2)) / math.sqrt(D)
    mask = jnp.tril(jnp.ones((T, T), bool))
    s = jnp.where(mask, s, -jnp.inf)
    p = jax.nn.softmax(s, axis=-1)
    y = (p @ v).transpose(0, 2, 1, 3).reshape(B, T, C)
    x = x + (y @ wao + bao)
    h2 = ln(x, ln2w, ln2b)
    f = h2 @ wfc + bfc
    g = 0.5 * f * (1.0 + jnp.tanh(0.7978845608028654 * (f + 0.044715 * f ** 3)))
    return x + (g @ wpr + bpr)


if __name__ == "__main__":
    key = jax.random.PRNGKey(0)
    kx, kp = jax.random.split(key)
    x = jax.random.normal(kx, (BATCH, SEQ, N_EMBD), jnp.float32)
    params = make_params(kp, N_EMBD)

    out = gpt2_block(x, params)
    out = jax.block_until_ready(out)

    ref = reference_block(x, params)
    err = float(jnp.max(jnp.abs(out - ref)))
    # bf16 MXU operands + approx softmax reciprocal vs an f32 reference:
    # widen the tolerance accordingly (output is x + O(0.05) activations).
    assert err < 5e-3, f"mismatch vs reference: max abs err {err}"

    print("KERNEL_OK")
</pallas_src>

<mosaic_0001>
module attributes {stable_mosaic.version = 11 : i64} {
  func.func @block_kernel(%arg0: i32, %arg1: memref<1x128x128xf32, #tpu.memory_space<vmem>>, %arg2: memref<1x128xf32, #tpu.memory_space<vmem>>, %arg3: memref<1x128xf32, #tpu.memory_space<vmem>>, %arg4: memref<128x384xbf16, #tpu.memory_space<vmem>>, %arg5: memref<1x384xf32, #tpu.memory_space<vmem>>, %arg6: memref<128x128xbf16, #tpu.memory_space<vmem>>, %arg7: memref<1x128xf32, #tpu.memory_space<vmem>>, %arg8: memref<1x128xf32, #tpu.memory_space<vmem>>, %arg9: memref<1x128xf32, #tpu.memory_space<vmem>>, %arg10: memref<128x512xbf16, #tpu.memory_space<vmem>>, %arg11: memref<1x512xf32, #tpu.memory_space<vmem>>, %arg12: memref<512x128xbf16, #tpu.memory_space<vmem>>, %arg13: memref<1x128xf32, #tpu.memory_space<vmem>>, %arg14: memref<1x128x128xf32, #tpu.memory_space<vmem>>) attributes {dimension_semantics = [#tpu.dimension_semantics<parallel>], iteration_bounds = array<i64: 2>, scalar_prefetch = 0 : i64, scratch_operands = 0 : i64, tpu.core_type = #tpu.core_type<tc>, window_params = [{transform_indices = @transform_0, window_bounds = array<i64: 1, 128, 128>}, {pipeline_mode = #tpu.pipeline_mode<synchronous>, transform_indices = @transform_1, window_bounds = array<i64: 1, 128>}, {pipeline_mode = #tpu.pipeline_mode<synchronous>, transform_indices = @transform_2, window_bounds = array<i64: 1, 128>}, {pipeline_mode = #tpu.pipeline_mode<synchronous>, transform_indices = @transform_3, window_bounds = array<i64: 128, 384>}, {pipeline_mode = #tpu.pipeline_mode<synchronous>, transform_indices = @transform_4, window_bounds = array<i64: 1, 384>}, {pipeline_mode = #tpu.pipeline_mode<synchronous>, transform_indices = @transform_5, window_bounds = array<i64: 128, 128>}, {pipeline_mode = #tpu.pipeline_mode<synchronous>, transform_indices = @transform_6, window_bounds = array<i64: 1, 128>}, {pipeline_mode = #tpu.pipeline_mode<synchronous>, transform_indices = @transform_7, window_bounds = array<i64: 1, 128>}, {pipeline_mode = #tpu.pipeline_mode<synchronous>, transform_indices = @transform_8, window_bounds = array<i64: 1, 128>}, {pipeline_mode = #tpu.pipeline_mode<synchronous>, transform_indices = @transform_9, window_bounds = array<i64: 128, 512>}, {pipeline_mode = #tpu.pipeline_mode<synchronous>, transform_indices = @transform_10, window_bounds = array<i64: 1, 512>}, {pipeline_mode = #tpu.pipeline_mode<synchronous>, transform_indices = @transform_11, window_bounds = array<i64: 512, 128>}, {pipeline_mode = #tpu.pipeline_mode<synchronous>, transform_indices = @transform_12, window_bounds = array<i64: 1, 128>}, {transform_indices = @transform_13, window_bounds = array<i64: 1, 128, 128>}]} {
    %c0 = arith.constant 0 : index
    %c0_0 = arith.constant 0 : index
    %c0_1 = arith.constant 0 : index
    %0 = vector.load %arg1[%c0, %c0_0, %c0_1] : memref<1x128x128xf32, #tpu.memory_space<vmem>>, vector<1x128x128xf32>
    %1 = vector.shape_cast %0 : vector<1x128x128xf32> to vector<128x128xf32>
    %c0_2 = arith.constant 0 : index
    %c0_3 = arith.constant 0 : index
    %2 = vector.load %arg2[%c0_2, %c0_3] : memref<1x128xf32, #tpu.memory_space<vmem>>, vector<1x128xf32>
    %c0_4 = arith.constant 0 : index
    %c0_5 = arith.constant 0 : index
    %3 = vector.load %arg3[%c0_4, %c0_5] : memref<1x128xf32, #tpu.memory_space<vmem>>, vector<1x128xf32>
    %cst = arith.constant dense<0.000000e+00> : vector<128xf32>
    %4 = vector.multi_reduction <add>, %1, %cst [1] : vector<128x128xf32> to vector<128xf32>
    %5 = vector.shape_cast %4 : vector<128xf32> to vector<128x1xf32>
    %cst_6 = arith.constant 1.280000e+02 : f32
    %6 = vector.broadcast %cst_6 : f32 to vector<128x1xf32>
    %7 = arith.divf %5, %6 : vector<128x1xf32>
    %8 = vector.broadcast %7 : vector<128x1xf32> to vector<128x128xf32>
    %9 = arith.subf %1, %8 : vector<128x128xf32>
    %10 = arith.mulf %9, %9 : vector<128x128xf32>
    %cst_7 = arith.constant dense<0.000000e+00> : vector<128xf32>
    %11 = vector.multi_reduction <add>, %10, %cst_7 [1] : vector<128x128xf32> to vector<128xf32>
    %12 = vector.shape_cast %11 : vector<128xf32> to vector<128x1xf32>
    %cst_8 = arith.constant 1.280000e+02 : f32
    %13 = vector.broadcast %cst_8 : f32 to vector<128x1xf32>
    %14 = arith.divf %12, %13 : vector<128x1xf32>
    %15 = vector.broadcast %7 : vector<128x1xf32> to vector<128x128xf32>
    %16 = arith.subf %1, %15 : vector<128x128xf32>
    %cst_9 = arith.constant 9.99999974E-6 : f32
    %17 = vector.broadcast %cst_9 : f32 to vector<128x1xf32>
    %18 = arith.addf %14, %17 : vector<128x1xf32>
    %19 = math.rsqrt %18 : vector<128x1xf32>
    %20 = vector.broadcast %19 : vector<128x1xf32> to vector<128x128xf32>
    %21 = arith.mulf %16, %20 : vector<128x128xf32>
    %22 = vector.broadcast %2 : vector<1x128xf32> to vector<128x128xf32>
    %23 = arith.mulf %21, %22 : vector<128x128xf32>
    %24 = vector.broadcast %3 : vector<1x128xf32> to vector<128x128xf32>
    %25 = arith.addf %23, %24 : vector<128x128xf32>
    %26 = arith.truncf %25 : vector<128x128xf32> to vector<128x128xbf16>
    %c0_10 = arith.constant 0 : index
    %c0_11 = arith.constant 0 : index
    %27 = vector.load %arg4[%c0_10, %c0_11] : memref<128x384xbf16, #tpu.memory_space<vmem>>, vector<128x384xbf16>
    %cst_12 = arith.constant dense<0.000000e+00> : vector<128x384xf32>
    %28 = tpu.matmul %26, %27, %cst_12 {dimension_numbers = #tpu.dot_dimension_numbers<[1], [0], [0], [1], [0, 0, 1, 1], [], []>} : vector<128x128xbf16>, vector<128x384xbf16>, vector<128x384xf32> -> vector<128x384xf32>
    %c0_13 = arith.constant 0 : index
    %c0_14 = arith.constant 0 : index
    %29 = vector.load %arg5[%c0_13, %c0_14] : memref<1x384xf32, #tpu.memory_space<vmem>>, vector<1x384xf32>
    %30 = vector.broadcast %29 : vector<1x384xf32> to vector<128x384xf32>
    %31 = arith.addf %28, %30 : vector<128x384xf32>
    %32 = arith.truncf %31 : vector<128x384xf32> to vector<128x384xbf16>
    %33 = tpu.iota {dimensions = array<i32: 0>} : vector<128x128xi32>
    %34 = tpu.iota {dimensions = array<i32: 1>} : vector<128x128xi32>
    %35 = arith.cmpi sle, %34, %33 : vector<128x128xi32>
    %36 = vector.extract_strided_slice %32 {offsets = [0, 0], sizes = [128, 32], strides = [1, 1]} : vector<128x384xbf16> to vector<128x32xbf16>
    %37 = vector.extract_strided_slice %32 {offsets = [0, 128], sizes = [128, 32], strides = [1, 1]} : vector<128x384xbf16> to vector<128x32xbf16>
    %38 = vector.extract_strided_slice %32 {offsets = [0, 256], sizes = [128, 32], strides = [1, 1]} : vector<128x384xbf16> to vector<128x32xbf16>
    "tpu.trace_start"() <{level = 10 : i32, message = "td,sd->ts"}> : () -> ()
    %cst_15 = arith.constant dense<0.000000e+00> : vector<128x128xf32>
    %39 = tpu.matmul %36, %37, %cst_15 {dimension_numbers = #tpu.dot_dimension_numbers<[1], [1], [0], [0], [0, 0, 1, 0], [], []>} : vector<128x32xbf16>, vector<128x32xbf16>, vector<128x128xf32> -> vector<128x128xf32>
    %cst_16 = arith.constant 0xFF800000 : f32
    "tpu.trace_stop"() : () -> ()
    %40 = vector.broadcast %cst_16 : f32 to vector<128x128xf32>
    %41 = arith.select %35, %39, %40 : vector<128x128xi1>, vector<128x128xf32>
    %cst_17 = arith.constant dense<0xFF800000> : vector<128xf32>
    %42 = vector.multi_reduction <maximumf>, %41, %cst_17 [1] : vector<128x128xf32> to vector<128xf32>
    %43 = vector.shape_cast %42 : vector<128xf32> to vector<128x1xf32>
    %44 = vector.broadcast %43 : vector<128x1xf32> to vector<128x128xf32>
    %45 = arith.subf %41, %44 : vector<128x128xf32>
    %46 = math.exp %45 : vector<128x128xf32>
    %cst_18 = arith.constant dense<0.000000e+00> : vector<128xf32>
    %47 = vector.multi_reduction <add>, %46, %cst_18 [1] : vector<128x128xf32> to vector<128xf32>
    %48 = vector.shape_cast %47 : vector<128xf32> to vector<128x1xf32>
    %49 = tpu.reciprocal %48 {approx = true} : vector<128x1xf32> -> vector<128x1xf32>
    %50 = arith.truncf %46 : vector<128x128xf32> to vector<128x128xbf16>
    %cst_19 = arith.constant dense<0.000000e+00> : vector<128x32xf32>
    %51 = tpu.matmul %50, %38, %cst_19 {dimension_numbers = #tpu.dot_dimension_numbers<[1], [0], [0], [1], [0, 0, 1, 1], [], []>} : vector<128x128xbf16>, vector<128x32xbf16>, vector<128x32xf32> -> vector<128x32xf32>
    %52 = vector.broadcast %49 : vector<128x1xf32> to vector<128x32xf32>
    %53 = arith.mulf %51, %52 : vector<128x32xf32>
    %54 = vector.extract_strided_slice %32 {offsets = [0, 32], sizes = [128, 32], strides = [1, 1]} : vector<128x384xbf16> to vector<128x32xbf16>
    %55 = vector.extract_strided_slice %32 {offsets = [0, 160], sizes = [128, 32], strides = [1, 1]} : vector<128x384xbf16> to vector<128x32xbf16>
    %56 = vector.extract_strided_slice %32 {offsets = [0, 288], sizes = [128, 32], strides = [1, 1]} : vector<128x384xbf16> to vector<128x32xbf16>
    "tpu.trace_start"() <{level = 10 : i32, message = "td,sd->ts"}> : () -> ()
    %cst_20 = arith.constant dense<0.000000e+00> : vector<128x128xf32>
    %57 = tpu.matmul %54, %55, %cst_20 {dimension_numbers = #tpu.dot_dimension_numbers<[1], [1], [0], [0], [0, 0, 1, 0], [], []>} : vector<128x32xbf16>, vector<128x32xbf16>, vector<128x128xf32> -> vector<128x128xf32>
    %cst_21 = arith.constant 0xFF800000 : f32
    "tpu.trace_stop"() : () -> ()
    %58 = vector.broadcast %cst_21 : f32 to vector<128x128xf32>
    %59 = arith.select %35, %57, %58 : vector<128x128xi1>, vector<128x128xf32>
    %cst_22 = arith.constant dense<0xFF800000> : vector<128xf32>
    %60 = vector.multi_reduction <maximumf>, %59, %cst_22 [1] : vector<128x128xf32> to vector<128xf32>
    %61 = vector.shape_cast %60 : vector<128xf32> to vector<128x1xf32>
    %62 = vector.broadcast %61 : vector<128x1xf32> to vector<128x128xf32>
    %63 = arith.subf %59, %62 : vector<128x128xf32>
    %64 = math.exp %63 : vector<128x128xf32>
    %cst_23 = arith.constant dense<0.000000e+00> : vector<128xf32>
    %65 = vector.multi_reduction <add>, %64, %cst_23 [1] : vector<128x128xf32> to vector<128xf32>
    %66 = vector.shape_cast %65 : vector<128xf32> to vector<128x1xf32>
    %67 = tpu.reciprocal %66 {approx = true} : vector<128x1xf32> -> vector<128x1xf32>
    %68 = arith.truncf %64 : vector<128x128xf32> to vector<128x128xbf16>
    %cst_24 = arith.constant dense<0.000000e+00> : vector<128x32xf32>
    %69 = tpu.matmul %68, %56, %cst_24 {dimension_numbers = #tpu.dot_dimension_numbers<[1], [0], [0], [1], [0, 0, 1, 1], [], []>} : vector<128x128xbf16>, vector<128x32xbf16>, vector<128x32xf32> -> vector<128x32xf32>
    %70 = vector.broadcast %67 : vector<128x1xf32> to vector<128x32xf32>
    %71 = arith.mulf %69, %70 : vector<128x32xf32>
    %72 = vector.extract_strided_slice %32 {offsets = [0, 64], sizes = [128, 32], strides = [1, 1]} : vector<128x384xbf16> to vector<128x32xbf16>
    %73 = vector.extract_strided_slice %32 {offsets = [0, 192], sizes = [128, 32], strides = [1, 1]} : vector<128x384xbf16> to vector<128x32xbf16>
    %74 = vector.extract_strided_slice %32 {offsets = [0, 320], sizes = [128, 32], strides = [1, 1]} : vector<128x384xbf16> to vector<128x32xbf16>
    "tpu.trace_start"() <{level = 10 : i32, message = "td,sd->ts"}> : () -> ()
    %cst_25 = arith.constant dense<0.000000e+00> : vector<128x128xf32>
    %75 = tpu.matmul %72, %73, %cst_25 {dimension_numbers = #tpu.dot_dimension_numbers<[1], [1], [0], [0], [0, 0, 1, 0], [], []>} : vector<128x32xbf16>, vector<128x32xbf16>, vector<128x128xf32> -> vector<128x128xf32>
    %cst_26 = arith.constant 0xFF800000 : f32
    "tpu.trace_stop"() : () -> ()
    %76 = vector.broadcast %cst_26 : f32 to vector<128x128xf32>
    %77 = arith.select %35, %75, %76 : vector<128x128xi1>, vector<128x128xf32>
    %cst_27 = arith.constant dense<0xFF800000> : vector<128xf32>
    %78 = vector.multi_reduction <maximumf>, %77, %cst_27 [1] : vector<128x128xf32> to vector<128xf32>
    %79 = vector.shape_cast %78 : vector<128xf32> to vector<128x1xf32>
    %80 = vector.broadcast %79 : vector<128x1xf32> to vector<128x128xf32>
    %81 = arith.subf %77, %80 : vector<128x128xf32>
    %82 = math.exp %81 : vector<128x128xf32>
    %cst_28 = arith.constant dense<0.000000e+00> : vector<128xf32>
    %83 = vector.multi_reduction <add>, %82, %cst_28 [1] : vector<128x128xf32> to vector<128xf32>
    %84 = vector.shape_cast %83 : vector<128xf32> to vector<128x1xf32>
    %85 = tpu.reciprocal %84 {approx = true} : vector<128x1xf32> -> vector<128x1xf32>
    %86 = arith.truncf %82 : vector<128x128xf32> to vector<128x128xbf16>
    %cst_29 = arith.constant dense<0.000000e+00> : vector<128x32xf32>
    %87 = tpu.matmul %86, %74, %cst_29 {dimension_numbers = #tpu.dot_dimension_numbers<[1], [0], [0], [1], [0, 0, 1, 1], [], []>} : vector<128x128xbf16>, vector<128x32xbf16>, vector<128x32xf32> -> vector<128x32xf32>
    %88 = vector.broadcast %85 : vector<128x1xf32> to vector<128x32xf32>
    %89 = arith.mulf %87, %88 : vector<128x32xf32>
    %90 = vector.extract_strided_slice %32 {offsets = [0, 96], sizes = [128, 32], strides = [1, 1]} : vector<128x384xbf16> to vector<128x32xbf16>
    %91 = vector.extract_strided_slice %32 {offsets = [0, 224], sizes = [128, 32], strides = [1, 1]} : vector<128x384xbf16> to vector<128x32xbf16>
    %92 = vector.extract_strided_slice %32 {offsets = [0, 352], sizes = [128, 32], strides = [1, 1]} : vector<128x384xbf16> to vector<128x32xbf16>
    "tpu.trace_start"() <{level = 10 : i32, message = "td,sd->ts"}> : () -> ()
    %cst_30 = arith.constant dense<0.000000e+00> : vector<128x128xf32>
    %93 = tpu.matmul %90, %91, %cst_30 {dimension_numbers = #tpu.dot_dimension_numbers<[1], [1], [0], [0], [0, 0, 1, 0], [], []>} : vector<128x32xbf16>, vector<128x32xbf16>, vector<128x128xf32> -> vector<128x128xf32>
    %cst_31 = arith.constant 0xFF800000 : f32
    "tpu.trace_stop"() : () -> ()
    %94 = vector.broadcast %cst_31 : f32 to vector<128x128xf32>
    %95 = arith.select %35, %93, %94 : vector<128x128xi1>, vector<128x128xf32>
    %cst_32 = arith.constant dense<0xFF800000> : vector<128xf32>
    %96 = vector.multi_reduction <maximumf>, %95, %cst_32 [1] : vector<128x128xf32> to vector<128xf32>
    %97 = vector.shape_cast %96 : vector<128xf32> to vector<128x1xf32>
    %98 = vector.broadcast %97 : vector<128x1xf32> to vector<128x128xf32>
    %99 = arith.subf %95, %98 : vector<128x128xf32>
    %100 = math.exp %99 : vector<128x128xf32>
    %cst_33 = arith.constant dense<0.000000e+00> : vector<128xf32>
    %101 = vector.multi_reduction <add>, %100, %cst_33 [1] : vector<128x128xf32> to vector<128xf32>
    %102 = vector.shape_cast %101 : vector<128xf32> to vector<128x1xf32>
    %103 = tpu.reciprocal %102 {approx = true} : vector<128x1xf32> -> vector<128x1xf32>
    %104 = arith.truncf %100 : vector<128x128xf32> to vector<128x128xbf16>
    %cst_34 = arith.constant dense<0.000000e+00> : vector<128x32xf32>
    %105 = tpu.matmul %104, %92, %cst_34 {dimension_numbers = #tpu.dot_dimension_numbers<[1], [0], [0], [1], [0, 0, 1, 1], [], []>} : vector<128x128xbf16>, vector<128x32xbf16>, vector<128x32xf32> -> vector<128x32xf32>
    %106 = vector.broadcast %103 : vector<128x1xf32> to vector<128x32xf32>
    %107 = arith.mulf %105, %106 : vector<128x32xf32>
    %108 = tpu.concatenate %53, %71, %89, %107 in 1 : vector<128x32xf32>, vector<128x32xf32>, vector<128x32xf32>, vector<128x32xf32> -> vector<128x128xf32>
    %109 = arith.truncf %108 : vector<128x128xf32> to vector<128x128xbf16>
    %c0_35 = arith.constant 0 : index
    %c0_36 = arith.constant 0 : index
    %110 = vector.load %arg6[%c0_35, %c0_36] : memref<128x128xbf16, #tpu.memory_space<vmem>>, vector<128x128xbf16>
    %cst_37 = arith.constant dense<0.000000e+00> : vector<128x128xf32>
    %111 = tpu.matmul %109, %110, %cst_37 {dimension_numbers = #tpu.dot_dimension_numbers<[1], [0], [0], [1], [0, 0, 1, 1], [], []>} : vector<128x128xbf16>, vector<128x128xbf16>, vector<128x128xf32> -> vector<128x128xf32>
    %c0_38 = arith.constant 0 : index
    %c0_39 = arith.constant 0 : index
    %112 = vector.load %arg7[%c0_38, %c0_39] : memref<1x128xf32, #tpu.memory_space<vmem>>, vector<1x128xf32>
    %113 = vector.broadcast %112 : vector<1x128xf32> to vector<128x128xf32>
    %114 = arith.addf %111, %113 : vector<128x128xf32>
    %115 = arith.addf %1, %114 : vector<128x128xf32>
    %c0_40 = arith.constant 0 : index
    %c0_41 = arith.constant 0 : index
    %116 = vector.load %arg8[%c0_40, %c0_41] : memref<1x128xf32, #tpu.memory_space<vmem>>, vector<1x128xf32>
    %c0_42 = arith.constant 0 : index
    %c0_43 = arith.constant 0 : index
    %117 = vector.load %arg9[%c0_42, %c0_43] : memref<1x128xf32, #tpu.memory_space<vmem>>, vector<1x128xf32>
    %cst_44 = arith.constant dense<0.000000e+00> : vector<128xf32>
    %118 = vector.multi_reduction <add>, %115, %cst_44 [1] : vector<128x128xf32> to vector<128xf32>
    %119 = vector.shape_cast %118 : vector<128xf32> to vector<128x1xf32>
    %cst_45 = arith.constant 1.280000e+02 : f32
    %120 = vector.broadcast %cst_45 : f32 to vector<128x1xf32>
    %121 = arith.divf %119, %120 : vector<128x1xf32>
    %122 = vector.broadcast %121 : vector<128x1xf32> to vector<128x128xf32>
    %123 = arith.subf %115, %122 : vector<128x128xf32>
    %124 = arith.mulf %123, %123 : vector<128x128xf32>
    %cst_46 = arith.constant dense<0.000000e+00> : vector<128xf32>
    %125 = vector.multi_reduction <add>, %124, %cst_46 [1] : vector<128x128xf32> to vector<128xf32>
    %126 = vector.shape_cast %125 : vector<128xf32> to vector<128x1xf32>
    %cst_47 = arith.constant 1.280000e+02 : f32
    %127 = vector.broadcast %cst_47 : f32 to vector<128x1xf32>
    %128 = arith.divf %126, %127 : vector<128x1xf32>
    %129 = vector.broadcast %121 : vector<128x1xf32> to vector<128x128xf32>
    %130 = arith.subf %115, %129 : vector<128x128xf32>
    %cst_48 = arith.constant 9.99999974E-6 : f32
    %131 = vector.broadcast %cst_48 : f32 to vector<128x1xf32>
    %132 = arith.addf %128, %131 : vector<128x1xf32>
    %133 = math.rsqrt %132 : vector<128x1xf32>
    %134 = vector.broadcast %133 : vector<128x1xf32> to vector<128x128xf32>
    %135 = arith.mulf %130, %134 : vector<128x128xf32>
    %136 = vector.broadcast %116 : vector<1x128xf32> to vector<128x128xf32>
    %137 = arith.mulf %135, %136 : vector<128x128xf32>
    %138 = vector.broadcast %117 : vector<1x128xf32> to vector<128x128xf32>
    %139 = arith.addf %137, %138 : vector<128x128xf32>
    %140 = arith.truncf %139 : vector<128x128xf32> to vector<128x128xbf16>
    %c0_49 = arith.constant 0 : index
    %c0_50 = arith.constant 0 : index
    %141 = vector.load %arg10[%c0_49, %c0_50] : memref<128x512xbf16, #tpu.memory_space<vmem>>, vector<128x512xbf16>
    %cst_51 = arith.constant dense<0.000000e+00> : vector<128x512xf32>
    %142 = tpu.matmul %140, %141, %cst_51 {dimension_numbers = #tpu.dot_dimension_numbers<[1], [0], [0], [1], [0, 0, 1, 1], [], []>} : vector<128x128xbf16>, vector<128x512xbf16>, vector<128x512xf32> -> vector<128x512xf32>
    %c0_52 = arith.constant 0 : index
    %c0_53 = arith.constant 0 : index
    %143 = vector.load %arg11[%c0_52, %c0_53] : memref<1x512xf32, #tpu.memory_space<vmem>>, vector<1x512xf32>
    %144 = vector.broadcast %143 : vector<1x512xf32> to vector<128x512xf32>
    %145 = arith.addf %142, %144 : vector<128x512xf32>
    %cst_54 = arith.constant 5.000000e-01 : f32
    %146 = vector.broadcast %cst_54 : f32 to vector<128x512xf32>
    %147 = arith.mulf %146, %145 : vector<128x512xf32>
    %cst_55 = arith.constant 4.471500e-02 : f32
    %148 = vector.broadcast %cst_55 : f32 to vector<128x512xf32>
    %149 = arith.mulf %148, %145 : vector<128x512xf32>
    %150 = arith.mulf %149, %145 : vector<128x512xf32>
    %151 = arith.mulf %150, %145 : vector<128x512xf32>
    %152 = arith.addf %145, %151 : vector<128x512xf32>
    %cst_56 = arith.constant 0.797884583 : f32
    %153 = vector.broadcast %cst_56 : f32 to vector<128x512xf32>
    %154 = arith.mulf %153, %152 : vector<128x512xf32>
    %155 = math.tanh %154 : vector<128x512xf32>
    %cst_57 = arith.constant 1.000000e+00 : f32
    %156 = vector.broadcast %cst_57 : f32 to vector<128x512xf32>
    %157 = arith.addf %156, %155 : vector<128x512xf32>
    %158 = arith.mulf %147, %157 : vector<128x512xf32>
    %159 = arith.truncf %158 : vector<128x512xf32> to vector<128x512xbf16>
    %c0_58 = arith.constant 0 : index
    %c0_59 = arith.constant 0 : index
    %160 = vector.load %arg12[%c0_58, %c0_59] : memref<512x128xbf16, #tpu.memory_space<vmem>>, vector<512x128xbf16>
    %cst_60 = arith.constant dense<0.000000e+00> : vector<128x128xf32>
    %161 = tpu.matmul %159, %160, %cst_60 {dimension_numbers = #tpu.dot_dimension_numbers<[1], [0], [0], [1], [0, 0, 1, 1], [], []>} : vector<128x512xbf16>, vector<512x128xbf16>, vector<128x128xf32> -> vector<128x128xf32>
    %c0_61 = arith.constant 0 : index
    %c0_62 = arith.constant 0 : index
    %162 = vector.load %arg13[%c0_61, %c0_62] : memref<1x128xf32, #tpu.memory_space<vmem>>, vector<1x128xf32>
    %163 = vector.broadcast %162 : vector<1x128xf32> to vector<128x128xf32>
    %164 = arith.addf %161, %163 : vector<128x128xf32>
    %165 = arith.addf %115, %164 : vector<128x128xf32>
    %c0_63 = arith.constant 0 : index
    %c0_64 = arith.constant 0 : index
    %c0_65 = arith.constant 0 : index
    %166 = vector.load %arg14[%c0_63, %c0_64, %c0_65] : memref<1x128x128xf32, #tpu.memory_space<vmem>>, vector<1x128x128xf32>
    %167 = vector.shape_cast %166 : vector<1x128x128xf32> to vector<128x128xf32>
    %168 = vector.shape_cast %165 : vector<128x128xf32> to vector<1x128x128xf32>
    tpu.vector_store %arg14[%c0_63, %c0_64, %c0_65], %168 {strides = array<i32>} : memref<1x128x128xf32, #tpu.memory_space<vmem>>, vector<1x128x128xf32>,
    return
  }
  func.func @transform_0(%arg0: i32) -> (i32, i32, i32) {
    %c0_i32 = arith.constant 0 : i32
    %c0_i32_0 = arith.constant 0 : i32
    %c0_i32_1 = arith.constant 0 : i32
    return %arg0, %c0_i32, %c0_i32_0 : i32, i32, i32
  }
  func.func @transform_1(%arg0: i32) -> (i32, i32) {
    %c0_i32 = arith.constant 0 : i32
    %c0_i32_0 = arith.constant 0 : i32
    %c0_i32_1 = arith.constant 0 : i32
    return %c0_i32, %c0_i32_0 : i32, i32
  }
  func.func @transform_2(%arg0: i32) -> (i32, i32) {
    %c0_i32 = arith.constant 0 : i32
    %c0_i32_0 = arith.constant 0 : i32
    %c0_i32_1 = arith.constant 0 : i32
    return %c0_i32, %c0_i32_0 : i32, i32
  }
  func.func @transform_3(%arg0: i32) -> (i32, i32) {
    %c0_i32 = arith.constant 0 : i32
    %c0_i32_0 = arith.constant 0 : i32
    %c0_i32_1 = arith.constant 0 : i32
    return %c0_i32, %c0_i32_0 : i32, i32
  }
  func.func @transform_4(%arg0: i32) -> (i32, i32) {
    %c0_i32 = arith.constant 0 : i32
    %c0_i32_0 = arith.constant 0 : i32
    %c0_i32_1 = arith.constant 0 : i32
    return %c0_i32, %c0_i32_0 : i32, i32
  }
  func.func @transform_5(%arg0: i32) -> (i32, i32) {
    %c0_i32 = arith.constant 0 : i32
    %c0_i32_0 = arith.constant 0 : i32
    %c0_i32_1 = arith.constant 0 : i32
    return %c0_i32, %c0_i32_0 : i32, i32
  }
  func.func @transform_6(%arg0: i32) -> (i32, i32) {
    %c0_i32 = arith.constant 0 : i32
    %c0_i32_0 = arith.constant 0 : i32
    %c0_i32_1 = arith.constant 0 : i32
    return %c0_i32, %c0_i32_0 : i32, i32
  }
  func.func @transform_7(%arg0: i32) -> (i32, i32) {
    %c0_i32 = arith.constant 0 : i32
    %c0_i32_0 = arith.constant 0 : i32
    %c0_i32_1 = arith.constant 0 : i32
    return %c0_i32, %c0_i32_0 : i32, i32
  }
  func.func @transform_8(%arg0: i32) -> (i32, i32) {
    %c0_i32 = arith.constant 0 : i32
    %c0_i32_0 = arith.constant 0 : i32
    %c0_i32_1 = arith.constant 0 : i32
    return %c0_i32, %c0_i32_0 : i32, i32
  }
  func.func @transform_9(%arg0: i32) -> (i32, i32) {
    %c0_i32 = arith.constant 0 : i32
    %c0_i32_0 = arith.constant 0 : i32
    %c0_i32_1 = arith.constant 0 : i32
    return %c0_i32, %c0_i32_0 : i32, i32
  }
  func.func @transform_10(%arg0: i32) -> (i32, i32) {
    %c0_i32 = arith.constant 0 : i32
    %c0_i32_0 = arith.constant 0 : i32
    %c0_i32_1 = arith.constant 0 : i32
    return %c0_i32, %c0_i32_0 : i32, i32
  }
  func.func @transform_11(%arg0: i32) -> (i32, i32) {
    %c0_i32 = arith.constant 0 : i32
    %c0_i32_0 = arith.constant 0 : i32
    %c0_i32_1 = arith.constant 0 : i32
    return %c0_i32, %c0_i32_0 : i32, i32
  }
  func.func @transform_12(%arg0: i32) -> (i32, i32) {
    %c0_i32 = arith.constant 0 : i32
    %c0_i32_0 = arith.constant 0 : i32
    %c0_i32_1 = arith.constant 0 : i32
    return %c0_i32, %c0_i32_0 : i32, i32
  }
  func.func @transform_13(%arg0: i32) -> (i32, i32, i32) {
    %c0_i32 = arith.constant 0 : i32
    %c0_i32_0 = arith.constant 0 : i32
    %c0_i32_1 = arith.constant 0 : i32
    return %arg0, %c0_i32, %c0_i32_0 : i32, i32, i32
  }
}

</mosaic_0001>

<bundles_post_ra>
// kernel: tpu_custom_call.1
= control target key start
LH: loop header
LB: loop body
LE: loop exit
PB: predicated region body
PF: predicated region fallthrough
CT: control target
= control target key end

     0   :  { %s10494_s0 = inlined_call_operand.hbm [shape: f32[2,128,128], index: 0, kind: input, shape index: {}]   ;;  %s10495_s1 = inlined_call_operand.hbm [shape: f32[1,128], index: 1, kind: input, shape index: {}]   ;;  %s10496_s2 = inlined_call_operand.hbm [shape: f32[1,128], index: 2, kind: input, shape index: {}]   ;;  %s10497_s3 = inlined_call_operand.hbm [shape: bf16[128,384], index: 3, kind: input, shape index: {}]   ;;  %s10498_s4 = inlined_call_operand.vmem [shape: f32[1,384], index: 4, kind: input, shape index: {}]   ;;  %s10499_s5 = inlined_call_operand.hbm [shape: bf16[128,128], index: 5, kind: input, shape index: {}]   ;;  %s10500_s6 = inlined_call_operand.vmem [shape: f32[1,128], index: 6, kind: input, shape index: {}]   ;;  %s10501_s7 = inlined_call_operand.vmem [shape: f32[1,128], index: 7, kind: input, shape index: {}]   ;;  %s10502_s8 = inlined_call_operand.vmem [shape: f32[1,128], index: 8, kind: input, shape index: {}]   ;;  %s10503_s9 = inlined_call_operand.hbm [shape: bf16[128,512], index: 9, kind: input, shape index: {}]   ;;  %s10504_s10 = inlined_call_operand.vmem [shape: f32[1,512], index: 10, kind: input, shape index: {}]   ;;  %s10505_s11 = inlined_call_operand.hbm [shape: bf16[512,128], index: 11, kind: input, shape index: {}]   ;;  %s10506_s12 = inlined_call_operand.vmem [shape: f32[1,128], index: 12, kind: input, shape index: {}]   ;;  %s10507_s13 = inlined_call_operand.hbm [shape: f32[2,128,128], index: 13, kind: output, shape index: {}]  }
   0x1   :  { %10604 = sst [smem:[#allocation77_spill]] %s10495_s1 }
   0x2   :  { %10605 = sst [smem:[#allocation78_spill]] %s10496_s2 }
   0x3   :  { %10606 = sst [smem:[#allocation79_spill]] %s10497_s3 }
   0x4   :  { %10607 = sst [smem:[#allocation80_spill]] %s10499_s5 }
   0x5   :  { %10608 = sst [smem:[#allocation81_spill]] %s10503_s9 }
   0x6   :  { %10609 = sst [smem:[#allocation82_spill]] %s10505_s11 }
   0x7   :  { %18 = vsyncpa [#allocation3], 0 }
   0x8   :  { %20 = vsyncpa [#allocation3 + $0x1], 0 }
   0x9   :  { %21 = vsyncpa [#allocation6], 0 }
   0xa   :  { %22 = vsyncpa [#allocation9], 0 }
   0xb   :  { %23 = vsyncpa [#allocation12], 0 }
   0xc   :  { %24 = vsyncpa [#allocation4], 0 }
   0xd   :  { %26 = vsyncpa [#allocation4 + $0x1], 0  ;;  %s7411_s25 = smov 0   ;;  %s7413_s26 = smov 0  }
   0xe   :  { %s7415_s27 = smov 0   ;;  %s7417_s28 = smov 0  }
   0xf LB: > { %s7319_s29 = smov [#allocation5]   ;;  %s7432_s14 = sadd.s32 4294967295, %s7317_s28   ;;  %s7317_s28 = sphi %s7417_s28, %s10891_s28   ;;  %s7313_s27 = sphi %s7415_s27, %s10890_s27   ;;  %s7309_s26 = sphi %s7413_s26, %s10889_s26   ;;  %s7305_s25 = sphi %s7411_s25, %s10888_s25  }
  0x10   : > { %s354_s30 = sshll.u32 %s7319_s29, 4  ;;  %p5415_p0 = scmp.ge.s32.totalorder %s7317_s28, 1  ;;  %s355_s30 = int_to_ptr.vmem [resolvable:$true] %s354_s30 }
  0x11   : > { %p10508_p1 = scmp.eq.s32.totalorder %s7432_s14, 0  ;;  %p341_p2 = scmp.lt.s32.totalorder %s7317_s28, 3 }
  0x12   : > { %s7320_s16 = smov [#allocation8]   ;;  %s7321_s19 = smov [#allocation11]  }
  0x13   : > { %p7437_p3 = pnand %p5415_p0, %p341_p2  ;;  %s375_s17 = sshll.u32 %s7320_s16, 4  ;;  %s7444_s17 = int_to_ptr.vmem [resolvable:$true] %s375_s17 }
  0x14   : > { %s413_s20 = sshll.u32 %s7321_s19, 4  ;;  %s7068_s22 = scalar_lea.vmem %s355_s30, 16  ;;  %s7452_s20 = int_to_ptr.vmem [resolvable:$true] %s413_s20 }
  0x15   : > { %s10610_s15 = scalar_select %p7437_p3, 1, 0 }
  0x16   : > { %p6260_p5 = pneg %p7437_p3  ;;  %p7069_p8 = scmp.ne.s32.totalorder %s355_s30, %s7068_s22 }
  0x17   : > { %s7075_s23 = scalar_lea.vmem %s355_s30, 32  ;;  %p7076_p11 = scmp.lt.s32.totalorder %s355_s30, %s355_s30 }
  0x18   : > { %p7448_p6 = pnand %p6260_p5, %p10508_p1  ;;  %p7077_p12 = scmp.lt.s32.totalorder %s7075_s23, %s7068_s22 }
  0x1a   : > { %p7456_p7 = pneg %p7448_p6  ;;  %p7078_p13 = por %p7077_p12, %p7076_p11 }
  0x1c   : > { %p7071_p9 = pnand %p7069_p8, %p7456_p7 }
  0x1e   : > { %p7072_p10 = pneg %p7071_p9 }
  0x20   : > { %p7079_p0 = pnand %p7078_p13, %p7072_p10 }
  0x22   : > { %7082 = shalt.err (!%p7079_p0)
}
  0x23   : > { %s10613_s1 = sld [smem:[#allocation77_spill]]  ;;  %s7094_s16 = scalar_lea.vmem %s7444_s17, 3072 }
  0x24   : > { %p7095_p2 = scmp.ne.s32.totalorder %s7444_s17, %s7094_s16  ;;  %p7102_p9 = scmp.lt.s32.totalorder %s7444_s17, %s7444_s17 }
  0x25   : > { %p7103_p11 = scmp.lt.s32.totalorder %s7094_s16, %s7094_s16 }
  0x26   : > { %p7097_p5 = pnand %p7095_p2, %p7456_p7 }
  0x27   : > { %p7104_p10 = por %p7103_p11, %p7102_p9 }
  0x28   : > { %p7098_p8 = pneg %p7097_p5 }
  0x29   : > { %6263 = dma.hbm_to_vmem [thread:$0]  (!%p7448_p6), %s10613_s1, 16, %s355_s30, [#allocation6]  }
  0x2a   : > { %p7105_p12 = pnand %p7104_p10, %p7098_p8 }
  0x2c   : > { %7108 = shalt.err (!%p7105_p12)
}
  0x2d   : > { %s7322_s19 = smov 192   ;;  %s7323_s22 = smov 12  }
  0x2e   : > { %s10614_s3 = sld [smem:[#allocation79_spill]]  ;;  %s7120_s24 = scalar_lea.vmem %s7452_s20, 4096 }
  0x2f   : > { %p7121_p13 = scmp.ne.s32.totalorder %s7452_s20, %s7120_s24  ;;  %p7128_p5 = scmp.lt.s32.totalorder %s7452_s20, %s7452_s20 }
  0x30   : > { %p7129_p8 = scmp.lt.s32.totalorder %s7120_s24, %s7120_s24 }
  0x31   : > { %p7123_p0 = pnand %p7121_p13, %p7456_p7 }
  0x32   : > { %p7130_p9 = por %p7129_p8, %p7128_p5 }
  0x33   : > { %p7124_p2 = pneg %p7123_p0 }
  0x34   : > { %6269 = dma.hbm_to_vmem [thread:$0]  (!%p7448_p6), %s10614_s3, 3072, %s7444_s17, [#allocation9], %s7322_s19, %s7322_s19, %s7323_s22  }
  0x35   : > { %p7131_p11 = pnand %p7130_p9, %p7124_p2 }
  0x37   : > { %7134 = shalt.err (!%p7131_p11)
}
  0x38   : > { %s7324_s29 = smov 256   ;;  %s7325_s16 = smov 16  }
  0x39   : > { %s10615_s9 = sld [smem:[#allocation81_spill]]  ;;  %s7326_s17 = smov [#allocation7]  }
  0x3a   : > { %s365_s19 = sshll.u32 %s7326_s17, 4  ;;  %s7327_s22 = smov [#allocation10]   ;;  %s366_s19 = int_to_ptr.vmem [resolvable:$true] %s365_s19 }
  0x3b   : > { %s391_s23 = sshll.u32 %s7327_s22, 4  ;;  %s7146_s3 = scalar_lea.vmem %s366_s19, 16  ;;  %s392_s23 = int_to_ptr.vmem [resolvable:$true] %s391_s23 }
  0x3c   : > { %p7147_p10 = scmp.ne.s32.totalorder %s366_s19, %s7146_s3  ;;  %s7153_s24 = scalar_lea.vmem %s366_s19, 32 }
  0x3d   : > { %p7154_p0 = scmp.lt.s32.totalorder %s366_s19, %s366_s19  ;;  %p7155_p2 = scmp.lt.s32.totalorder %s7153_s24, %s7146_s3 }
  0x3e   : > { %p7149_p12 = pnand %p7147_p10, %p7456_p7 }
  0x3f   : > { %6275 = dma.hbm_to_vmem [thread:$0]  (!%p7448_p6), %s10615_s9, 4096, %s7452_s20, [#allocation12], %s7324_s29, %s7324_s29, %s7325_s16  }
  0x40   : > { %p7150_p13 = pneg %p7149_p12  ;;  %p7156_p5 = por %p7155_p2, %p7154_p0 }
  0x42   : > { %p7157_p8 = pnand %p7156_p5, %p7150_p13 }
  0x44   : > { %7160 = shalt.err (!%p7157_p8)
}
  0x45   : > { %s10616_s2 = sld [smem:[#allocation78_spill]]  ;;  %s7172_s29 = scalar_lea.vmem %s392_s23, 1024 }
  0x46   : > { %p7173_p9 = scmp.ne.s32.totalorder %s392_s23, %s7172_s29  ;;  %p7180_p12 = scmp.lt.s32.totalorder %s392_s23, %s392_s23 }
  0x47   : > { %p7181_p4 = scmp.lt.s32.totalorder %s7172_s29, %s7172_s29 }
  0x48   : > { %p7175_p11 = pnand %p7173_p9, %p7456_p7 }
  0x49   : > { %p7182_p1 = por %p7181_p4, %p7180_p12 }
  0x4a   : > { %p7176_p10 = pneg %p7175_p11 }
  0x4b   : > { %6266 = dma.hbm_to_vmem [thread:$0]  (!%p7448_p6), %s10616_s2, 16, %s366_s19, [#allocation6]  }
  0x4c   : > { %p7183_p3 = pnand %p7182_p1, %p7176_p10 }
  0x4e   : > { %7186 = shalt.err (!%p7183_p3)
}
  0x4f   : > { %s7328_s3 = smov 64   ;;  %s7329_s16 = smov 4  }
  0x50   : > { %s10617_s5 = sld [smem:[#allocation80_spill]]  ;;  %s7330_s19 = smov [#allocation13]  }
  0x51   : > { %s429_s22 = sshll.u32 %s7330_s19, 4  ;;  %s430_s22 = int_to_ptr.vmem [resolvable:$true] %s429_s22 }
  0x52   : > { %s7198_s24 = scalar_lea.vmem %s430_s22, 4096  ;;  %p7206_p4 = scmp.lt.s32.totalorder %s430_s22, %s430_s22 }
  0x53   : > { %p7199_p13 = scmp.ne.s32.totalorder %s430_s22, %s7198_s24  ;;  %p7207_p1 = scmp.lt.s32.totalorder %s7198_s24, %s7198_s24 }
  0x55   : > { %p7201_p0 = pnand %p7199_p13, %p7456_p7  ;;  %p7208_p3 = por %p7207_p1, %p7206_p4 }
  0x56   : > { %6272 = dma.hbm_to_vmem [thread:$0]  (!%p7448_p6), %s10617_s5, 1024, %s392_s23, [#allocation9], %s7328_s3, %s7328_s3, %s7329_s16  }
  0x57   : > { %p7202_p2 = pneg %p7201_p0 }
  0x59   : > { %p7209_p5 = pnand %p7208_p3, %p7202_p2 }
  0x5b   : > { %7212 = shalt.err (!%p7209_p5)
}
  0x5c   : > { %s10618_s11 = sld [smem:[#allocation82_spill]]  ;;  %s5414_s21 = sadd.s32 4294967294, %s7317_s28  }
  0x5d   : > { %s7514_s18 = sadd.s32 1, %s7317_s28   ;;  %s39_s29 = sadd.s32 1, %s7313_s27 }
  0x5e   : > { %s36_s23 = ssub.s32 %s7317_s28, %s7514_s18  ;;  %p46_p8 = scmp.ne.s32.totalorder %s7313_s27, %s7309_s26 }
  0x5f   : > { %p37_p7 = scmp.eq.s32.totalorder %s36_s23, 0  ;;  %p47_p9 = scmp.eq.s32.totalorder %s7317_s28, 0 }
  0x60   : > { %p52_p11 = scmp.ne.s32.totalorder %s7309_s26, %s7305_s25  ;;  %p10621_p12 = scmp.eq.s32.totalorder %s7432_s14, 0 }
  0x61   : > { %s7525_s30 = scalar_select %p37_p7, %s7313_s27, %s39_s29  }
  0x62   : > { %6278 = dma.hbm_to_vmem [thread:$0]  (!%p7448_p6), %s10618_s11, 4096, %s430_s22, [#allocation12], %s7328_s3, %s7328_s3, %s7329_s16  }
  0x63   : > { %10619 = sst [smem:[#allocation20_spill]] %s7525_s30  ;;  %p7527_p10 = por %p47_p9, %p46_p8 }
  0x64   : > { %p7533_p6 = por %p10621_p12, %p52_p11  ;;  %p328_p13 = scmp.eq.s32.totalorder %s7432_s14, 1 }
  0x65   : > { %p334_p0 = scmp.eq.s32.totalorder %s5414_s21, 1  ;;  %p6293_p2 = scmp.lt.s32.totalorder %s7317_s28, 2 }
  0x66   : > { %s10622_s3 = scalar_select %p7533_p6, 1, 0 }
  0x67   : > { %s446_s16 = sand.u32 1, %s7313_s27   ;;  %p7540_p4 = por %p328_p13, %p46_p8 }
  0x68   : > { %p7544_p1 = por %p334_p0, %p52_p11  ;;  %s5423_s24 = sshll.u32 %s446_s16, 7 }
  0x69   : > { %s10623_s19 = scalar_select %p7540_p4, 1, 0 }
  0x6a   : > { %s10624_s22 = scalar_select %p7544_p1, 1, 0 }
  0x6b   : > { %s5574_s1 = sshll.u32 %s7317_s28, 11  ;;  %s450_s21 = scalar_lea.vmem [#allocation2], %s5423_s24 }
  0x6c   : > { %s7552_s29 = scalar_lea.hbm %s10494_s0, %s5574_s1  ;;  %s457_s2 = sshll.u32 %s450_s21, 4  ;;  %s7554_s2 = int_to_ptr.vmem [resolvable:$true] %s457_s2 }
  0x6d   : > { %p7558_p3 = pnand %p6293_p2, %p7527_p10  ;;  %s7562_s9 = scalar_lea.sflag [#allocation3], %s446_s16 }
  0x6e   : > { %s7213_s11 = scalar_lea.hbm %s7552_s29, 2048  ;;  %s7218_s24 = scalar_lea.hbm %s10494_s0, 4096 }
  0x6f   : > { %p7214_p5 = scmp.ne.s32.totalorder %s7552_s29, %s7213_s11  ;;  %p7215_p7 = pneg %p7558_p3 }
  0x70   : > { %p7219_p11 = scmp.lt.s32.totalorder %s7552_s29, %s10494_s0  ;;  %p7220_p10 = scmp.lt.s32.totalorder %s7218_s24, %s7213_s11 }
  0x71   : > { %p7216_p8 = pnand %p7215_p7, %p7214_p5 }
  0x72   : > { %p7221_p12 = por %p7220_p10, %p7219_p11 }
  0x73   : > { %p7217_p9 = pneg %p7216_p8 }
  0x75   : > { %p7222_p13 = pnand %p7221_p12, %p7217_p9 }
  0x77   : > { %7225 = shalt.err (!%p7222_p13)
}
  0x78   : > { %s7226_s17 = scalar_lea.vmem %s7554_s2, 2048  ;;  %s7331_s16 = smov [#allocation2]  }
  0x79   : > { %p7227_p0 = scmp.ne.s32.totalorder %s7554_s2, %s7226_s17  ;;  %s7231_s30 = sshll.u32 %s7331_s16, 4  ;;  %s7232_s30 = int_to_ptr.vmem [resolvable:$false] %s7231_s30 }
  0x7a   : > { %s7233_s1 = scalar_lea.vmem %s7232_s30, 4096  ;;  %p7234_p8 = scmp.lt.s32.totalorder %s7554_s2, %s7232_s30 }
  0x7b   : > { %p7229_p2 = pnand %p7227_p0, %p7215_p7  ;;  %p7235_p1 = scmp.lt.s32.totalorder %s7233_s1, %s7226_s17 }
  0x7d   : > { %p7230_p5 = pneg %p7229_p2  ;;  %p7236_p4 = por %p7235_p1, %p7234_p8 }
  0x7f   : > { %p7237_p6 = pnand %p7236_p4, %p7230_p5 }
  0x81   : > { %7240 = shalt.err (!%p7237_p6)
}
  0x82   : > { %s7332_s11 = smov 128   ;;  %s7333_s20 = smov 8  }
  0x83   : > { %6282 = dma.hbm_to_vmem [thread:$0]  (!%p7558_p3), %s7552_s29, 2048, %s7554_s2, %s7562_s9, %s7332_s11, %s7332_s11, %s7333_s20  }
  0x84   : > { %p10626_p7 = scmp.ne.s32.totalorder %s10610_s15, 0 }
  0x86   : > { %469 = sbr.rel (%p10626_p7) target bundleno = 3940 (0xf64), region = 72 }
  0x8b   : > { %s7586_s24 = sand.u32 1, %s7309_s26   ;;  %p10627_p6 = scmp.ne.s32.totalorder %s10622_s3, 0 }
  0x8c   : > { %s5427_s30 = sshll.u32 %s7586_s24, 7  ;;  %s472_s23 = scalar_lea.sflag [#allocation3], %s7586_s24 }
  0x8d   : > { %s7592_s21 = scalar_lea.vmem [#allocation2], %s5427_s30 }
  0x8e   : > { %7284 = dma.done.wait (%p10627_p6), %s472_s23, 2048  }
  0x8f   : > { %7286 = vsyncadd (%p10627_p6), %s472_s23, 4294965248  ;;  %p10628_p4 = scmp.eq.s32.totalorder %s7432_s14, 0 }
  0x91   : > { %7288 = dma.done.wait (%p10628_p4), [#allocation6], 32   ;;  %p10629_p1 = pmov %p10628_p4 }
  0x93   : > { %7290 = vsyncadd (%p10629_p1), [#allocation6], 4294967264  ;;  %p10630_p3 = pmov %p10629_p1 }
  0x94   : > { %p10631_p9 = pmov %p10629_p1 }
  0x95   : > { %7292 = dma.done.wait (%p10630_p3), [#allocation9], 4096  }
  0x96   : > { %7294 = vsyncadd (%p10631_p9), [#allocation9], 4294963200  ;;  %p10632_p11 = pmov %p10629_p1 }
  0x97   : > { %p10633_p10 = pmov %p10629_p1 }
  0x98   : > { %7296 = dma.done.wait (%p10632_p11), [#allocation12], 8192  }
  0x99   : > { %7298 = vsyncadd (%p10633_p10), [#allocation12], 4294959104  ;;  %v543_v0 = vld [vmem:[%s7592_s21] sm:$0xff]  ;;  %v545_v1 = vld [vmem:[%s7592_s21 + $0x10] sm:$0xff]  ;;  %vm1236_vm0 = vcmask 261120   ;;  %s7335_s9 = smov 96  }
  0x9a   : > { %561 = vadd.xlane.f32.xlu0 %v543_v0  ;;  %565 = vadd.xlane.f32.xlu1 %v545_v1  ;;  %v544_v2 = vld [vmem:[%s7592_s21 + $0x8] sm:$0xff]  ;;  %v546_v3 = vld [vmem:[%s7592_s21 + $0x18] sm:$0xff]  ;;  %v547_v4 = vld [vmem:[%s7592_s21 + $0x20] sm:$0xff]  ;;  %s7336_s15 = smov 64   ;;  %s7337_s3 = smov 32  }
  0x9b   : > { %v548_v5 = vld [vmem:[%s7592_s21 + $0x28] sm:$0xff]  ;;  %v549_v6 = vld [vmem:[%s7592_s21 + $0x30] sm:$0xff]  ;;  %v550_v7 = vld [vmem:[%s7592_s21 + $0x38] sm:$0xff]  ;;  %s5271_s16 = scalar_lea.sflag [#allocation4], %s7586_s24  ;;  %p10884_p13 = scmp.ne.s32.totalorder %s10623_s19, 0 }
  0x9c   : > { %v7619_v8 = vld [vmem:[%s7592_s21 + $0x40] sm:$0xff]  ;;  %v7622_v9 = vld [vmem:[%s7592_s21 + $0x48] sm:$0xff]  ;;  %v7625_v10 = vld [vmem:[%s7592_s21 + $0x50] sm:$0xff] }
  0x9d   : > { %v7628_v11 = vld [vmem:[%s7592_s21 + $0x58] sm:$0xff]  ;;  %v7633_v12 = vld [vmem:[%s7592_s21 + $0x60] sm:$0xff]  ;;  %v7636_v13 = vld [vmem:[%s7592_s21 + $0x68] sm:$0xff] }
  0x9e   : > { %563 = vadd.xlane.f32.xlu0 %v544_v2  ;;  %567 = vadd.xlane.f32.xlu1 %v546_v3  ;;  %v7641_v14 = vld [vmem:[%s7592_s21 + $0x70] sm:$0xff]  ;;  %v7644_v15 = vld [vmem:[%s7592_s21 + $0x78] sm:$0xff] }
  0x9f   : > { %v6473_v16 = vld [vmem:[#allocation8 + $0xac] ss:$12 sps:$4 sm:$0xff]   ;;  %v6475_v17 = vld [vmem:[#allocation8 + $0xa8] ss:$12 sps:$4 sm:$0xff]   ;;  %v6478_v54 = vld [vmem:[#allocation8 + $0xb0] ss:$12 sps:$4 sm:$0xff]  }
  0xa0   : > { %967 = vmatprep.subr.bf16.mxu0 %v6473_v16  ;;  %v6476_v53 = vld [vmem:[#allocation8 + $0x94] ss:$12 sps:$4 sm:$0xff]   ;;  %v6479_v55 = vld [vmem:[#allocation8 + $0x90] ss:$12 sps:$4 sm:$0xff]   ;;  %5864 = vmatprep.subr.bf16.mxu1 %v6478_v54 }
  0xa1   : > { %968 = vmatpush1.bf16.msra.mxu0 %v6475_v17  ;;  %5865 = vmatpush3.bf16.msra.mxu1 %v6478_v54  ;;  %v6484_v17 = vld [vmem:[#allocation8 + $0x64] ss:$12 sps:$4 sm:$0xff]  }
  0xa2   : > { %569 = vadd.xlane.f32.xlu0 %v547_v4  ;;  %571 = vadd.xlane.f32.xlu1 %v548_v5 }
  0xa3   : > { %969 = vmatprep.subr.bf16.mxu0 %v6476_v53 }
  0xa5   : > { %970 = vmatpush1.bf16.msra.mxu0 %v6479_v55 }
  0xa6   : > { %573 = vadd.xlane.f32.xlu0 %v549_v6  ;;  %575 = vadd.xlane.f32.xlu1 %v550_v7 }
  0xaa   : > { %577 = vadd.xlane.f32.xlu0 %v7619_v8  ;;  %579 = vadd.xlane.f32.xlu1 %v7622_v9 }
  0xae   : > { %581 = vadd.xlane.f32.xlu0 %v7625_v10  ;;  %583 = vadd.xlane.f32.xlu1 %v7628_v11 }
  0xb2   : > { %585 = vadd.xlane.f32.xlu0 %v7633_v12  ;;  %587 = vadd.xlane.f32.xlu1 %v7636_v13 }
  0xb6   : > { %589 = vadd.xlane.f32.xlu0 %v7641_v14  ;;  %591 = vadd.xlane.f32.xlu1 %v7644_v15 }
 0x123   : > { %v562_v18 = vpop.xlane.xlu0 %561  ;;  %v566_v19 = vpop.xlane.xlu1 %565 }
 0x124   : > { %v594_v20 = vmul.f32 0.0078125, %v562_v18  ;;  %v596_v21 = vmul.f32 0.0078125, %v566_v19  ;;  %v6486_v18 = vld [vmem:[#allocation8 + $0x80] ss:$12 sps:$4 sm:$0xff]  }
 0x126   : > { %v7650_v22 = vsub.f32 %v543_v0, %v594_v20  ;;  %v7652_v23 = vsub.f32 %v545_v1, %v596_v21  ;;  %v6480_v0 = vld [vmem:[#allocation8 + $0x7c] ss:$12 sps:$4 sm:$0xff]   ;;  %v6482_v1 = vld [vmem:[#allocation8 + $0x98] ss:$12 sps:$4 sm:$0xff]   ;;  %v6487_v20 = vld [vmem:[#allocation8 + $0x60] ss:$12 sps:$4 sm:$0xff]  }
 0x127   : > { %v564_v24 = vpop.xlane.xlu0 %563  ;;  %v568_v25 = vpop.xlane.xlu1 %567  ;;  %971 = vmatprep.subr.bf16.mxu0 %v6480_v0  ;;  %5866 = vmatprep.subr.bf16.mxu1 %v6482_v1 }
 0x128   : > { %v595_v26 = vmul.f32 0.0078125, %v564_v24  ;;  %v626_v27 = vmul.f32 %v7650_v22, %v7650_v22  ;;  %v597_v28 = vmul.f32 0.0078125, %v568_v25  ;;  %v628_v29 = vmul.f32 %v7652_v23, %v7652_v23  ;;  %5867 = vmatpush3.bf16.msra.mxu1 %v6482_v1 }
 0x129   : > { %5868 = vmatprep.subr.bf16.mxu1 %v6486_v18 }
 0x12a   : > { %642 = vadd.xlane.f32.xlu0 %v626_v27  ;;  %v7658_v30 = vsub.f32 %v544_v2, %v595_v26  ;;  %v7660_v31 = vsub.f32 %v546_v3, %v597_v28  ;;  %v6488_v28 = vld [vmem:[#allocation8 + $0x4c] ss:$12 sps:$4 sm:$0xff]  }
 0x12b   : > { %v570_v32 = vpop.xlane.xlu0 %569  ;;  %v572_v33 = vpop.xlane.xlu1 %571 }
 0x12c   : > { %v598_v34 = vmul.f32 0.0078125, %v570_v32  ;;  %v627_v35 = vmul.f32 %v7658_v30, %v7658_v30  ;;  %v599_v36 = vmul.f32 0.0078125, %v572_v33  ;;  %v629_v37 = vmul.f32 %v7660_v31, %v7660_v31  ;;  %5869 = vmatpush3.bf16.msra.mxu1 %v6486_v18  ;;  %v6491_v33 = vld [vmem:[#allocation8 + $0x48] ss:$12 sps:$4 sm:$0xff]  }
 0x12e   : > { %646 = vadd.xlane.f32.xlu0 %v628_v29  ;;  %644 = vadd.xlane.f32.xlu1 %v627_v35  ;;  %v7666_v38 = vsub.f32 %v547_v4, %v598_v34  ;;  %v7668_v39 = vsub.f32 %v548_v5, %v599_v36  ;;  %v6483_v5 = vld [vmem:[#allocation8 + $0x78] ss:$12 sps:$4 sm:$0xff]   ;;  %v6490_v29 = vld [vmem:[#allocation8 + $0x68] ss:$12 sps:$4 sm:$0xff]   ;;  %v6494_v36 = vld [vmem:[#allocation8 + $0x50] ss:$12 sps:$4 sm:$0xff]  }
 0x12f   : > { %v574_v40 = vpop.xlane.xlu0 %573  ;;  %v576_v41 = vpop.xlane.xlu1 %575  ;;  %972 = vmatpush1.bf16.msra.mxu0 %v6483_v5  ;;  %5870 = vmatprep.subr.bf16.mxu1 %v6490_v29  ;;  %v6492_v35 = vld [vmem:[#allocation8 + $0x34] ss:$12 sps:$4 sm:$0xff]  }
 0x130   : > { %v600_v42 = vmul.f32 0.0078125, %v574_v40  ;;  %v630_v43 = vmul.f32 %v7666_v38, %v7666_v38  ;;  %v601_v44 = vmul.f32 0.0078125, %v576_v41  ;;  %v631_v45 = vmul.f32 %v7668_v39, %v7668_v39  ;;  %973 = vmatprep.subr.bf16.mxu0 %v6484_v17  ;;  %5871 = vmatpush3.bf16.msra.mxu1 %v6490_v29  ;;  %v6498_v40 = vld [vmem:[#allocation8 + $0x38] ss:$12 sps:$4 sm:$0xff]  }
 0x131   : > { %5872 = vmatprep.subr.bf16.mxu1 %v6494_v36  ;;  %v6499_v41 = vld [vmem:[#allocation8 + $0x18] ss:$12 sps:$4 sm:$0xff]  }
 0x132   : > { %648 = vadd.xlane.f32.xlu1 %v629_v37  ;;  %650 = vadd.xlane.f32.xlu0 %v630_v43  ;;  %v7674_v46 = vsub.f32 %v549_v6, %v600_v42  ;;  %v7676_v47 = vsub.f32 %v550_v7, %v601_v44  ;;  %v6500_v42 = vld [vmem:[#allocation8 + $0x4] ss:$12 sps:$4 sm:$0xff]   ;;  %v6502_v43 = vld [vmem:[#allocation8 + $0x20] ss:$12 sps:$4 sm:$0xff]  }
 0x133   : > { %v578_v48 = vpop.xlane.xlu0 %577  ;;  %v580_v49 = vpop.xlane.xlu1 %579  ;;  %974 = vmatpush1.bf16.msra.mxu0 %v6487_v20  ;;  %v6503_v44 = vld [vmem:[#allocation8] ss:$12 sps:$4 sm:$0xff]  }
 0x134   : > { %v602_v50 = vmul.f32 0.0078125, %v578_v48  ;;  %v632_v51 = vmul.f32 %v7674_v46, %v7674_v46  ;;  %v603_v52 = vmul.f32 0.0078125, %v580_v49  ;;  %v633_v56 = vmul.f32 %v7676_v47, %v7676_v47  ;;  %975 = vmatprep.subr.bf16.mxu0 %v6488_v28  ;;  %5873 = vmatpush3.bf16.msra.mxu1 %v6494_v36 }
 0x135   : > { %5874 = vmatprep.subr.bf16.mxu1 %v6498_v40  ;;  %v10516_v48 = vmov 0  }
 0x136   : > { %652 = vadd.xlane.f32.xlu1 %v631_v45  ;;  %654 = vadd.xlane.f32.xlu0 %v632_v51  ;;  %v7683_v57 = vsub.f32 %v7619_v8, %v602_v50  ;;  %v7686_v58 = vsub.f32 %v7622_v9, %v603_v52  ;;  %v6504_v45 = vld [vmem:[#allocation8 + $0x8] ss:$12 sps:$4 sm:$0xff]  }
 0x137   : > { %v582_v59 = vpop.xlane.xlu0 %581  ;;  %v584_v60 = vpop.xlane.xlu1 %583  ;;  %976 = vmatpush1.bf16.msra.mxu0 %v6491_v33  ;;  %999 = vmatprep.mubr.bf16.mxu0 %v10516_v48 }
 0x138   : > { %v604_v61 = vmul.f32 0.0078125, %v582_v59  ;;  %v634_v62 = vmul.f32 %v7683_v57, %v7683_v57  ;;  %v605_v63 = vmul.f32 0.0078125, %v584_v60  ;;  %v635_v2 = vmul.f32 %v7686_v58, %v7686_v58  ;;  %977 = vmatprep.subr.bf16.mxu0 %v6492_v35  ;;  %5875 = vmatpush3.bf16.msra.mxu1 %v6498_v40 }
 0x139   : > { %5876 = vmatprep.subr.bf16.mxu1 %v6502_v43 }
 0x13a   : > { %656 = vadd.xlane.f32.xlu1 %v633_v56  ;;  %658 = vadd.xlane.f32.xlu0 %v634_v62  ;;  %v7693_v3 = vsub.f32 %v7625_v10, %v604_v61  ;;  %v7696_v4 = vsub.f32 %v7628_v11, %v605_v63 }
 0x13b   : > { %v586_v6 = vpop.xlane.xlu0 %585  ;;  %v588_v7 = vpop.xlane.xlu1 %587 }
 0x13c   : > { %v606_v8 = vmul.f32 0.0078125, %v586_v6  ;;  %v636_v9 = vmul.f32 %v7693_v3, %v7693_v3  ;;  %v607_v16 = vmul.f32 0.0078125, %v588_v7  ;;  %v637_v10 = vmul.f32 %v7696_v4, %v7696_v4  ;;  %5877 = vmatpush3.bf16.msra.mxu1 %v6502_v43 }
 0x13d   : > { %5878 = vmatprep.subr.bf16.mxu1 %v6504_v45 }
 0x13e   : > { %660 = vadd.xlane.f32.xlu1 %v635_v2  ;;  %662 = vadd.xlane.f32.xlu0 %v636_v9  ;;  %v7703_v11 = vsub.f32 %v7633_v12, %v606_v8  ;;  %v7706_v19 = vsub.f32 %v7636_v13, %v607_v16 }
 0x13f   : > { %v590_v21 = vpop.xlane.xlu0 %589  ;;  %v592_v24 = vpop.xlane.xlu1 %591 }
 0x140   : > { %v608_v25 = vmul.f32 0.0078125, %v590_v21  ;;  %v638_v26 = vmul.f32 %v7703_v11, %v7703_v11  ;;  %v609_v27 = vmul.f32 0.0078125, %v592_v24  ;;  %v639_v12 = vmul.f32 %v7706_v19, %v7706_v19  ;;  %5879 = vmatpush3.bf16.msra.mxu1 %v6504_v45 }
 0x142   : > { %664 = vadd.xlane.f32.xlu1 %v637_v10  ;;  %666 = vadd.xlane.f32.xlu0 %v638_v26  ;;  %v7713_v13 = vsub.f32 %v7641_v14, %v608_v25  ;;  %v7716_v32 = vsub.f32 %v7644_v15, %v609_v27  ;;  %v6495_v14 = vld [vmem:[#allocation8 + $0x30] ss:$12 sps:$4 sm:$0xff]  }
 0x143   : > { %978 = vmatpush1.bf16.msra.mxu0 %v6495_v14  ;;  %v6496_v15 = vld [vmem:[#allocation8 + $0x1c] ss:$12 sps:$4 sm:$0xff]  }
 0x144   : > { %v640_v34 = vmul.f32 %v7713_v13, %v7713_v13  ;;  %v641_v37 = vmul.f32 %v7716_v32, %v7716_v32  ;;  %979 = vmatprep.subr.bf16.mxu0 %v6496_v15  ;;  %v7723_v25 = vld [vmem:[#allocation5] ss:$0 sm:$0xff]  ;;  %v7727_v14 = vld [vmem:[#allocation7] ss:$0 sm:$0xff] }
 0x146   : > { %668 = vadd.xlane.f32.xlu1 %v639_v12  ;;  %670 = vadd.xlane.f32.xlu0 %v640_v34 }
 0x147   : > { %980 = vmatpush1.bf16.msra.mxu0 %v6499_v41 }
 0x148   : > { %981 = vmatprep.subr.bf16.mxu0 %v6500_v42 }
 0x14a   : > { %672 = vadd.xlane.f32.xlu1 %v641_v37 }
 0x14b   : > { %982 = vmatpush1.bf16.msra.mxu0 %v6503_v44 }
 0x1b3   : > { %v643_v49 = vpop.xlane.xlu0 %642 }
 0x1b4   : > { %v674_v50 = vmul.f32 0.0078125, %v643_v49 }
 0x1b6   : > { %v690_v51 = vadd.f32 1e-05, %v674_v50 }
 0x1b7   : > { %v645_v52 = vpop.xlane.xlu1 %644  ;;  %v647_v53 = vpop.xlane.xlu0 %646 }
 0x1b8   : > { %6593 = vrsqrt.f32 %v690_v51  ;;  %v675_v54 = vmul.f32 0.0078125, %v645_v52  ;;  %v676_v55 = vmul.f32 0.0078125, %v647_v53 }
 0x1ba   : > { %v691_v56 = vadd.f32 1e-05, %v675_v54  ;;  %v692_v59 = vadd.f32 1e-05, %v676_v55 }
 0x1bb   : > { %v649_v60 = vpop.xlane.xlu1 %648  ;;  %v651_v61 = vpop.xlane.xlu0 %650 }
 0x1bc   : > { %6595 = vrsqrt.f32 %v691_v56  ;;  %v677_v62 = vmul.f32 0.0078125, %v649_v60  ;;  %v678_v63 = vmul.f32 0.0078125, %v651_v61 }
 0x1bd   : > { %6597 = vrsqrt.f32 %v692_v59 }
 0x1be   : > { %v693_v0 = vadd.f32 1e-05, %v677_v62  ;;  %v694_v1 = vadd.f32 1e-05, %v678_v63 }
 0x1bf   : > { %v653_v2 = vpop.xlane.xlu1 %652  ;;  %v655_v5 = vpop.xlane.xlu0 %654 }
 0x1c0   : > { %6599 = vrsqrt.f32 %v693_v0  ;;  %v679_v6 = vmul.f32 0.0078125, %v653_v2  ;;  %v680_v7 = vmul.f32 0.0078125, %v655_v5 }
 0x1c1   : > { %6601 = vrsqrt.f32 %v694_v1 }
 0x1c2   : > { %v695_v8 = vadd.f32 1e-05, %v679_v6  ;;  %v696_v9 = vadd.f32 1e-05, %v680_v7 }
 0x1c3   : > { %v657_v16 = vpop.xlane.xlu1 %656  ;;  %v659_v17 = vpop.xlane.xlu0 %658 }
 0x1c4   : > { %6603 = vrsqrt.f32 %v695_v8  ;;  %v681_v18 = vmul.f32 0.0078125, %v657_v16  ;;  %v682_v10 = vmul.f32 0.0078125, %v659_v17 }
 0x1c5   : > { %v6594_v20 = vpop.eup %6593  ;;  %6605 = vrsqrt.f32 %v696_v9 }
 0x1c6   : > { %v697_v21 = vadd.f32 1e-05, %v681_v18  ;;  %v698_v24 = vadd.f32 1e-05, %v682_v10  ;;  %v722_v26 = vmul.f32 %v6594_v20, %v7650_v22 }
 0x1c7   : > { %v661_v27 = vpop.xlane.xlu1 %660  ;;  %v663_v28 = vpop.xlane.xlu0 %662 }
 0x1c8   : > { %6607 = vrsqrt.f32 %v697_v21  ;;  %v683_v29 = vmul.f32 0.0078125, %v661_v27  ;;  %v684_v12 = vmul.f32 0.0078125, %v663_v28  ;;  %v744_v34 = vmul.f32 %v7723_v25, %v722_v26 }
 0x1c9   : > { %v6596_v33 = vpop.eup %6595  ;;  %6609 = vrsqrt.f32 %v698_v24 }
 0x1ca   : > { %v6598_v35 = vpop.eup %6597  ;;  %v699_v36 = vadd.f32 1e-05, %v683_v29  ;;  %v700_v37 = vadd.f32 1e-05, %v684_v12  ;;  %v723_v15 = vmul.f32 %v6596_v33, %v7658_v30  ;;  %v766_v49 = vadd.f32 %v7727_v14, %v744_v34 }
 0x1cb   : > { %v665_v40 = vpop.xlane.xlu1 %664  ;;  %v667_v41 = vpop.xlane.xlu0 %666  ;;  %v724_v22 = vmul.f32 %v6598_v35, %v7652_v23 }
 0x1cc   : > { %6611 = vrsqrt.f32 %v699_v36  ;;  %v685_v42 = vmul.f32 0.0078125, %v665_v40  ;;  %v686_v43 = vmul.f32 0.0078125, %v667_v41  ;;  %v745_v44 = vmul.f32 %v7723_v25, %v723_v15 }
 0x1cd   : > { %v6600_v45 = vpop.eup %6599  ;;  %6613 = vrsqrt.f32 %v700_v37  ;;  %v746_v23 = vmul.f32 %v7723_v25, %v724_v22 }
 0x1ce   : > { %v6602_v50 = vpop.eup %6601  ;;  %v701_v51 = vadd.f32 1e-05, %v685_v42  ;;  %v702_v52 = vadd.f32 1e-05, %v686_v43  ;;  %v767_v53 = vadd.f32 %v7727_v14, %v745_v44  ;;  %v725_v30 = vmul.f32 %v6600_v45, %v7660_v31 }
 0x1cf   : > { %v669_v54 = vpop.xlane.xlu1 %668  ;;  %v671_v55 = vpop.xlane.xlu0 %670  ;;  %v726_v56 = vmul.f32 %v6602_v50, %v7666_v38  ;;  %v768_v38 = vadd.f32 %v7727_v14, %v746_v23 }
 0x1d0   : > { %6615 = vrsqrt.f32 %v701_v51  ;;  %v687_v59 = vmul.f32 0.0078125, %v669_v54  ;;  %v688_v60 = vmul.f32 0.0078125, %v671_v55  ;;  %v782_v61 = vpack.c.bf16 %v767_v53, %v766_v49 }
 0x1d1   : > { %v6604_v62 = vpop.eup %6603  ;;  %6617 = vrsqrt.f32 %v702_v52  ;;  %v747_v63 = vmul.f32 %v7723_v25, %v725_v30  ;;  %v748_v5 = vmul.f32 %v7723_v25, %v726_v56 }
 0x1d2   : > { %v6606_v0 = vpop.eup %6605  ;;  %v703_v1 = vadd.f32 1e-05, %v687_v59  ;;  %v704_v2 = vadd.f32 1e-05, %v688_v60  ;;  %1000 = vmatmul.mubr.bf16.vlgmr.msra.gmra.mxu0 %v782_v61  ;;  %5880 = vmatprep.mubr.bf16.mxu1 %v782_v61  ;;  %v727_v31 = vmul.f32 %v6604_v62, %v7668_v39 }
 0x1d3   : > { %v673_v6 = vpop.xlane.xlu1 %672  ;;  %v769_v7 = vadd.f32 %v7727_v14, %v747_v63  ;;  %1009 = vmatprep.mubr.bf16.mxu0 %v10516_v48  ;;  %v728_v8 = vmul.f32 %v6606_v0, %v7674_v46  ;;  %v770_v21 = vadd.f32 %v7727_v14, %v748_v5  ;;  %v822_v0 = vld [vmem:[%s10498_s4] sm:$0x7] }
 0x1d4   : > { %6619 = vrsqrt.f32 %v703_v1  ;;  %v689_v9 = vmul.f32 0.0078125, %v673_v6  ;;  %v749_v16 = vmul.f32 %v7723_v25, %v727_v31 }
 0x1d5   : > { %v6608_v17 = vpop.eup %6607  ;;  %6621 = vrsqrt.f32 %v704_v2  ;;  %v783_v18 = vpack.c.bf16 %v769_v7, %v768_v38  ;;  %v750_v39 = vmul.f32 %v7723_v25, %v728_v8 }
 0x1d6   : > { %v6610_v10 = vpop.eup %6609  ;;  %v705_v20 = vadd.f32 1e-05, %v689_v9  ;;  %v771_v24 = vadd.f32 %v7727_v14, %v749_v16  ;;  %v729_v26 = vmul.f32 %v6608_v17, %v7676_v47 }
 0x1d7   : > { %5881 = vmatmul.mubr.bf16.vlgmr.msra.gmra.mxu1 %v783_v18  ;;  %v730_v46 = vmul.f32 %v6610_v10, %v7683_v57  ;;  %v772_v12 = vadd.f32 %v7727_v14, %v750_v39 }
 0x1d8   : > { %6623 = vrsqrt.f32 %v705_v20  ;;  %v784_v27 = vpack.c.bf16 %v771_v24, %v770_v21  ;;  %v751_v28 = vmul.f32 %v7723_v25, %v729_v26 }
 0x1d9   : > { %v6612_v29 = vpop.eup %6611  ;;  %v752_v36 = vmul.f32 %v7723_v25, %v730_v46 }
 0x1da   : > { %v6614_v33 = vpop.eup %6613  ;;  %1010 = vmatmul.mubr.bf16.gmra.mxu0 %v783_v18  ;;  %5884 = vmatprep.mubr.bf16.mxu1 %v784_v27  ;;  %v773_v34 = vadd.f32 %v7727_v14, %v751_v28  ;;  %v731_v35 = vmul.f32 %v6612_v29, %v7686_v58 }
 0x1db   : > { %1019 = vmatprep.mubr.bf16.mxu0 %v10516_v48  ;;  %v732_v47 = vmul.f32 %v6614_v33, %v7693_v3  ;;  %v774_v22 = vadd.f32 %v7727_v14, %v752_v36 }
 0x1dc   : > { %v785_v57 = vpack.c.bf16 %v773_v34, %v772_v12  ;;  %v753_v37 = vmul.f32 %v7723_v25, %v731_v35 }
 0x1dd   : > { %v6616_v15 = vpop.eup %6615  ;;  %v754_v40 = vmul.f32 %v7723_v25, %v732_v47 }
 0x1de   : > { %v6618_v41 = vpop.eup %6617  ;;  %v775_v42 = vadd.f32 %v7727_v14, %v753_v37  ;;  %v733_v43 = vmul.f32 %v6616_v15, %v7696_v4 }
 0x1df   : > { %5885 = vmatmul.mubr.bf16.gmra.mxu1 %v785_v57  ;;  %v734_v58 = vmul.f32 %v6618_v41, %v7703_v11  ;;  %v776_v49 = vadd.f32 %v7727_v14, %v754_v40 }
 0x1e0   : > { %v786_v44 = vpack.c.bf16 %v775_v42, %v774_v22  ;;  %v755_v45 = vmul.f32 %v7723_v25, %v733_v43 }
 0x1e1   : > { %v6620_v3 = vpop.eup %6619  ;;  %v756_v53 = vmul.f32 %v7723_v25, %v734_v58 }
 0x1e2   : > { %v6622_v50 = vpop.eup %6621  ;;  %1020 = vmatmul.mubr.bf16.gmra.mxu0 %v784_v27  ;;  %5888 = vmatprep.mubr.bf16.mxu1 %v786_v44  ;;  %v777_v51 = vadd.f32 %v7727_v14, %v755_v45  ;;  %v735_v52 = vmul.f32 %v6620_v3, %v7706_v19 }
 0x1e3   : > { %1029 = vmatprep.mubr.bf16.mxu0 %v10516_v48  ;;  %v736_v4 = vmul.f32 %v6622_v50, %v7713_v13  ;;  %v778_v55 = vadd.f32 %v7727_v14, %v756_v53 }
 0x1e4   : > { %v787_v11 = vpack.c.bf16 %v777_v51, %v776_v49  ;;  %v757_v30 = vmul.f32 %v7723_v25, %v735_v52 }
 0x1e5   : > { %v6624_v54 = vpop.eup %6623  ;;  %v758_v59 = vmul.f32 %v7723_v25, %v736_v4 }
 0x1e6   : > { %v779_v23 = vadd.f32 %v7727_v14, %v757_v30  ;;  %v737_v56 = vmul.f32 %v6624_v54, %v7716_v32  ;;  %v824_v32 = vlaneseq }
 0x1e7   : > { %5889 = vmatmul.mubr.bf16.gmra.mxu1 %v787_v11  ;;  %v780_v13 = vadd.f32 %v7727_v14, %v758_v59 }
 0x1e8   : > { %v788_v19 = vpack.c.bf16 %v779_v23, %v778_v55  ;;  %v759_v60 = vmul.f32 %v7723_v25, %v737_v56  ;;  %v7783_v25 = vshrl.u32 %v824_v32, 7 }
 0x1ea   : > { %1030 = vmatmul.mubr.bf16.gmra.mxu0 %v785_v57  ;;  %5892 = vmatprep.mubr.bf16.mxu1 %v788_v19  ;;  %v781_v61 = vadd.f32 %v7727_v14, %v759_v60  ;;  %10634 = vst [vmem:[#allocation21_spill] sm:$0xff] %v7783_v25  ;;  %v10512_v14 = vsub.s32 1, %v7783_v25  ;;  %v10515_v63 = vsub.s32 0, %v7783_v25  ;;  %v10514_v50 = vsub.s32 2, %v7783_v25 }
 0x1eb   : > { %1039 = vmatprep.mubr.bf16.mxu0 %v10516_v48 }
 0x1ec   : > { %v789_v62 = vpack.c.bf16 %v781_v61, %v780_v13  ;;  %v7792_v1 = vrot.slane %v822_v0, %v10512_v14  ;;  %v7796_v31 = vrot.slane %v822_v0, %v10515_v63  ;;  %v7849_v54 = vrot.slane %v822_v0, %v10514_v50 }
 0x1ef   : > { %5893 = vmatmul.mubr.bf16.gmra.mxu1 %v789_v62 }
 0x1f2   : > { %1040 = vmatmul.mubr.bf16.gmra.mxu0 %v786_v44 }
 0x1f3   : > { %1049 = vmatprep.mubr.bf16.mxu0 %v10516_v48 }
 0x1fa   : > { %1050 = vmatmul.mubr.bf16.gmra.mxu0 %v787_v11 }
 0x1fb   : > { %1059 = vmatprep.mubr.bf16.mxu0 %v10516_v48 }
 0x202   : > { %1060 = vmatmul.mubr.bf16.gmra.mxu0 %v788_v19 }
 0x203   : > { %1069 = vmatprep.mubr.bf16.mxu0 %v10516_v48 }
 0x20a   : > { %1070 = vmatmul.mubr.bf16.gmra.mxu0 %v789_v62 }
 0x292   : > { %v1001_v2 = vpop.f32.mrf.mxu0 }
 0x293   : > { %v1002_v7 = vadd.f32 %v1001_v2, %v7796_v31 }
 0x294   : > { %v1003_v5 = vpop.f32.mrf.mxu0 }
 0x295   : > { %v1004_v6 = vadd.f32 %v1003_v5, %v7792_v1 }
 0x296   : > { %v1005_v38 = vpop.f32.mrf.mxu0 }
 0x297   : > { %v1006_v8 = vadd.f32 %v1005_v38, %v7796_v31  ;;  %v7801_v9 = vpop.f32.mrf.mxu1 }
 0x298   : > { %v1007_v16 = vpop.f32.mrf.mxu0 }
 0x299   : > { %v7803_v17 = vpack.c.bf16 %v1006_v8, %v1002_v7  ;;  %v1008_v18 = vadd.f32 %v1007_v16, %v7792_v1  ;;  %v7806_v39 = vpop.f32.mrf.mxu1 }
 0x29a   : > { %v1011_v10 = vpop.f32.mrf.mxu0 }
 0x29b   : > { %v7808_v20 = vpack.c.bf16 %v1008_v18, %v1004_v6  ;;  %v1012_v21 = vadd.f32 %v1011_v10, %v7796_v31  ;;  %v7811_v24 = vpop.f32.mrf.mxu1  ;;  %5912 = vmatprep.mubr.msk.bf16.mxu0 %vm1236_vm0, %v7803_v17 }
 0x29c   : > { %v7815_v26 = vpop.f32.mrf.mxu0 }
 0x29d   : > { %v7817_v46 = vpop.f32.mrf.mxu1 }
 0x29e   : > { %v1015_v27 = vpop.f32.mrf.mxu0 }
 0x29f   : > { %v1016_v28 = vadd.f32 %v1015_v27, %v7796_v31  ;;  %v7820_v29 = vpop.f32.mrf.mxu1 }
 0x2a0   : > { %v7822_v12 = vpop.f32.mrf.mxu0 }
 0x2a1   : > { %v7824_v33 = vpack.c.bf16 %v1016_v28, %v1012_v21  ;;  %v7826_v34 = vpop.f32.mrf.mxu1 }
 0x2a2   : > { %v1021_v35 = vpop.f32.mrf.mxu0 }
 0x2a3   : > { %10635 = vst [vmem:[#allocation22_spill] sm:$0xff] %v7824_v33  ;;  %v1022_v36 = vadd.f32 %v1021_v35, %v7796_v31  ;;  %v5887_v47 = vpop.f32.mrf.mxu1 }
 0x2a4   : > { %v7829_v57 = vpop.f32.mrf.mxu0 }
 0x2a5   : > { %v7831_v37 = vpop.f32.mrf.mxu1 }
 0x2a6   : > { %v1025_v15 = vpop.f32.mrf.mxu0 }
 0x2a7   : > { %v1026_v40 = vadd.f32 %v1025_v15, %v7796_v31  ;;  %v5890_v41 = vpop.f32.mrf.mxu1 }
 0x2a8   : > { %v7834_v22 = vpop.f32.mrf.mxu0  ;;  %v1155_v16 = vadd.f32 %v5890_v41, %v7849_v54 }
 0x2a9   : > { %v7836_v42 = vpack.c.bf16 %v1026_v40, %v1022_v36  ;;  %v1146_v43 = vpop.f32.mrf.mxu1  ;;  %v1142_v40 = vadd.f32 %v5887_v47, %v7849_v54 }
 0x2aa   : > { %v1031_v58 = vpop.f32.mrf.mxu0  ;;  %v1147_v35 = vadd.f32 %v1146_v43, %v7849_v54  ;;  %v1139_v43 = vadd.f32 %v7820_v29, %v7849_v54  ;;  %v1131_v29 = vadd.f32 %v7826_v34, %v7849_v54  ;;  %v1123_v34 = vadd.f32 %v7801_v9, %v7849_v54 }
 0x2ab   : > { %10636 = vst [vmem:[#allocation23_spill] sm:$0xff] %v7836_v42  ;;  %v1032_v44 = vadd.f32 %v1031_v58, %v7796_v31  ;;  %v5891_v45 = vpop.f32.mrf.mxu1  ;;  %v1115_v9 = vadd.f32 %v7806_v39, %v7849_v54 }
 0x2ac   : > { %v7839_v3 = vpop.f32.mrf.mxu0  ;;  %v1158_v6 = vadd.f32 %v5891_v45, %v7849_v54 }
 0x2ad   : > { %v1149_v49 = vpop.f32.mrf.mxu1 }
 0x2ae   : > { %v1035_v51 = vpop.f32.mrf.mxu0  ;;  %v7873_v21 = vpack.c.bf16 %v1158_v6, %v1155_v16  ;;  %v1150_v27 = vadd.f32 %v1149_v49, %v7849_v54  ;;  %v1118_v16 = vadd.f32 %v7817_v46, %v7849_v54 }
 0x2af   : > { %v1036_v52 = vadd.f32 %v1035_v51, %v7796_v31  ;;  %v5894_v53 = vpop.f32.mrf.mxu1 }
 0x2b0   : > { %v7843_v4 = vpop.f32.mrf.mxu0  ;;  %v1171_v59 = vadd.f32 %v5894_v53, %v7849_v54  ;;  %10639 = vst [vmem:[#allocation26_spill] sm:$0xff] %v7873_v21  ;;  %v7881_v41 = vpack.c.bf16 %v1150_v27, %v1147_v35  ;;  %v7894_v53 = vpack.c.bf16 %v1142_v40, %v1139_v43 }
 0x2b1   : > { %v7845_v11 = vpack.c.bf16 %v1036_v52, %v1032_v44  ;;  %v1162_v30 = vpop.f32.mrf.mxu1  ;;  %v1038_v43 = vadd.f32 %v7843_v4, %v7792_v1  ;;  %v1018_v4 = vadd.f32 %v7822_v12, %v7792_v1  ;;  %v1262_v12 = vsel %vm1236_vm0, %v7808_v20, 0 }
 0x2b2   : > { %v1041_v55 = vpop.f32.mrf.mxu0  ;;  %v1163_v61 = vadd.f32 %v1162_v30, %v7849_v54  ;;  %10640 = vst [vmem:[#allocation27_spill] sm:$0xff] %v7881_v41  ;;  %10641 = vst [vmem:[#allocation28_spill] sm:$0xff] %v7894_v53  ;;  %v1134_v30 = vadd.f32 %v7831_v37, %v7849_v54 }
 0x2b3   : > { %v1042_v23 = vadd.f32 %v1041_v55, %v7796_v31  ;;  %v5895_v56 = vpop.f32.mrf.mxu1 }
 0x2b4   : > { %v1174_v19 = vadd.f32 %v5895_v56, %v7849_v54  ;;  %v7854_v60 = vpop.f32.mrf.mxu0 }
 0x2b5   : > { %v1165_v13 = vpop.f32.mrf.mxu1 }
 0x2b6   : > { %v7857_v62 = vpack.c.bf16 %v1174_v19, %v1171_v59  ;;  %v1166_v2 = vadd.f32 %v1165_v13, %v7849_v54  ;;  %v1045_v5 = vpop.f32.mrf.mxu0  ;;  %v1126_v59 = vadd.f32 %v7811_v24, %v7849_v54  ;;  %v7907_v19 = vpack.c.bf16 %v1134_v30, %v1131_v29 }
 0x2b7   : > { %v1046_v0 = vadd.f32 %v1045_v5, %v7796_v31  ;;  %v1024_v30 = vadd.f32 %v7829_v57, %v7792_v1  ;;  %v1014_v29 = vadd.f32 %v7815_v26, %v7792_v1 }
 0x2b8   : > { %10637 = vst [vmem:[#allocation24_spill] sm:$0xff] %v7857_v62  ;;  %v7862_v38 = vpack.c.bf16 %v1166_v2, %v1163_v61  ;;  %5928 = vmatprep.subr.bf16.mxu1 %v7857_v62  ;;  %v7865_v7 = vpop.f32.mrf.mxu0  ;;  %v7920_v6 = vpack.c.bf16 %v1126_v59, %v1123_v34  ;;  %v8024_v59 = vand.u32 127, %v824_v32  ;;  %v8042_v32 = vadd.s32 8, %v7783_v25 }
 0x2b9   : > { %v7867_v8 = vpack.c.bf16 %v1046_v0, %v1042_v23  ;;  %5929 = vmatpush3.bf16.msra.mxu1 %v7857_v62  ;;  %v1048_v54 = vadd.f32 %v7865_v7, %v7792_v1  ;;  %v1028_v7 = vadd.f32 %v7834_v22, %v7792_v1 }
 0x2ba   : > { %5930 = vmatprep.subr.bf16.mxu1 %v7862_v38  ;;  %v1051_v18 = vpop.f32.mrf.mxu0  ;;  %10644 = vst [vmem:[#allocation31_spill] sm:$0xff] %v7920_v6  ;;  %vm1220_vm2 = vcmp.le.s32.totalorder %v8024_v59, %v7783_v25  ;;  %vm1221_vm4 = vcmp.le.s32.totalorder %v8024_v59, %v8042_v32 }
 0x2bb   : > { %10638 = vst [vmem:[#allocation25_spill] sm:$0xff] %v7867_v8  ;;  %v1052_v10 = vadd.f32 %v1051_v18, %v7796_v31 }
 0x2bc   : > { %v1053_v28 = vpop.f32.mrf.mxu0 }
 0x2bd   : > { %5931 = vmatpush3.bf16.msra.mxu1 %v7862_v38  ;;  %v1054_v44 = vadd.f32 %v1053_v28, %v7792_v1  ;;  %v7931_v28 = vpack.c.bf16 %v1118_v16, %v1115_v9  ;;  %v8059_v9 = vadd.s32 48, %v7783_v25 }
 0x2be   : > { %5932 = vmatprep.subr.bf16.mxu1 %v7873_v21  ;;  %v1055_v36 = vpop.f32.mrf.mxu0 }
 0x2bf   : > { %v1056_v15 = vadd.f32 %v1055_v36, %v7796_v31  ;;  %10645 = vst [vmem:[#allocation32_spill] sm:$0xff] %v7931_v28  ;;  %vm1226_vm5 = vcmp.le.s32.totalorder %v8024_v59, %v8059_v9 }
 0x2c0   : > { %v1057_v58 = vpop.f32.mrf.mxu0 }
 0x2c1   : > { %v7884_v45 = vpack.c.bf16 %v1056_v15, %v1052_v10  ;;  %v1058_v49 = vadd.f32 %v1057_v58, %v7792_v1  ;;  %5933 = vmatpush3.bf16.msra.mxu1 %v7873_v21  ;;  %v1044_v58 = vadd.f32 %v7854_v60, %v7792_v1 }
 0x2c2   : > { %5934 = vmatprep.subr.bf16.mxu1 %v7881_v41  ;;  %v1061_v51 = vpop.f32.mrf.mxu0 }
 0x2c3   : > { %v7891_v52 = vpack.c.bf16 %v1058_v49, %v1054_v44  ;;  %v1062_v47 = vadd.f32 %v1061_v51, %v7796_v31  ;;  %v7958_v44 = vpack.c.bf16 %v1048_v54, %v1044_v58  ;;  %v1034_v51 = vadd.f32 %v7839_v3, %v7792_v1 }
 0x2c4   : > { %v1063_v55 = vpop.f32.mrf.mxu0  ;;  %v8081_v54 = vadd.s32 56, %v7783_v25 }
 0x2c5   : > { %5935 = vmatpush3.bf16.msra.mxu1 %v7881_v41  ;;  %1689 = vrot.lane.b32.xlu0 %v7891_v52, %s7335_s9  ;;  %v1064_v13 = vadd.f32 %v1063_v55, %v7792_v1  ;;  %v1277_v49 = vsel %vm1236_vm0, %v7891_v52, 0  ;;  %v1274_v60 = vsel %vm1236_vm0, %v7958_v44, 0  ;;  %v7978_v55 = vpack.c.bf16 %v1028_v7, %v1024_v30 }
 0x2c6   : > { %5936 = vmatprep.subr.bf16.mxu1 %v7894_v53  ;;  %v1065_v23 = vpop.f32.mrf.mxu0  ;;  %vm1227_vm7 = vcmp.le.s32.totalorder %v8024_v59, %v8081_v54  ;;  %v8103_v30 = vadd.s32 72, %v7783_v25 }
 0x2c7   : > { %v1066_v56 = vadd.f32 %v1065_v23, %v7796_v31  ;;  %v7988_v23 = vpack.c.bf16 %v1018_v4, %v1014_v29  ;;  %v1268_v57 = vsel %vm1236_vm0, %v7978_v55, 0  ;;  %v8114_v29 = vadd.s32 112, %v7783_v25 }
 0x2c8   : > { %v1067_v37 = vpop.f32.mrf.mxu0  ;;  %vm1229_vm9 = vcmp.le.s32.totalorder %v8024_v59, %v8103_v30 }
 0x2c9   : > { %v7910_v61 = vpack.c.bf16 %v1066_v56, %v1062_v47  ;;  %v1068_v2 = vadd.f32 %v1067_v37, %v7792_v1  ;;  %5937 = vmatpush3.bf16.msra.mxu1 %v7894_v53  ;;  %v7968_v47 = vpack.c.bf16 %v1038_v43, %v1034_v51  ;;  %v1265_v22 = vsel %vm1236_vm0, %v7988_v23, 0 }
 0x2ca   : > { %5938 = vmatprep.subr.bf16.mxu1 %v7907_v19  ;;  %v1071_v5 = vpop.f32.mrf.mxu0  ;;  %v8021_v56 = vadd.s32 16, %v7783_v25  ;;  %v8029_v37 = vadd.s32 24, %v7783_v25  ;;  %v8092_v51 = vadd.s32 40, %v7783_v25  ;;  %vm1234_vm10 = vcmp.le.s32.totalorder %v8024_v59, %v8114_v29 }
 0x2cb   : > { %10642 = vst [vmem:[#allocation29_spill] sm:$0xff] %v7910_v61  ;;  %v7917_v0 = vpack.c.bf16 %v1068_v2, %v1064_v13  ;;  %v1072_v24 = vadd.f32 %v1071_v5, %v7796_v31  ;;  %v1271_v3 = vsel %vm1236_vm0, %v7968_v47, 0 }
 0x2cc   : > { %v1073_v18 = vpop.f32.mrf.mxu0  ;;  %vm1222_vm1 = vcmp.le.s32.totalorder %v8024_v59, %v8021_v56  ;;  %vm1223_vm3 = vcmp.le.s32.totalorder %v8024_v59, %v8029_v37  ;;  %vm1225_vm8 = vcmp.le.s32.totalorder %v8024_v59, %v8092_v51 }
 0x2cd   : > { %10643 = vst [vmem:[#allocation30_spill] sm:$0xff] %v7917_v0  ;;  %5939 = vmatpush3.bf16.msra.mxu1 %v7907_v19  ;;  %1691 = vrot.lane.b32.xlu1 %v7917_v0, %s7335_s9  ;;  %v1074_v36 = vadd.f32 %v1073_v18, %v7792_v1  ;;  %v1280_v39 = vsel %vm1236_vm0, %v7917_v0, 0 }
 0x2ce   : > { %5940 = vmatprep.subr.bf16.mxu1 %v7920_v6  ;;  %v1075_v10 = vpop.f32.mrf.mxu0 }
 0x2cf   : > { %v1076_v27 = vadd.f32 %v1075_v10, %v7796_v31 }
 0x2d0   : > { %v1077_v35 = vpop.f32.mrf.mxu0 }
 0x2d1   : > { %v7934_v46 = vpack.c.bf16 %v1076_v27, %v1072_v24  ;;  %v1078_v15 = vadd.f32 %v1077_v35, %v7792_v1  ;;  %5941 = vmatpush3.bf16.msra.mxu1 %v7920_v6 }
 0x2d2   : > { %5942 = vmatprep.subr.bf16.mxu1 %v7931_v28 }
 0x2d3   : > { %v7939_v40 = vpack.c.bf16 %v1078_v15, %v1074_v36  ;;  %v8070_v36 = vadd.s32 32, %v7783_v25 }
 0x2d5   : > { %10646 = vst [vmem:[#allocation33_spill] sm:$0xff] %v7939_v40  ;;  %5943 = vmatpush3.bf16.msra.mxu1 %v7931_v28  ;;  %1693 = vrot.lane.b32.xlu0 %v7939_v40, %s7335_s9  ;;  %v1283_v31 = vsel %vm1236_vm0, %v7939_v40, 0  ;;  %vm1224_vm6 = vcmp.le.s32.totalorder %v8024_v59, %v8070_v36 }
 0x2d6   : > { %6200 = vmatprep.subr.msk.bf16.mxu0 %vm1236_vm0, %v7939_v40 }
 0x2d7   : > { %5897 = vmatpush3.bf16.xpose.msra.mxu0 %v1283_v31 }
 0x2d8   : > { %6201 = vmatprep.subr.msk.bf16.mxu0 %vm1236_vm0, %v7917_v0 }
 0x2df   : > { %5899 = vmatpush3.bf16.xpose.msra.mxu0 %v1280_v39 }
 0x2e0   : > { %6202 = vmatprep.subr.msk.bf16.mxu0 %vm1236_vm0, %v7891_v52 }
 0x2e7   : > { %5901 = vmatpush3.bf16.xpose.msra.mxu0 %v1277_v49 }
 0x2e8   : > { %6203 = vmatprep.subr.msk.bf16.mxu0 %vm1236_vm0, %v7958_v44 }
 0x2ef   : > { %5903 = vmatpush3.bf16.xpose.msra.mxu0 %v1274_v60 }
 0x2f0   : > { %6204 = vmatprep.subr.msk.bf16.mxu0 %vm1236_vm0, %v7968_v47 }
 0x2f7   : > { %5905 = vmatpush3.bf16.xpose.msra.mxu0 %v1271_v3 }
 0x2f8   : > { %6205 = vmatprep.subr.msk.bf16.mxu0 %vm1236_vm0, %v7978_v55 }
 0x2ff   : > { %5907 = vmatpush3.bf16.xpose.msra.mxu0 %v1268_v57 }
 0x300   : > { %6206 = vmatprep.subr.msk.bf16.mxu0 %vm1236_vm0, %v7988_v23 }
 0x307   : > { %5909 = vmatpush3.bf16.xpose.msra.mxu0 %v1265_v22 }
 0x308   : > { %6207 = vmatprep.subr.msk.bf16.mxu0 %vm1236_vm0, %v7808_v20 }
 0x30f   : > { %5911 = vmatpush3.bf16.xpose.msra.mxu0 %v1262_v12  ;;  %v8127_v12 = vadd.s32 96, %v7783_v25 }
 0x311   : > { %vm1232_vm11 = vcmp.le.s32.totalorder %v8024_v59, %v8127_v12 }
 0x316   : > { %5913 = vmatmul.mubr.msk.bf16.vlgmr.msra.gmra.mxu0 %vm1236_vm0, %v7824_v33 }
 0x317   : > { %5916 = vmatprep.mubr.msk.bf16.mxu0 %vm1236_vm0, %v7836_v42 }
 0x31e   : > { %5917 = vmatmul.mubr.msk.bf16.gmra.mxu0 %vm1236_vm0, %v7845_v11 }
 0x31f   : > { %5920 = vmatprep.mubr.msk.bf16.mxu0 %vm1236_vm0, %v7867_v8 }
 0x326   : > { %5921 = vmatmul.mubr.msk.bf16.gmra.mxu0 %vm1236_vm0, %v7884_v45 }
 0x327   : > { %5924 = vmatprep.mubr.msk.bf16.mxu0 %vm1236_vm0, %v7910_v61 }
 0x32e   : > { %5925 = vmatmul.mubr.msk.bf16.gmra.mxu0 %vm1236_vm0, %v7934_v46 }
 0x337   : > { %v8014_v1 = vpop.permute.xlu0 %1689 }
 0x347   : > { %v8016_v26 = vpop.permute.xlu0 %1693 }
 0x348   : > { %6208 = vmatprep.subr.msk.bf16.mxu1 %vm1236_vm0, %v8016_v26 }
 0x3d6   : > { %v5914_v13 = vpop.f32.mrf.mxu0 }
 0x3d7   : > { %v8034_v2 = vsel %vm1222_vm1, %v5914_v13, -inf }
 0x3d8   : > { %1402 = vmax.xlane.f32.xlu0 %v8034_v2  ;;  %v1319_v34 = vpop.f32.mrf.mxu0 }
 0x3d9   : > { %v8047_v24 = vsel %vm1220_vm2, %v1319_v34, -inf }
 0x3da   : > { %v5915_v5 = vpop.f32.mrf.mxu0 }
 0x3db   : > { %v8052_v16 = vsel %vm1223_vm3, %v5915_v5, -inf  ;;  %v8138_v5 = vadd.s32 120, %v7783_v25 }
 0x3dc   : > { %1398 = vmax.xlane.f32.xlu0 %v8047_v24  ;;  %1404 = vmax.xlane.f32.xlu1 %v8052_v16  ;;  %v1322_v18 = vpop.f32.mrf.mxu0 }
 0x3dd   : > { %v8064_v27 = vsel %vm1221_vm4, %v1322_v18, -inf  ;;  %vm10513_vm12 = vcmp.le.s32.totalorder %v8024_v59, %v8138_v5 }
 0x3de   : > { %v5918_v10 = vpop.f32.mrf.mxu0 }
 0x3df   : > { %v8075_v31 = vsel %vm1226_vm5, %v5918_v10, -inf }
 0x3e0   : > { %1400 = vmax.xlane.f32.xlu1 %v8064_v27  ;;  %v1335_v35 = vpop.f32.mrf.mxu0 }
 0x3e1   : > { %v8086_v49 = vsel %vm1224_vm6, %v1335_v35, -inf  ;;  %v8149_v35 = vadd.s32 104, %v7783_v25 }
 0x3e2   : > { %v5919_v15 = vpop.f32.mrf.mxu0 }
 0x3e3   : > { %v8097_v60 = vsel %vm1227_vm7, %v5919_v15, -inf  ;;  %vm10542_vm13 = vcmp.le.s32.totalorder %v8024_v59, %v8149_v35 }
 0x3e4   : > { %1410 = vmax.xlane.f32.xlu1 %v8075_v31  ;;  %v1338_v39 = vpop.f32.mrf.mxu0 }
 0x3e5   : > { %v8108_v3 = vsel %vm1225_vm8, %v1338_v39, -inf }
 0x3e6   : > { %v5922_v58 = vpop.f32.mrf.mxu0 }
 0x3e8   : > { %1406 = vmax.xlane.f32.xlu1 %v8086_v49  ;;  %v1351_v43 = vpop.f32.mrf.mxu0 }
 0x3ea   : > { %v5923_v7 = vpop.f32.mrf.mxu0 }
 0x3ec   : > { %1412 = vmax.xlane.f32.xlu1 %v8097_v60  ;;  %v1354_v4 = vpop.f32.mrf.mxu0 }
 0x3ed   : > { %v8121_v57 = vsel %vm1229_vm9, %v1354_v4, -inf }
 0x3ee   : > { %v5926_v22 = vpop.f32.mrf.mxu0 }
 0x3ef   : > { %v8132_v13 = vsel %vm1234_vm10, %v5926_v22, -inf  ;;  %v8166_v22 = vadd.s32 80, %v7783_v25 }
 0x3f0   : > { %1408 = vmax.xlane.f32.xlu1 %v8108_v3  ;;  %v1367_v34 = vpop.f32.mrf.mxu0 }
 0x3f1   : > { %v8143_v18 = vsel %vm1232_vm11, %v1367_v34, -inf  ;;  %vm1230_vm14 = vcmp.le.s32.totalorder %v8024_v59, %v8166_v22  ;;  %v8171_v34 = vadd.s32 64, %v7783_v25 }
 0x3f2   : > { %1687 = vrot.lane.b32.xlu0 %v7958_v44, %s7335_s9  ;;  %v5927_v10 = vpop.f32.mrf.mxu0 }
 0x3f3   : > { %v8154_v15 = vsel %vm10513_vm12, %v5927_v10, -inf  ;;  %v8176_v10 = vsel %vm1230_vm14, %v5922_v58, -inf  ;;  %vm1228_vm15 = vcmp.le.s32.totalorder %v8024_v59, %v8171_v34 }
 0x3f4   : > { %1416 = vmax.xlane.f32.xlu1 %v8121_v57  ;;  %v1370_v39 = vpop.f32.mrf.mxu0  ;;  %v8187_v14 = vsel %vm1228_vm15, %v1351_v43, -inf  ;;  %v1692_v43 = vpop.permute.xlu1 %1691 }
 0x3f5   : > { %v8162_v4 = vsel %vm10542_vm13, %v1370_v39, -inf  ;;  %v8182_v39 = vadd.s32 88, %v7783_v25 }
 0x3f7   : > { %vm10562_vm12 = vcmp.le.s32.totalorder %v8024_v59, %v8182_v39 }
 0x3f8   : > { %1426 = vmax.xlane.f32.xlu1 %v8132_v13  ;;  %v8197_v58 = vsel %vm10562_vm12, %v5923_v7, -inf }
 0x3fc   : > { %1422 = vmax.xlane.f32.xlu1 %v8143_v18 }
 0x400   : > { %1428 = vmax.xlane.f32.xlu1 %v8154_v15 }
 0x404   : > { %1424 = vmax.xlane.f32.xlu1 %v8162_v4 }
 0x411   : > { %1418 = vmax.xlane.f32.xlu0 %v8176_v10 }
 0x415   : > { %1414 = vmax.xlane.f32.xlu0 %v8187_v14  ;;  %1685 = vrot.lane.b32.xlu1 %v7968_v47, %s7335_s9 }
 0x419   : > { %1420 = vmax.xlane.f32.xlu0 %v8197_v58  ;;  %1657 = vrot.lane.b32.xlu1 %v7824_v33, %s7335_s9 }
 0x41d   : > { %1661 = vrot.lane.b32.xlu1 %v7845_v11, %s7335_s9 }
 0x421   : > { %1665 = vrot.lane.b32.xlu1 %v7884_v45, %s7335_s9 }
 0x425   : > { %1669 = vrot.lane.b32.xlu1 %v7934_v46, %s7335_s9 }
 0x429   : > { %2012 = vrot.lane.b32.xlu1 %v7862_v38, %s7335_s9 }
 0x42d   : > { %2004 = vrot.lane.b32.xlu1 %v7907_v19, %s7335_s9 }
 0x42f   : > { %1683 = vrot.lane.b32.xlu0 %v7978_v55, %s7335_s9 }
 0x431   : > { %2000 = vrot.lane.b32.xlu1 %v7931_v28, %s7335_s9 }
 0x433   : > { %1681 = vrot.lane.b32.xlu0 %v7988_v23, %s7335_s9 }
 0x435   : > { %2165 = vrot.lane.b32.xlu1 %v7917_v0, %s7336_s15 }
 0x437   : > { %1679 = vrot.lane.b32.xlu0 %v7808_v20, %s7335_s9 }
 0x43b   : > { %1655 = vrot.lane.b32.xlu0 %v7803_v17, %s7335_s9 }
 0x43f   : > { %1659 = vrot.lane.b32.xlu0 %v7836_v42, %s7335_s9 }
 0x443   : > { %1663 = vrot.lane.b32.xlu0 %v7867_v8, %s7335_s9 }
 0x447   : > { %1667 = vrot.lane.b32.xlu0 %v7910_v61, %s7335_s9 }
 0x44b   : > { %2014 = vrot.lane.b32.xlu0 %v7857_v62, %s7335_s9 }
 0x44f   : > { %2010 = vrot.lane.b32.xlu0 %v7873_v21, %s7335_s9 }
 0x453   : > { %2008 = vrot.lane.b32.xlu0 %v7881_v41, %s7335_s9 }
 0x457   : > { %2006 = vrot.lane.b32.xlu0 %v7894_v53, %s7335_s9 }
 0x45b   : > { %2002 = vrot.lane.b32.xlu0 %v7920_v6, %s7335_s9 }
 0x45f   : > { %2167 = vrot.lane.b32.xlu0 %v7939_v40, %s7336_s15 }
 0x461   : > { %v1403_v7 = vpop.xlane.xlu0 %1402 }
 0x462   : > { %v1432_v21 = vsub.f32 %v8034_v2, %v1403_v7 }
 0x464   : > { %v1450_v8 = vmul.f32 1.442695, %v1432_v21 }
 0x465   : > { %v1405_v50 = vpop.xlane.xlu1 %1404  ;;  %v1399_v63 = vpop.xlane.xlu0 %1398 }
 0x466   : > { %v1433_v48 = vsub.f32 %v8052_v16, %v1405_v50  ;;  %v1430_v0 = vsub.f32 %v8047_v24, %v1399_v63  ;;  %v1741_v16 = vsel %vm1236_vm0, %v8016_v26, 0 }
 0x468   : > { %v1452_v41 = vmul.f32 1.442695, %v1433_v48  ;;  %v1446_v62 = vmul.f32 1.442695, %v1430_v0 }
 0x469   : > { %v1401_v61 = vpop.xlane.xlu1 %1400 }
 0x46a   : > { %v1431_v53 = vsub.f32 %v8064_v27, %v1401_v61  ;;  %6625 = vpow2.f32 %v1452_v41 }
 0x46b   : > { %6627 = vpow2.f32 %v1446_v62 }
 0x46c   : > { %v1448_v6 = vmul.f32 1.442695, %v1431_v53 }
 0x46d   : > { %v1411_v40 = vpop.xlane.xlu1 %1410 }
 0x46e   : > { %6629 = vpow2.f32 %v1448_v6  ;;  %v1436_v2 = vsub.f32 %v8075_v31, %v1411_v40 }
 0x46f   : > { %6631 = vpow2.f32 %v1450_v8 }
 0x470   : > { %v1458_v8 = vmul.f32 1.442695, %v1436_v2 }
 0x471   : > { %v1407_v42 = vpop.xlane.xlu1 %1406 }
 0x472   : > { %v1434_v33 = vsub.f32 %v8086_v49, %v1407_v42  ;;  %v1738_v49 = vsel %vm1236_vm0, %v1692_v43, 0 }
 0x474   : > { %v1454_v48 = vmul.f32 1.442695, %v1434_v33 }
 0x475   : > { %v1413_v50 = vpop.xlane.xlu1 %1412 }
 0x476   : > { %v1437_v63 = vsub.f32 %v8097_v60, %v1413_v50  ;;  %6633 = vpow2.f32 %v1454_v48  ;;  %v1688_v48 = vpop.permute.xlu0 %1687 }
 0x477   : > { %v8249_v0 = vpop.eup %6625 }
 0x478   : > { %10647 = vst [vmem:[#allocation34_spill] sm:$0xff] %v8249_v0  ;;  %v1460_v24 = vmul.f32 1.442695, %v1437_v63  ;;  %v8251_v21 = vpop.eup %6627 }
 0x479   : > { %v1409_v61 = vpop.xlane.xlu1 %1408  ;;  %10648 = vst [vmem:[#allocation35_spill] sm:$0xff] %v8251_v21 }
 0x47a   : > { %v1435_v62 = vsub.f32 %v8108_v3, %v1409_v61  ;;  %6635 = vpow2.f32 %v1460_v24  ;;  %v1732_v61 = vsel %vm1236_vm0, %v1688_v48, 0 }
 0x47b   : > { %v8254_v41 = vpop.eup %6629 }
 0x47c   : > { %10649 = vst [vmem:[#allocation36_spill] sm:$0xff] %v8254_v41  ;;  %v8256_v53 = vpop.eup %6631  ;;  %v1456_v42 = vmul.f32 1.442695, %v1435_v62  ;;  %v1526_v6 = vpack.c.bf16 %v8254_v41, %v8251_v21 }
 0x47d   : > { %10650 = vst [vmem:[#allocation37_spill] sm:$0xff] %v8256_v53  ;;  %v1417_v33 = vpop.xlane.xlu1 %1416  ;;  %v1527_v40 = vpack.c.bf16 %v8249_v0, %v8256_v53 }
 0x47e   : > { %6637 = vpow2.f32 %v1456_v42  ;;  %5944 = vmatprep.mubr.bf16.mxu1 %v1526_v6 }
 0x47f   : > { %6639 = vpow2.f32 %v1458_v8  ;;  %5945 = vmatmul.mubr.bf16.vlgmr.msra.gmra.mxu1 %v1527_v40  ;;  %v1439_v8 = vsub.f32 %v8121_v57, %v1417_v33 }
 0x480   : > { %5961 = vmatpush3.bf16.xpose.msra.mxu1 %v1741_v16 }
 0x481   : > { %6209 = vmatprep.subr.msk.bf16.mxu1 %vm1236_vm0, %v1692_v43  ;;  %v1427_v27 = vpop.xlane.xlu1 %1426  ;;  %v1735_v43 = vsel %vm1236_vm0, %v8014_v1, 0  ;;  %v1464_v40 = vmul.f32 1.442695, %v1439_v8 }
 0x483   : > { %v8266_v60 = vpop.eup %6633  ;;  %6641 = vpow2.f32 %v1464_v40 }
 0x484   : > { %10651 = vst [vmem:[#allocation38_spill] sm:$0xff] %v8266_v60 }
 0x485   : > { %v1423_v31 = vpop.xlane.xlu1 %1422 }
 0x487   : > { %v8270_v3 = vpop.eup %6635 }
 0x488   : > { %5963 = vmatpush3.bf16.xpose.msra.mxu1 %v1738_v49  ;;  %10652 = vst [vmem:[#allocation39_spill] sm:$0xff] %v8270_v3 }
 0x489   : > { %6210 = vmatprep.subr.msk.bf16.mxu1 %vm1236_vm0, %v8014_v1  ;;  %v1429_v26 = vpop.xlane.xlu1 %1428 }
 0x48a   : > { %v1445_v33 = vsub.f32 %v8154_v15, %v1429_v26 }
 0x48b   : > { %v8272_v7 = vpop.eup %6637 }
 0x48c   : > { %10653 = vst [vmem:[#allocation40_spill] sm:$0xff] %v8272_v7  ;;  %v8274_v50 = vpop.eup %6639  ;;  %v1528_v63 = vpack.c.bf16 %v8272_v7, %v8266_v60 }
 0x48d   : > { %10654 = vst [vmem:[#allocation41_spill] sm:$0xff] %v8274_v50  ;;  %v1529_v2 = vpack.c.bf16 %v8270_v3, %v8274_v50  ;;  %v1425_v24 = vpop.xlane.xlu1 %1424  ;;  %v10684_v50 = vld [vmem:[#allocation24_spill] sm:$0xff] }
 0x48e   : > { %5948 = vmatprep.mubr.bf16.mxu1 %v1528_v63  ;;  %v1443_v6 = vsub.f32 %v8162_v4, %v1425_v24  ;;  %v1444_v24 = vsub.f32 %v8132_v13, %v1427_v27 }
 0x48f   : > { %5949 = vmatmul.mubr.bf16.gmra.mxu1 %v1529_v2  ;;  %v1442_v2 = vsub.f32 %v8143_v18, %v1423_v31  ;;  %v1476_v31 = vmul.f32 1.442695, %v1445_v33 }
 0x490   : > { %5965 = vmatpush3.bf16.xpose.msra.mxu1 %v1735_v43  ;;  %v1472_v43 = vmul.f32 1.442695, %v1443_v6  ;;  %v1474_v8 = vmul.f32 1.442695, %v1444_v24 }
 0x491   : > { %6211 = vmatprep.subr.msk.bf16.mxu1 %vm1236_vm0, %v1688_v48  ;;  %v1686_v62 = vpop.permute.xlu1 %1685  ;;  %v1470_v4 = vmul.f32 1.442695, %v1442_v2 }
 0x492   : > { %v1729_v63 = vsel %vm1236_vm0, %v1686_v62, 0 }
 0x498   : > { %5967 = vmatpush3.bf16.xpose.msra.mxu1 %v1732_v61 }
 0x499   : > { %6212 = vmatprep.subr.msk.bf16.mxu1 %vm1236_vm0, %v1686_v62 }
 0x49a   : > { %v1419_v42 = vpop.xlane.xlu0 %1418 }
 0x49b   : > { %v1440_v16 = vsub.f32 %v8176_v10, %v1419_v42 }
 0x49d   : > { %v1466_v61 = vmul.f32 1.442695, %v1440_v16 }
 0x49e   : > { %v1415_v1 = vpop.xlane.xlu0 %1414 }
 0x49f   : > { %v1438_v49 = vsub.f32 %v8187_v14, %v1415_v1 }
 0x4a0   : > { %5969 = vmatpush3.bf16.xpose.msra.mxu1 %v1729_v63 }
 0x4a1   : > { %v1462_v48 = vmul.f32 1.442695, %v1438_v49 }
 0x4a2   : > { %v1421_v3 = vpop.xlane.xlu0 %1420 }
 0x4a3   : > { %6643 = vpow2.f32 %v1462_v48  ;;  %v1441_v57 = vsub.f32 %v8197_v58, %v1421_v3  ;;  %v1658_v58 = vpop.permute.xlu1 %1657  ;;  %v8297_v3 = vpop.eup %6641 }
 0x4a4   : > { %6645 = vpow2.f32 %v1472_v43  ;;  %10655 = vst [vmem:[#allocation42_spill] sm:$0xff] %v8297_v3 }
 0x4a5   : > { %v1468_v10 = vmul.f32 1.442695, %v1441_v57  ;;  %6647 = vpow2.f32 %v1466_v61 }
 0x4a6   : > { %v1684_v14 = vpop.permute.xlu0 %1683 }
 0x4a7   : > { %6649 = vpow2.f32 %v1468_v10  ;;  %6213 = vmatprep.subr.msk.bf16.mxu1 %vm1236_vm0, %v1684_v14  ;;  %v1726_v18 = vsel %vm1236_vm0, %v1684_v14, 0  ;;  %v1662_v6 = vpop.permute.xlu1 %1661 }
 0x4a8   : > { %6651 = vpow2.f32 %v1470_v4  ;;  %5971 = vmatpush3.bf16.xpose.msra.mxu1 %v1726_v18 }
 0x4a9   : > { %6653 = vpow2.f32 %v1476_v31 }
 0x4aa   : > { %v1682_v62 = vpop.permute.xlu0 %1681  ;;  %6655 = vpow2.f32 %v1474_v8 }
 0x4ab   : > { %6214 = vmatprep.subr.msk.bf16.mxu1 %vm1236_vm0, %v1682_v62  ;;  %v1723_v13 = vsel %vm1236_vm0, %v1682_v62, 0  ;;  %v1666_v61 = vpop.permute.xlu1 %1665 }
 0x4ae   : > { %v1680_v15 = vpop.permute.xlu0 %1679 }
 0x4af   : > { %v1720_v48 = vsel %vm1236_vm0, %v1680_v15, 0  ;;  %v1670_v14 = vpop.permute.xlu1 %1669 }
 0x4b0   : > { %v8300_v27 = vpop.eup %6643  ;;  %5973 = vmatpush3.bf16.xpose.msra.mxu1 %v1723_v13 }
 0x4b1   : > { %10656 = vst [vmem:[#allocation43_spill] sm:$0xff] %v8300_v27  ;;  %6215 = vmatprep.subr.msk.bf16.mxu1 %vm1236_vm0, %v1680_v15  ;;  %v1530_v26 = vpack.c.bf16 %v8297_v3, %v8300_v27  ;;  %v8305_v42 = vpop.eup %6645 }
 0x4b2   : > { %10657 = vst [vmem:[#allocation44_spill] sm:$0xff] %v8305_v42  ;;  %v1656_v40 = vpop.permute.xlu0 %1655  ;;  %v8307_v16 = vpop.eup %6647 }
 0x4b3   : > { %10658 = vst [vmem:[#allocation45_spill] sm:$0xff] %v8307_v16  ;;  %5952 = vmatprep.mubr.bf16.mxu1 %v1530_v26  ;;  %v2013_v31 = vpop.permute.xlu1 %2012 }
 0x4b4   : > { %v8309_v1 = vpop.eup %6649 }
 0x4b5   : > { %10659 = vst [vmem:[#allocation46_spill] sm:$0xff] %v8309_v1  ;;  %v8311_v49 = vpop.eup %6651  ;;  %v1531_v63 = vpack.c.bf16 %v8309_v1, %v8307_v16  ;;  %v10683_v16 = vld [vmem:[#allocation29_spill] sm:$0xff] }
 0x4b6   : > { %10660 = vst [vmem:[#allocation47_spill] sm:$0xff] %v8311_v49  ;;  %v1660_v2 = vpop.permute.xlu0 %1659  ;;  %v1532_v43 = vpack.c.bf16 %v8305_v42, %v8311_v49  ;;  %v8318_v57 = vpop.eup %6653 }
 0x4b7   : > { %5953 = vmatmul.mubr.bf16.gmra.mxu1 %v1531_v63  ;;  %10661 = vst [vmem:[#allocation48_spill] sm:$0xff] %v8318_v57  ;;  %v8320_v33 = vpop.eup %6655  ;;  %v2005_v13 = vpop.permute.xlu1 %2004 }
 0x4b8   : > { %5956 = vmatprep.mubr.bf16.mxu1 %v1532_v43  ;;  %5975 = vmatpush3.bf16.xpose.msra.mxu1 %v1720_v48  ;;  %10662 = vst [vmem:[#allocation49_spill] sm:$0xff] %v8320_v33  ;;  %v1533_v10 = vpack.c.bf16 %v8318_v57, %v8320_v33 }
 0x4ba   : > { %v1664_v4 = vpop.permute.xlu0 %1663 }
 0x4bb   : > { %v2001_v26 = vpop.permute.xlu1 %2000 }
 0x4be   : > { %v1668_v24 = vpop.permute.xlu0 %1667 }
 0x4bf   : > { %5957 = vmatmul.mubr.bf16.gmra.mxu1 %v1533_v10 }
 0x4c0   : > { %5976 = vmatprep.mubr.msk.bf16.mxu1 %vm1236_vm0, %v1656_v40 }
 0x4c2   : > { %v2015_v18 = vpop.permute.xlu0 %2014 }
 0x4c3   : > { %5992 = vmatprep.subr.bf16.mxu0 %v2015_v18 }
 0x4c4   : > { %5993 = vmatpush3.bf16.msra.mxu0 %v2015_v18 }
 0x4c5   : > { %5994 = vmatprep.subr.bf16.mxu0 %v2013_v31 }
 0x4c6   : > { %v2011_v62 = vpop.permute.xlu0 %2010 }
 0x4c7   : > { %5977 = vmatmul.mubr.msk.bf16.vlgmr.msra.gmra.mxu1 %vm1236_vm0, %v1658_v58 }
 0x4c8   : > { %5980 = vmatprep.mubr.msk.bf16.mxu1 %vm1236_vm0, %v1660_v2  ;;  %5995 = vmatpush3.bf16.msra.mxu0 %v2013_v31 }
 0x4c9   : > { %5996 = vmatprep.subr.bf16.mxu0 %v2011_v62 }
 0x4ca   : > { %v2009_v8 = vpop.permute.xlu0 %2008 }
 0x4cc   : > { %5997 = vmatpush3.bf16.msra.mxu0 %v2011_v62 }
 0x4cd   : > { %5998 = vmatprep.subr.bf16.mxu0 %v2009_v8 }
 0x4ce   : > { %v2007_v15 = vpop.permute.xlu0 %2006 }
 0x4cf   : > { %5981 = vmatmul.mubr.msk.bf16.gmra.mxu1 %vm1236_vm0, %v1662_v6 }
 0x4d0   : > { %5984 = vmatprep.mubr.msk.bf16.mxu1 %vm1236_vm0, %v1664_v4  ;;  %5999 = vmatpush3.bf16.msra.mxu0 %v2009_v8 }
 0x4d1   : > { %6000 = vmatprep.subr.bf16.mxu0 %v2007_v15 }
 0x4d2   : > { %v2003_v58 = vpop.permute.xlu0 %2002 }
 0x4d4   : > { %6001 = vmatpush3.bf16.msra.mxu0 %v2007_v15 }
 0x4d5   : > { %6002 = vmatprep.subr.bf16.mxu0 %v2005_v13 }
 0x4d6   : > { %v8332_v6 = vpop.permute.xlu0 %2167 }
 0x4d7   : > { %5985 = vmatmul.mubr.msk.bf16.gmra.mxu1 %vm1236_vm0, %v1666_v61 }
 0x4d8   : > { %5988 = vmatprep.mubr.msk.bf16.mxu1 %vm1236_vm0, %v1668_v24  ;;  %6003 = vmatpush3.bf16.msra.mxu0 %v2005_v13 }
 0x4d9   : > { %6004 = vmatprep.subr.bf16.mxu0 %v2003_v58 }
 0x4dc   : > { %6005 = vmatpush3.bf16.msra.mxu0 %v2003_v58 }
 0x4dd   : > { %6006 = vmatprep.subr.bf16.mxu0 %v2001_v26 }
 0x4df   : > { %5989 = vmatmul.mubr.msk.bf16.gmra.mxu1 %vm1236_vm0, %v1670_v14 }
 0x4e0   : > { %6007 = vmatpush3.bf16.msra.mxu0 %v2001_v26 }
 0x4e1   : > { %6216 = vmatprep.subr.msk.bf16.mxu0 %vm1236_vm0, %v8332_v6 }
 0x53f   : > { %v8336_v40 = vpop.f32.mrf.mxu1 }
 0x540   : > { %10663 = vst [vmem:[#allocation50_spill] sm:$0xff] %v8336_v40 }
 0x541   : > { %v8338_v63 = vpop.f32.mrf.mxu1 }
 0x542   : > { %10664 = vst [vmem:[#allocation51_spill] sm:$0xff] %v8338_v63  ;;  %v10682_v63 = vld [vmem:[#allocation25_spill] sm:$0xff] }
 0x543   : > { %v8340_v2 = vpop.f32.mrf.mxu1 }
 0x544   : > { %10665 = vst [vmem:[#allocation52_spill] sm:$0xff] %v8340_v2 }
 0x545   : > { %v8342_v43 = vpop.f32.mrf.mxu1 }
 0x546   : > { %10666 = vst [vmem:[#allocation53_spill] sm:$0xff] %v8342_v43 }
 0x54f   : > { %v8344_v48 = vpop.f32.mrf.mxu1 }
 0x550   : > { %10667 = vst [vmem:[#allocation54_spill] sm:$0xff] %v8344_v48 }
 0x551   : > { %v8346_v61 = vpop.f32.mrf.mxu1 }
 0x552   : > { %10668 = vst [vmem:[#allocation55_spill] sm:$0xff] %v8346_v61 }
 0x553   : > { %v8348_v4 = vpop.f32.mrf.mxu1 }
 0x554   : > { %10669 = vst [vmem:[#allocation56_spill] sm:$0xff] %v8348_v4 }
 0x555   : > { %v8350_v10 = vpop.f32.mrf.mxu1 }
 0x556   : > { %10670 = vst [vmem:[#allocation57_spill] sm:$0xff] %v8350_v10 }
 0x577   : > { %v8352_v14 = vpop.f32.mrf.mxu1 }
 0x578   : > { %10671 = vst [vmem:[#allocation58_spill] sm:$0xff] %v8352_v14 }
 0x579   : > { %v8354_v24 = vpop.f32.mrf.mxu1 }
 0x57a   : > { %10672 = vst [vmem:[#allocation59_spill] sm:$0xff] %v8354_v24 }
 0x57b   : > { %v8356_v18 = vpop.f32.mrf.mxu1 }
 0x57c   : > { %10673 = vst [vmem:[#allocation60_spill] sm:$0xff] %v8356_v18 }
 0x57d   : > { %v8358_v31 = vpop.f32.mrf.mxu1 }
 0x57e   : > { %10674 = vst [vmem:[#allocation61_spill] sm:$0xff] %v8358_v31 }
 0x57f   : > { %v8360_v62 = vpop.f32.mrf.mxu1 }
 0x580   : > { %10675 = vst [vmem:[#allocation62_spill] sm:$0xff] %v8360_v62 }
 0x581   : > { %v8362_v8 = vpop.f32.mrf.mxu1 }
 0x582   : > { %10676 = vst [vmem:[#allocation63_spill] sm:$0xff] %v8362_v8 }
 0x583   : > { %v8364_v15 = vpop.f32.mrf.mxu1 }
 0x584   : > { %10677 = vst [vmem:[#allocation64_spill] sm:$0xff] %v8364_v15 }
 0x585   : > { %v8366_v13 = vpop.f32.mrf.mxu1 }
 0x586   : > { %10678 = vst [vmem:[#allocation65_spill] sm:$0xff] %v8366_v13 }
 0x587   : > { %v5978_v58 = vpop.f32.mrf.mxu1 }
 0x588   : > { %v8371_v26 = vsel %vm1222_vm1, %v5978_v58, -inf }
 0x589   : > { %1860 = vmax.xlane.f32.xlu1 %v8371_v26  ;;  %v1777_v14 = vpop.f32.mrf.mxu1 }
 0x58a   : > { %v8377_v18 = vsel %vm1220_vm2, %v1777_v14, -inf }
 0x58b   : > { %1856 = vmax.xlane.f32.xlu0 %v8377_v18  ;;  %v5979_v8 = vpop.f32.mrf.mxu1 }
 0x58c   : > { %v8383_v13 = vsel %vm1223_vm3, %v5979_v8, -inf }
 0x58d   : > { %1862 = vmax.xlane.f32.xlu1 %v8383_v13  ;;  %v1780_v58 = vpop.f32.mrf.mxu1 }
 0x58e   : > { %v8389_v62 = vsel %vm1221_vm4, %v1780_v58, -inf }
 0x58f   : > { %v5982_v14 = vpop.f32.mrf.mxu1 }
 0x590   : > { %v8401_v61 = vsel %vm1226_vm5, %v5982_v14, -inf }
 0x591   : > { %1858 = vmax.xlane.f32.xlu1 %v8389_v62  ;;  %v1793_v15 = vpop.f32.mrf.mxu1 }
 0x592   : > { %v8407_v33 = vsel %vm1224_vm6, %v1793_v15, -inf }
 0x593   : > { %v5983_v31 = vpop.f32.mrf.mxu1 }
 0x594   : > { %v8413_v40 = vsel %vm1227_vm7, %v5983_v31, -inf }
 0x595   : > { %v1796_v8 = vpop.f32.mrf.mxu1 }
 0x596   : > { %v8425_v15 = vsel %vm1225_vm8, %v1796_v8, -inf }
 0x597   : > { %v5986_v24 = vpop.f32.mrf.mxu1 }
 0x598   : > { %v8431_v31 = vsel %vm1230_vm14, %v5986_v24, -inf }
 0x599   : > { %v1809_v57 = vpop.f32.mrf.mxu1 }
 0x59b   : > { %v5987_v42 = vpop.f32.mrf.mxu1 }
 0x59c   : > { %v8443_v8 = vsel %vm10562_vm12, %v5987_v42, -inf }
 0x59d   : > { %v1812_v58 = vpop.f32.mrf.mxu1 }
 0x59e   : > { %v8451_v24 = vsel %vm1229_vm9, %v1812_v58, -inf }
 0x59f   : > { %v5990_v4 = vpop.f32.mrf.mxu1 }
 0x5a0   : > { %v8459_v42 = vsel %vm1234_vm10, %v5990_v4, -inf  ;;  %v2166_v4 = vpop.permute.xlu1 %2165 }
 0x5a1   : > { %2161 = vrot.lane.b32.xlu0 %v7958_v44, %s7336_s15  ;;  %v1825_v48 = vpop.f32.mrf.mxu1 }
 0x5a2   : > { %2163 = vrot.lane.b32.xlu1 %v7891_v52, %s7336_s15 }
 0x5a3   : > { %v5991_v10 = vpop.f32.mrf.mxu1 }
 0x5a5   : > { %2159 = vrot.lane.b32.xlu0 %v7968_v47, %s7336_s15  ;;  %v1828_v2 = vpop.f32.mrf.mxu1 }
 0x5a6   : > { %v8419_v14 = vsel %vm10542_vm13, %v1828_v2, -inf  ;;  %v8437_v2 = vsel %vm1228_vm15, %v1809_v57, -inf  ;;  %v8467_v57 = vsel %vm1232_vm11, %v1825_v48, -inf  ;;  %vm10679_vm13 = vcmp.le.s32.totalorder %v8024_v59, %v8138_v5  ;;  %v10680_v48 = vld [vmem:[#allocation22_spill] sm:$0xff] }
 0x5a7   : > { %v8473_v58 = vsel %vm10679_vm13, %v5991_v10, -inf  ;;  %v10681_v10 = vld [vmem:[#allocation23_spill] sm:$0xff] }
 0x5c4   : > { %1868 = vmax.xlane.f32.xlu0 %v8401_v61 }
 0x5c6   : > { %1864 = vmax.xlane.f32.xlu1 %v8407_v33 }
 0x5c8   : > { %1870 = vmax.xlane.f32.xlu0 %v8413_v40 }
 0x5ca   : > { %1882 = vmax.xlane.f32.xlu1 %v8419_v14 }
 0x5cc   : > { %1866 = vmax.xlane.f32.xlu0 %v8425_v15 }
 0x5d0   : > { %1876 = vmax.xlane.f32.xlu0 %v8431_v31 }
 0x5d4   : > { %1872 = vmax.xlane.f32.xlu0 %v8437_v2 }
 0x5d8   : > { %1878 = vmax.xlane.f32.xlu0 %v8443_v8 }
 0x5db   : > { %2157 = vrot.lane.b32.xlu1 %v7978_v55, %s7336_s15 }
 0x5dc   : > { %1874 = vmax.xlane.f32.xlu0 %v8451_v24 }
 0x5df   : > { %2143 = vrot.lane.b32.xlu1 %v7845_v11, %s7336_s15 }
 0x5e0   : > { %1884 = vmax.xlane.f32.xlu0 %v8459_v42 }
 0x5e3   : > { %2147 = vrot.lane.b32.xlu1 %v7884_v45, %s7336_s15 }
 0x5e4   : > { %1880 = vmax.xlane.f32.xlu0 %v8467_v57 }
 0x5e7   : > { %2151 = vrot.lane.b32.xlu1 %v7934_v46, %s7336_s15 }
 0x5e8   : > { %1886 = vmax.xlane.f32.xlu0 %v8473_v58 }
 0x5eb   : > { %2478 = vrot.lane.b32.xlu1 %v7862_v38, %s7336_s15 }
 0x5ef   : > { %2470 = vrot.lane.b32.xlu1 %v7907_v19, %s7336_s15 }
 0x5f3   : > { %2466 = vrot.lane.b32.xlu1 %v7931_v28, %s7336_s15 }
 0x5f7   : > { %2629 = vrot.lane.b32.xlu1 %v7891_v52, %s7337_s3 }
 0x5fe   : > { %2155 = vrot.lane.b32.xlu0 %v7988_v23, %s7336_s15 }
 0x602   : > { %2153 = vrot.lane.b32.xlu0 %v7808_v20, %s7336_s15 }
 0x606   : > { %2137 = vrot.lane.b32.xlu0 %v7803_v17, %s7336_s15 }
 0x60a   : > { %2139 = vrot.lane.b32.xlu0 %v10680_v48, %s7336_s15 }
 0x60e   : > { %2141 = vrot.lane.b32.xlu0 %v10681_v10, %s7336_s15 }
 0x612   : > { %v1861_v43 = vpop.xlane.xlu1 %1860  ;;  %2145 = vrot.lane.b32.xlu0 %v10682_v63, %s7336_s15 }
 0x613   : > { %v1890_v3 = vsub.f32 %v8371_v26, %v1861_v43  ;;  %v10689_v43 = vld [vmem:[#allocation31_spill] sm:$0xff] }
 0x614   : > { %v1857_v52 = vpop.xlane.xlu0 %1856 }
 0x615   : > { %v1888_v49 = vsub.f32 %v8377_v18, %v1857_v52  ;;  %v1908_v53 = vmul.f32 1.442695, %v1890_v3  ;;  %v10685_v18 = vld [vmem:[#allocation26_spill] sm:$0xff]  ;;  %v2215_v3 = vsel %vm1236_vm0, %v8332_v6, 0 }
 0x616   : > { %v1863_v1 = vpop.xlane.xlu1 %1862  ;;  %2149 = vrot.lane.b32.xlu0 %v10683_v16, %s7336_s15 }
 0x617   : > { %v1891_v27 = vsub.f32 %v8383_v13, %v1863_v1  ;;  %v1904_v7 = vmul.f32 1.442695, %v1888_v49  ;;  %v10686_v1 = vld [vmem:[#allocation27_spill] sm:$0xff]  ;;  %v2212_v13 = vsel %vm1236_vm0, %v2166_v4, 0 }
 0x619   : > { %v1910_v0 = vmul.f32 1.442695, %v1891_v27  ;;  %6657 = vpow2.f32 %v1904_v7  ;;  %v10687_v27 = vld [vmem:[#allocation28_spill] sm:$0xff] }
 0x61a   : > { %v1859_v41 = vpop.xlane.xlu1 %1858  ;;  %2480 = vrot.lane.b32.xlu0 %v10684_v50, %s7336_s15 }
 0x61b   : > { %v1889_v60 = vsub.f32 %v8389_v62, %v1859_v41  ;;  %6659 = vpow2.f32 %v1910_v0  ;;  %v10694_v62 = vld [vmem:[#allocation30_spill] sm:$0xff] }
 0x61d   : > { %v1906_v21 = vmul.f32 1.442695, %v1889_v60 }
 0x61e   : > { %2476 = vrot.lane.b32.xlu0 %v10685_v18, %s7336_s15  ;;  %v2164_v26 = vpop.permute.xlu1 %2163 }
 0x61f   : > { %6661 = vpow2.f32 %v1906_v21  ;;  %v2209_v52 = vsel %vm1236_vm0, %v2164_v26, 0 }
 0x620   : > { %6663 = vpow2.f32 %v1908_v53  ;;  %v10693_v53 = vld [vmem:[#allocation33_spill] sm:$0xff] }
 0x622   : > { %2474 = vrot.lane.b32.xlu0 %v10686_v1, %s7336_s15 }
 0x626   : > { %2472 = vrot.lane.b32.xlu0 %v10687_v27, %s7336_s15  ;;  %v8512_v49 = vpop.eup %6657 }
 0x627   : > { %10688 = vst [vmem:[#allocation22_spill] sm:$0xff] %v8512_v49 }
 0x628   : > { %v8516_v41 = vpop.eup %6659 }
 0x629   : > { %10690 = vst [vmem:[#allocation23_spill] sm:$0xff] %v8516_v41 }
 0x62a   : > { %2468 = vrot.lane.b32.xlu0 %v10689_v43, %s7336_s15 }
 0x62c   : > { %v8518_v60 = vpop.eup %6661 }
 0x62d   : > { %10691 = vst [vmem:[#allocation25_spill] sm:$0xff] %v8518_v60  ;;  %v8520_v0 = vpop.eup %6663  ;;  %v1984_v21 = vpack.c.bf16 %v8518_v60, %v8512_v49 }
 0x62e   : > { %10692 = vst [vmem:[#allocation29_spill] sm:$0xff] %v8520_v0  ;;  %2633 = vrot.lane.b32.xlu0 %v10693_v53, %s7337_s3  ;;  %v1985_v7 = vpack.c.bf16 %v8516_v41, %v8520_v0 }
 0x62f   : > { %6008 = vmatprep.mubr.bf16.mxu0 %v1984_v21  ;;  %v2162_v21 = vpop.permute.xlu0 %2161 }
 0x630   : > { %6009 = vmatmul.mubr.bf16.vlgmr.msra.gmra.mxu0 %v1985_v7  ;;  %v2206_v6 = vsel %vm1236_vm0, %v2162_v21, 0 }
 0x631   : > { %6025 = vmatpush3.bf16.xpose.msra.mxu0 %v2215_v3 }
 0x632   : > { %6217 = vmatprep.subr.msk.bf16.mxu0 %vm1236_vm0, %v2166_v4  ;;  %2631 = vrot.lane.b32.xlu0 %v10694_v62, %s7337_s3 }
 0x633   : > { %v2160_v53 = vpop.permute.xlu0 %2159 }
 0x634   : > { %v2203_v3 = vsel %vm1236_vm0, %v2160_v53, 0 }
 0x636   : > { %2627 = vrot.lane.b32.xlu0 %v7958_v44, %s7337_s3 }
 0x639   : > { %6027 = vmatpush3.bf16.xpose.msra.mxu0 %v2212_v13 }
 0x63a   : > { %6218 = vmatprep.subr.msk.bf16.mxu0 %vm1236_vm0, %v2164_v26 }
 0x641   : > { %6029 = vmatpush3.bf16.xpose.msra.mxu0 %v2209_v52 }
 0x642   : > { %6219 = vmatprep.subr.msk.bf16.mxu0 %vm1236_vm0, %v2162_v21 }
 0x649   : > { %6031 = vmatpush3.bf16.xpose.msra.mxu0 %v2206_v6 }
 0x64a   : > { %6220 = vmatprep.subr.msk.bf16.mxu0 %vm1236_vm0, %v2160_v53 }
 0x64d   : > { %v1869_v7 = vpop.xlane.xlu0 %1868 }
 0x64e   : > { %v1894_v26 = vsub.f32 %v8401_v61, %v1869_v7 }
 0x64f   : > { %v1865_v44 = vpop.xlane.xlu1 %1864 }
 0x650   : > { %v1892_v4 = vsub.f32 %v8407_v33, %v1865_v44  ;;  %v1916_v41 = vmul.f32 1.442695, %v1894_v26 }
 0x651   : > { %6033 = vmatpush3.bf16.xpose.msra.mxu0 %v2203_v3  ;;  %v1871_v62 = vpop.xlane.xlu0 %1870 }
 0x652   : > { %v1895_v13 = vsub.f32 %v8413_v40, %v1871_v62  ;;  %v1912_v0 = vmul.f32 1.442695, %v1892_v4 }
 0x653   : > { %v1883_v52 = vpop.xlane.xlu1 %1882 }
 0x654   : > { %v1918_v49 = vmul.f32 1.442695, %v1895_v13  ;;  %6665 = vpow2.f32 %v1912_v0 }
 0x655   : > { %v1867_v21 = vpop.xlane.xlu0 %1866 }
 0x656   : > { %v1893_v6 = vsub.f32 %v8425_v15, %v1867_v21  ;;  %6667 = vpow2.f32 %v1918_v49 }
 0x657   : > { %v2158_v60 = vpop.permute.xlu1 %2157 }
 0x658   : > { %v1914_v28 = vmul.f32 1.442695, %v1893_v6  ;;  %6221 = vmatprep.subr.msk.bf16.mxu0 %vm1236_vm0, %v2158_v60  ;;  %v2200_v33 = vsel %vm1236_vm0, %v2158_v60, 0 }
 0x659   : > { %6035 = vmatpush3.bf16.xpose.msra.mxu0 %v2200_v33  ;;  %v1877_v53 = vpop.xlane.xlu0 %1876 }
 0x65a   : > { %6669 = vpow2.f32 %v1914_v28  ;;  %v1898_v15 = vsub.f32 %v8431_v31, %v1877_v53  ;;  %v1901_v31 = vsub.f32 %v8419_v14, %v1883_v52 }
 0x65b   : > { %6671 = vpow2.f32 %v1916_v41 }
 0x65c   : > { %v1924_v28 = vmul.f32 1.442695, %v1898_v15 }
 0x65d   : > { %v1873_v40 = vpop.xlane.xlu0 %1872 }
 0x65e   : > { %v1896_v61 = vsub.f32 %v8437_v2, %v1873_v40 }
 0x660   : > { %v1920_v4 = vmul.f32 1.442695, %v1896_v61 }
 0x661   : > { %v1879_v7 = vpop.xlane.xlu0 %1878  ;;  %v8551_v0 = vpop.eup %6665 }
 0x662   : > { %v1899_v44 = vsub.f32 %v8443_v8, %v1879_v7  ;;  %6673 = vpow2.f32 %v1920_v4 }
 0x663   : > { %v8553_v13 = vpop.eup %6667 }
 0x664   : > { %v1926_v3 = vmul.f32 1.442695, %v1899_v44 }
 0x665   : > { %v1875_v62 = vpop.xlane.xlu0 %1874 }
 0x666   : > { %v1897_v49 = vsub.f32 %v8451_v24, %v1875_v62  ;;  %6675 = vpow2.f32 %v1926_v3  ;;  %v1930_v24 = vmul.f32 1.442695, %v1901_v31 }
 0x667   : > { %v8556_v60 = vpop.eup %6669 }
 0x668   : > { %v8558_v41 = vpop.eup %6671  ;;  %v1922_v2 = vmul.f32 1.442695, %v1897_v49  ;;  %v1986_v8 = vpack.c.bf16 %v8556_v60, %v8551_v0 }
 0x669   : > { %v1885_v26 = vpop.xlane.xlu0 %1884  ;;  %v1987_v21 = vpack.c.bf16 %v8553_v13, %v8558_v41 }
 0x66a   : > { %6677 = vpow2.f32 %v1922_v2  ;;  %6012 = vmatprep.mubr.bf16.mxu0 %v1986_v8  ;;  %v1902_v6 = vsub.f32 %v8459_v42, %v1885_v26 }
 0x66b   : > { %6679 = vpow2.f32 %v1924_v28  ;;  %6013 = vmatmul.mubr.bf16.gmra.mxu0 %v1987_v21  ;;  %v2144_v21 = vpop.permute.xlu1 %2143 }
 0x66c   : > { %6681 = vpow2.f32 %v1930_v24  ;;  %v1932_v61 = vmul.f32 1.442695, %v1902_v6 }
 0x66d   : > { %v1881_v33 = vpop.xlane.xlu0 %1880 }
 0x66e   : > { %v1900_v53 = vsub.f32 %v8467_v57, %v1881_v33 }
 0x66f   : > { %v8568_v44 = vpop.eup %6673 }
 0x670   : > { %v1928_v40 = vmul.f32 1.442695, %v1900_v53 }
 0x671   : > { %v1887_v7 = vpop.xlane.xlu0 %1886 }
 0x672   : > { %6683 = vpow2.f32 %v1928_v40  ;;  %v1903_v14 = vsub.f32 %v8473_v58, %v1887_v7 }
 0x673   : > { %6685 = vpow2.f32 %v1932_v61  ;;  %v8570_v4 = vpop.eup %6675  ;;  %v2148_v61 = vpop.permute.xlu1 %2147 }
 0x674   : > { %v1934_v52 = vmul.f32 1.442695, %v1903_v14 }
 0x675   : > { %v2156_v15 = vpop.permute.xlu0 %2155 }
 0x676   : > { %6687 = vpow2.f32 %v1934_v52  ;;  %6222 = vmatprep.subr.msk.bf16.mxu0 %vm1236_vm0, %v2156_v15  ;;  %v2197_v42 = vsel %vm1236_vm0, %v2156_v15, 0 }
 0x677   : > { %v8574_v57 = vpop.eup %6677  ;;  %6037 = vmatpush3.bf16.xpose.msra.mxu0 %v2197_v42  ;;  %v2152_v14 = vpop.permute.xlu1 %2151 }
 0x678   : > { %v8576_v3 = vpop.eup %6679  ;;  %v1988_v58 = vpack.c.bf16 %v8574_v57, %v8568_v44 }
 0x679   : > { %v2154_v62 = vpop.permute.xlu0 %2153  ;;  %v1989_v49 = vpack.c.bf16 %v8570_v4, %v8576_v3  ;;  %v8583_v2 = vpop.eup %6681 }
 0x67a   : > { %6016 = vmatprep.mubr.bf16.mxu0 %v1988_v58  ;;  %6223 = vmatprep.subr.msk.bf16.mxu0 %vm1236_vm0, %v2154_v62  ;;  %10695 = vst [vmem:[#allocation24_spill] sm:$0xff] %v8583_v2  ;;  %v2194_v8 = vsel %vm1236_vm0, %v2154_v62, 0 }
 0x67b   : > { %6017 = vmatmul.mubr.bf16.gmra.mxu0 %v1989_v49  ;;  %v2479_v42 = vpop.permute.xlu1 %2478 }
 0x67d   : > { %v2138_v28 = vpop.permute.xlu0 %2137 }
 0x67f   : > { %v8586_v31 = vpop.eup %6683  ;;  %6039 = vmatpush3.bf16.xpose.msra.mxu0 %v2194_v8 }
 0x680   : > { %v1990_v26 = vpack.c.bf16 %v8583_v2, %v8586_v31  ;;  %v8590_v6 = vpop.eup %6685 }
 0x681   : > { %v2140_v24 = vpop.permute.xlu0 %2139  ;;  %v10726_v5 = vld [vmem:[#allocation24_spill] sm:$0xff] }
 0x682   : > { %6020 = vmatprep.mubr.bf16.mxu0 %v1990_v26 }
 0x683   : > { %v8592_v33 = vpop.eup %6687 }
 0x684   : > { %10696 = vst [vmem:[#allocation26_spill] sm:$0xff] %v8592_v33  ;;  %v1991_v53 = vpack.c.bf16 %v8592_v33, %v8590_v6 }
 0x685   : > { %v2142_v40 = vpop.permute.xlu0 %2141 }
 0x686   : > { %6021 = vmatmul.mubr.bf16.gmra.mxu0 %v1991_v53 }
 0x687   : > { %6040 = vmatprep.mubr.msk.bf16.mxu0 %vm1236_vm0, %v2138_v28  ;;  %v2471_v28 = vpop.permute.xlu1 %2470 }
 0x689   : > { %v2146_v7 = vpop.permute.xlu0 %2145 }
 0x68b   : > { %v2467_v26 = vpop.permute.xlu1 %2466 }
 0x68d   : > { %v2150_v52 = vpop.permute.xlu0 %2149 }
 0x68e   : > { %6041 = vmatmul.mubr.msk.bf16.vlgmr.msra.gmra.mxu0 %vm1236_vm0, %v2140_v24 }
 0x68f   : > { %6044 = vmatprep.mubr.msk.bf16.mxu0 %vm1236_vm0, %v2142_v40 }
 0x691   : > { %v2481_v15 = vpop.permute.xlu0 %2480 }
 0x692   : > { %6056 = vmatprep.subr.bf16.mxu1 %v2481_v15 }
 0x693   : > { %6057 = vmatpush3.bf16.msra.mxu1 %v2481_v15 }
 0x694   : > { %6058 = vmatprep.subr.bf16.mxu1 %v2479_v42 }
 0x695   : > { %v2477_v58 = vpop.permute.xlu0 %2476 }
 0x696   : > { %6045 = vmatmul.mubr.msk.bf16.gmra.mxu0 %vm1236_vm0, %v2144_v21 }
 0x697   : > { %6048 = vmatprep.mubr.msk.bf16.mxu0 %vm1236_vm0, %v2146_v7  ;;  %6059 = vmatpush3.bf16.msra.mxu1 %v2479_v42 }
 0x698   : > { %6060 = vmatprep.subr.bf16.mxu1 %v2477_v58 }
 0x699   : > { %v2475_v62 = vpop.permute.xlu0 %2474 }
 0x69b   : > { %6061 = vmatpush3.bf16.msra.mxu1 %v2477_v58 }
 0x69c   : > { %6062 = vmatprep.subr.bf16.mxu1 %v2475_v62 }
 0x69d   : > { %v2473_v49 = vpop.permute.xlu0 %2472 }
 0x69e   : > { %6049 = vmatmul.mubr.msk.bf16.gmra.mxu0 %vm1236_vm0, %v2148_v61 }
 0x69f   : > { %6052 = vmatprep.mubr.msk.bf16.mxu0 %vm1236_vm0, %v2150_v52  ;;  %6063 = vmatpush3.bf16.msra.mxu1 %v2475_v62 }
 0x6a0   : > { %6064 = vmatprep.subr.bf16.mxu1 %v2473_v49 }
 0x6a1   : > { %v2469_v8 = vpop.permute.xlu0 %2468 }
 0x6a3   : > { %6065 = vmatpush3.bf16.msra.mxu1 %v2473_v49 }
 0x6a4   : > { %6066 = vmatprep.subr.bf16.mxu1 %v2471_v28 }
 0x6a5   : > { %v8604_v21 = vpop.permute.xlu0 %2633 }
 0x6a6   : > { %6053 = vmatmul.mubr.msk.bf16.gmra.mxu0 %vm1236_vm0, %v2152_v14 }
 0x6a7   : > { %6067 = vmatpush3.bf16.msra.mxu1 %v2471_v28 }
 0x6a8   : > { %6068 = vmatprep.subr.bf16.mxu1 %v2469_v8 }
 0x6ab   : > { %6069 = vmatpush3.bf16.msra.mxu1 %v2469_v8 }
 0x6ac   : > { %6070 = vmatprep.subr.bf16.mxu1 %v2467_v26 }
 0x6af   : > { %6071 = vmatpush3.bf16.msra.mxu1 %v2467_v26 }
 0x6b0   : > { %6224 = vmatprep.subr.msk.bf16.mxu1 %vm1236_vm0, %v8604_v21 }
 0x6f0   : > { %v8608_v24 = vpop.f32.mrf.mxu0 }
 0x6f1   : > { %10697 = vst [vmem:[#allocation27_spill] sm:$0xff] %v8608_v24 }
 0x6f2   : > { %v8610_v53 = vpop.f32.mrf.mxu0 }
 0x6f3   : > { %10698 = vst [vmem:[#allocation28_spill] sm:$0xff] %v8610_v53 }
 0x6f4   : > { %v8612_v40 = vpop.f32.mrf.mxu0 }
 0x6f5   : > { %10699 = vst [vmem:[#allocation31_spill] sm:$0xff] %v8612_v40 }
 0x6f6   : > { %v8614_v61 = vpop.f32.mrf.mxu0 }
 0x6f7   : > { %10700 = vst [vmem:[#allocation33_spill] sm:$0xff] %v8614_v61 }
 0x72b   : > { %v8616_v7 = vpop.f32.mrf.mxu0 }
 0x72c   : > { %10701 = vst [vmem:[#allocation30_spill] sm:$0xff] %v8616_v7 }
 0x72d   : > { %v8618_v14 = vpop.f32.mrf.mxu0 }
 0x72e   : > { %10702 = vst [vmem:[#allocation66_spill] sm:$0xff] %v8618_v14 }
 0x72f   : > { %v8620_v52 = vpop.f32.mrf.mxu0 }
 0x730   : > { %10703 = vst [vmem:[#allocation67_spill] sm:$0xff] %v8620_v52 }
 0x731   : > { %v8622_v15 = vpop.f32.mrf.mxu0 }
 0x732   : > { %10704 = vst [vmem:[#allocation68_spill] sm:$0xff] %v8622_v15 }
 0x73b   : > { %v8624_v42 = vpop.f32.mrf.mxu0 }
 0x73c   : > { %10705 = vst [vmem:[#allocation69_spill] sm:$0xff] %v8624_v42 }
 0x73d   : > { %v8626_v58 = vpop.f32.mrf.mxu0 }
 0x73e   : > { %10706 = vst [vmem:[#allocation70_spill] sm:$0xff] %v8626_v58 }
 0x73f   : > { %v8628_v62 = vpop.f32.mrf.mxu0 }
 0x740   : > { %10707 = vst [vmem:[#allocation71_spill] sm:$0xff] %v8628_v62 }
 0x741   : > { %v8630_v49 = vpop.f32.mrf.mxu0 }
 0x742   : > { %10708 = vst [vmem:[#allocation72_spill] sm:$0xff] %v8630_v49 }
 0x746   : > { %v8632_v28 = vpop.f32.mrf.mxu0 }
 0x747   : > { %10709 = vst [vmem:[#allocation73_spill] sm:$0xff] %v8632_v28 }
 0x748   : > { %v8634_v8 = vpop.f32.mrf.mxu0 }
 0x749   : > { %10710 = vst [vmem:[#allocation74_spill] sm:$0xff] %v8634_v8 }
 0x74a   : > { %v8636_v26 = vpop.f32.mrf.mxu0 }
 0x74b   : > { %10711 = vst [vmem:[#allocation75_spill] sm:$0xff] %v8636_v26 }
 0x74c   : > { %v8638_v7 = vpop.f32.mrf.mxu0 }
 0x74d   : > { %10712 = vst [vmem:[#allocation76_spill] sm:$0xff] %v8638_v7 }
 0x74e   : > { %v6042_v14 = vpop.f32.mrf.mxu0 }
 0x74f   : > { %v8643_v52 = vsel %vm1222_vm1, %v6042_v14, -inf }
 0x750   : > { %2334 = vmax.xlane.f32.xlu1 %v8643_v52  ;;  %v2251_v42 = vpop.f32.mrf.mxu0 }
 0x751   : > { %v8649_v62 = vsel %vm1220_vm2, %v2251_v42, -inf }
 0x752   : > { %2330 = vmax.xlane.f32.xlu0 %v8649_v62  ;;  %v6043_v58 = vpop.f32.mrf.mxu0 }
 0x753   : > { %v8655_v49 = vsel %vm1223_vm3, %v6043_v58, -inf }
 0x754   : > { %2336 = vmax.xlane.f32.xlu1 %v8655_v49  ;;  %v2254_v14 = vpop.f32.mrf.mxu0 }
 0x755   : > { %v8661_v28 = vsel %vm1221_vm4, %v2254_v14, -inf }
 0x756   : > { %v6046_v26 = vpop.f32.mrf.mxu0 }
 0x757   : > { %v8666_v42 = vsel %vm1226_vm5, %v6046_v26, -inf }
 0x758   : > { %2332 = vmax.xlane.f32.xlu1 %v8661_v28  ;;  %2342 = vmax.xlane.f32.xlu0 %v8666_v42  ;;  %v2267_v58 = vpop.f32.mrf.mxu0 }
 0x759   : > { %v8673_v8 = vsel %vm1224_vm6, %v2267_v58, -inf }
 0x75a   : > { %v6047_v7 = vpop.f32.mrf.mxu0 }
 0x75b   : > { %v8685_v26 = vsel %vm1227_vm7, %v6047_v7, -inf }
 0x75c   : > { %2338 = vmax.xlane.f32.xlu1 %v8673_v8  ;;  %v2270_v14 = vpop.f32.mrf.mxu0 }
 0x75d   : > { %v8679_v15 = vsel %vm1225_vm8, %v2270_v14, -inf }
 0x75e   : > { %2340 = vmax.xlane.f32.xlu0 %v8679_v15  ;;  %v6050_v40 = vpop.f32.mrf.mxu0 }
 0x75f   : > { %v8691_v58 = vsel %vm1230_vm14, %v6050_v40, -inf }
 0x760   : > { %2344 = vmax.xlane.f32.xlu1 %v8685_v26  ;;  %v2283_v24 = vpop.f32.mrf.mxu0 }
 0x761   : > { %v8697_v14 = vsel %vm1228_vm15, %v2283_v24, -inf }
 0x762   : > { %v6051_v61 = vpop.f32.mrf.mxu0 }
 0x763   : > { %v8703_v7 = vsel %vm10562_vm12, %v6051_v61, -inf  ;;  %vm10713_vm12 = vcmp.le.s32.totalorder %v8024_v59, %v8149_v35  ;;  %v10731_v35 = vld [vmem:[#allocation36_spill] sm:$0xff] }
 0x764   : > { %2350 = vmax.xlane.f32.xlu1 %v8691_v58  ;;  %v2286_v53 = vpop.f32.mrf.mxu0 }
 0x765   : > { %v8709_v40 = vsel %vm1229_vm9, %v2286_v53, -inf }
 0x766   : > { %v6054_v24 = vpop.f32.mrf.mxu0 }
 0x767   : > { %v8719_v61 = vsel %vm1234_vm10, %v6054_v24, -inf }
 0x768   : > { %2346 = vmax.xlane.f32.xlu1 %v8697_v14  ;;  %v2299_v33 = vpop.f32.mrf.mxu0 }
 0x769   : > { %v8725_v53 = vsel %vm1232_vm11, %v2299_v33, -inf }
 0x76a   : > { %v6055_v2 = vpop.f32.mrf.mxu0 }
 0x76c   : > { %2352 = vmax.xlane.f32.xlu1 %v8703_v7 }
 0x770   : > { %2348 = vmax.xlane.f32.xlu1 %v8709_v40 }
 0x774   : > { %2623 = vrot.lane.b32.xlu0 %v7978_v55, %s7337_s3  ;;  %v2302_v55 = vpop.f32.mrf.mxu0 }
 0x775   : > { %v8737_v24 = vsel %vm10713_vm12, %v2302_v55, -inf }
 0x781   : > { %2625 = vrot.lane.b32.xlu1 %v7968_v47, %s7337_s3  ;;  %v8731_v47 = vsel %vm10679_vm13, %v6055_v2, -inf }
 0x793   : > { %2358 = vmax.xlane.f32.xlu0 %v8719_v61 }
 0x797   : > { %2354 = vmax.xlane.f32.xlu0 %v8725_v53 }
 0x79b   : > { %2360 = vmax.xlane.f32.xlu0 %v8731_v47 }
 0x7a5   : > { %2356 = vmax.xlane.f32.xlu1 %v8737_v24 }
 0x7b1   : > { %2621 = vrot.lane.b32.xlu0 %v7988_v23, %s7337_s3 }
 0x7b5   : > { %2603 = vrot.lane.b32.xlu0 %v7803_v17, %s7337_s3  ;;  %v8768_v17 = vpop.permute.xlu0 %2631 }
 0x7b6   : > { %2619 = vrot.lane.b32.xlu1 %v7808_v20, %s7337_s3  ;;  %v8772_v20 = vpop.permute.xlu1 %2629 }
 0x7b9   : > { %2607 = vrot.lane.b32.xlu0 %v10681_v10, %s7337_s3 }
 0x7ba   : > { %2605 = vrot.lane.b32.xlu1 %v10680_v48, %s7337_s3 }
 0x7bd   : > { %2611 = vrot.lane.b32.xlu0 %v10682_v63, %s7337_s3 }
 0x7be   : > { %2609 = vrot.lane.b32.xlu1 %v7845_v11, %s7337_s3  ;;  %v8776_v11 = vpop.permute.xlu0 %2627 }
 0x7c1   : > { %2615 = vrot.lane.b32.xlu0 %v10683_v16, %s7337_s3 }
 0x7c2   : > { %2613 = vrot.lane.b32.xlu1 %v7884_v45, %s7337_s3 }
 0x7c5   : > { %2944 = vrot.lane.b32.xlu0 %v7862_v38, %s7337_s3 }
 0x7c6   : > { %2617 = vrot.lane.b32.xlu1 %v7934_v46, %s7337_s3 }
 0x7c9   : > { %2936 = vrot.lane.b32.xlu0 %v7907_v19, %s7337_s3 }
 0x7ca   : > { %2946 = vrot.lane.b32.xlu1 %v10684_v50, %s7337_s3  ;;  %v10714_v50 = vld [vmem:[#allocation32_spill] sm:$0xff] }
 0x7ce   : > { %2942 = vrot.lane.b32.xlu1 %v10685_v18, %s7337_s3 }
 0x7d2   : > { %2940 = vrot.lane.b32.xlu1 %v10686_v1, %s7337_s3 }
 0x7d6   : > { %2938 = vrot.lane.b32.xlu1 %v10687_v27, %s7337_s3 }
 0x7d9   : > { %v2335_v38 = vpop.xlane.xlu1 %2334 }
 0x7da   : > { %2934 = vrot.lane.b32.xlu1 %v10689_v43, %s7337_s3  ;;  %v2364_v16 = vsub.f32 %v8643_v52, %v2335_v38  ;;  %v10715_v38 = vld [vmem:[#allocation25_spill] sm:$0xff] }
 0x7db   : > { %v2331_v45 = vpop.xlane.xlu0 %2330 }
 0x7dc   : > { %v2362_v19 = vsub.f32 %v8649_v62, %v2331_v45  ;;  %v2382_v27 = vmul.f32 1.442695, %v2364_v16 }
 0x7dd   : > { %v2337_v46 = vpop.xlane.xlu1 %2336 }
 0x7de   : > { %v2365_v23 = vsub.f32 %v8655_v49, %v2337_v46  ;;  %2932 = vrot.lane.b32.xlu1 %v10714_v50, %s7337_s3  ;;  %v2378_v63 = vmul.f32 1.442695, %v2362_v19 }
 0x7e0   : > { %v2384_v48 = vmul.f32 1.442695, %v2365_v23  ;;  %6689 = vpow2.f32 %v2378_v63 }
 0x7e1   : > { %v2333_v10 = vpop.xlane.xlu1 %2332  ;;  %v2343_v1 = vpop.xlane.xlu0 %2342 }
 0x7e2   : > { %v2363_v18 = vsub.f32 %v8661_v28, %v2333_v10  ;;  %6691 = vpow2.f32 %v2384_v48  ;;  %v2368_v2 = vsub.f32 %v8666_v42, %v2343_v1  ;;  %v10716_v42 = vld [vmem:[#allocation23_spill] sm:$0xff] }
 0x7e4   : > { %v2380_v43 = vmul.f32 1.442695, %v2363_v18  ;;  %v2390_v45 = vmul.f32 1.442695, %v2368_v2 }
 0x7e5   : > { %v2339_v33 = vpop.xlane.xlu1 %2338 }
 0x7e6   : > { %6693 = vpow2.f32 %v2380_v43  ;;  %v2366_v62 = vsub.f32 %v8673_v8, %v2339_v33 }
 0x7e7   : > { %6695 = vpow2.f32 %v2382_v27  ;;  %v2341_v49 = vpop.xlane.xlu0 %2340 }
 0x7e8   : > { %v2386_v55 = vmul.f32 1.442695, %v2366_v62  ;;  %v2367_v52 = vsub.f32 %v8679_v15, %v2341_v49  ;;  %1938 = vadd.xlane.f32.xlu0 %v10715_v38 }
 0x7e9   : > { %v2345_v28 = vpop.xlane.xlu1 %2344 }
 0x7ea   : > { %v2388_v19 = vmul.f32 1.442695, %v2367_v52  ;;  %v2369_v46 = vsub.f32 %v8685_v26, %v2345_v28  ;;  %6697 = vpow2.f32 %v2386_v55  ;;  %v10718_v28 = vld [vmem:[#allocation29_spill] sm:$0xff] }
 0x7ec   : > { %6699 = vpow2.f32 %v2388_v19  ;;  %v2392_v23 = vmul.f32 1.442695, %v2369_v46  ;;  %1942 = vadd.xlane.f32.xlu0 %v10716_v42  ;;  %v2675_v19 = vsel %vm1236_vm0, %v8772_v20, 0 }
 0x7ed   : > { %6701 = vpow2.f32 %v2390_v45  ;;  %v2351_v50 = vpop.xlane.xlu1 %2350  ;;  %v6690_v8 = vpop.eup %6689  ;;  %v10717_v45 = vld [vmem:[#allocation22_spill] sm:$0xff] }
 0x7ee   : > { %6703 = vpow2.f32 %v2392_v23  ;;  %v2372_v43 = vsub.f32 %v8691_v58, %v2351_v50 }
 0x7ef   : > { %v6692_v15 = vpop.eup %6691 }
 0x7f0   : > { %1946 = vadd.xlane.f32.xlu0 %v8556_v60  ;;  %v2681_v60 = vsel %vm1236_vm0, %v8604_v21, 0  ;;  %v2398_v55 = vmul.f32 1.442695, %v2372_v43 }
 0x7f1   : > { %v2347_v16 = vpop.xlane.xlu1 %2346 }
 0x7f2   : > { %v2370_v10 = vsub.f32 %v8697_v14, %v2347_v16  ;;  %v2672_v16 = vsel %vm1236_vm0, %v8776_v11, 0 }
 0x7f3   : > { %v6694_v63 = vpop.eup %6693 }
 0x7f4   : > { %v6696_v48 = vpop.eup %6695  ;;  %1950 = vadd.xlane.f32.xlu0 %v8553_v13  ;;  %v2458_v26 = vpack.c.bf16 %v6694_v63, %v6690_v8  ;;  %v2394_v33 = vmul.f32 1.442695, %v2370_v10 }
 0x7f5   : > { %v2353_v18 = vpop.xlane.xlu1 %2352  ;;  %v2459_v1 = vpack.c.bf16 %v6692_v15, %v6696_v48 }
 0x7f6   : > { %v2373_v27 = vsub.f32 %v8703_v7, %v2353_v18  ;;  %6072 = vmatprep.mubr.bf16.mxu1 %v2458_v26  ;;  %6705 = vpow2.f32 %v2394_v33 }
 0x7f7   : > { %6073 = vmatmul.mubr.bf16.vlgmr.msra.gmra.mxu1 %v2459_v1  ;;  %v8799_v2 = vpop.eup %6697 }
 0x7f8   : > { %6089 = vmatpush3.bf16.xpose.msra.mxu1 %v2681_v60  ;;  %2416 = vadd.xlane.f32.xlu0 %v6692_v15  ;;  %v2400_v13 = vmul.f32 1.442695, %v2373_v27 }
 0x7f9   : > { %v8801_v14 = vpop.eup %6699  ;;  %6225 = vmatprep.subr.msk.bf16.mxu1 %vm1236_vm0, %v8768_v17  ;;  %v2349_v62 = vpop.xlane.xlu1 %2348 }
 0x7fa   : > { %v8805_v7 = vpop.eup %6701  ;;  %v2371_v58 = vsub.f32 %v8709_v40, %v2349_v62  ;;  %v2460_v49 = vpack.c.bf16 %v8801_v14, %v8799_v2  ;;  %6707 = vpow2.f32 %v2400_v13  ;;  %v2678_v40 = vsel %vm1236_vm0, %v8768_v17, 0 }
 0x7fb   : > { %v8810_v21 = vpop.eup %6703 }
 0x7fc   : > { %v2396_v52 = vmul.f32 1.442695, %v2371_v58  ;;  %2412 = vadd.xlane.f32.xlu0 %v6694_v63  ;;  %6076 = vmatprep.mubr.bf16.mxu1 %v2460_v49  ;;  %v2461_v38 = vpack.c.bf16 %v8810_v21, %v8805_v7  ;;  %v2624_v63 = vpop.permute.xlu0 %2623 }
 0x7fd   : > { %v2626_v15 = vpop.permute.xlu1 %2625 }
 0x7fe   : > { %6709 = vpow2.f32 %v2396_v52 }
 0x7ff   : > { %6711 = vpow2.f32 %v2398_v55  ;;  %6077 = vmatmul.mubr.bf16.gmra.mxu1 %v2461_v38 }
 0x800   : > { %6091 = vmatpush3.bf16.xpose.msra.mxu1 %v2678_v40 }
 0x801   : > { %6226 = vmatprep.subr.msk.bf16.mxu1 %vm1236_vm0, %v8772_v20 }
 0x802   : > { %1936 = vadd.xlane.f32.xlu1 %v10717_v45 }
 0x803   : > { %v8822_v46 = vpop.eup %6705 }
 0x806   : > { %1940 = vadd.xlane.f32.xlu1 %v10718_v28 }
 0x807   : > { %v8826_v23 = vpop.eup %6707 }
 0x808   : > { %6093 = vmatpush3.bf16.xpose.msra.mxu1 %v2675_v19 }
 0x809   : > { %6227 = vmatprep.subr.msk.bf16.mxu1 %vm1236_vm0, %v8776_v11 }
 0x80a   : > { %1944 = vadd.xlane.f32.xlu1 %v8551_v0  ;;  %v2669_v0 = vsel %vm1236_vm0, %v2626_v15, 0 }
 0x80b   : > { %v8829_v17 = vpop.eup %6709 }
 0x80c   : > { %v8831_v42 = vpop.eup %6711  ;;  %v2462_v50 = vpack.c.bf16 %v8829_v17, %v8822_v46 }
 0x80d   : > { %v2463_v20 = vpack.c.bf16 %v8826_v23, %v8831_v42 }
 0x80e   : > { %1948 = vadd.xlane.f32.xlu1 %v8558_v41  ;;  %6080 = vmatprep.mubr.bf16.mxu1 %v2462_v50  ;;  %v2666_v41 = vsel %vm1236_vm0, %v2624_v63, 0 }
 0x80f   : > { %6081 = vmatmul.mubr.bf16.gmra.mxu1 %v2463_v20 }
 0x810   : > { %6095 = vmatpush3.bf16.xpose.msra.mxu1 %v2672_v16 }
 0x811   : > { %6228 = vmatprep.subr.msk.bf16.mxu1 %vm1236_vm0, %v2626_v15 }
 0x812   : > { %2414 = vadd.xlane.f32.xlu1 %v6696_v48 }
 0x816   : > { %2410 = vadd.xlane.f32.xlu1 %v6690_v8 }
 0x818   : > { %6097 = vmatpush3.bf16.xpose.msra.mxu1 %v2669_v0 }
 0x819   : > { %6229 = vmatprep.subr.msk.bf16.mxu1 %vm1236_vm0, %v2624_v63 }
 0x81c   : > { %v2359_v10 = vpop.xlane.xlu0 %2358 }
 0x81d   : > { %v2376_v27 = vsub.f32 %v8719_v61, %v2359_v10 }
 0x81f   : > { %v2406_v62 = vmul.f32 1.442695, %v2376_v27 }
 0x820   : > { %6099 = vmatpush3.bf16.xpose.msra.mxu1 %v2666_v41  ;;  %v2355_v26 = vpop.xlane.xlu0 %2354 }
 0x821   : > { %v2374_v11 = vsub.f32 %v8725_v53, %v2355_v26 }
 0x823   : > { %v2402_v43 = vmul.f32 1.442695, %v2374_v11 }
 0x824   : > { %v2361_v18 = vpop.xlane.xlu0 %2360 }
 0x825   : > { %v2377_v8 = vsub.f32 %v8731_v47, %v2361_v18  ;;  %6713 = vpow2.f32 %v2402_v43 }
 0x827   : > { %v2408_v60 = vmul.f32 1.442695, %v2377_v8 }
 0x828   : > { %v2622_v1 = vpop.permute.xlu0 %2621 }
 0x829   : > { %6230 = vmatprep.subr.msk.bf16.mxu1 %vm1236_vm0, %v2622_v1  ;;  %v2663_v48 = vsel %vm1236_vm0, %v2622_v1, 0  ;;  %6715 = vpow2.f32 %v2408_v60 }
 0x82a   : > { %6101 = vmatpush3.bf16.xpose.msra.mxu1 %v2663_v48  ;;  %v10719_v48 = vmov 0  }
 0x82c   : > { %v2604_v58 = vpop.permute.xlu0 %2603 }
 0x82e   : > { %v2357_v33 = vpop.xlane.xlu1 %2356 }
 0x82f   : > { %v2375_v13 = vsub.f32 %v8737_v24, %v2357_v33 }
 0x830   : > { %v2608_v47 = vpop.permute.xlu0 %2607 }
 0x831   : > { %v2404_v49 = vmul.f32 1.442695, %v2375_v13 }
 0x832   : > { %v2620_v53 = vpop.permute.xlu1 %2619  ;;  %v8852_v40 = vpop.eup %6713 }
 0x833   : > { %6717 = vpow2.f32 %v2404_v49  ;;  %6231 = vmatprep.subr.msk.bf16.mxu1 %vm1236_vm0, %v2620_v53  ;;  %v2660_v55 = vsel %vm1236_vm0, %v2620_v53, 0 }
 0x834   : > { %6719 = vpow2.f32 %v2406_v62  ;;  %6103 = vmatpush3.bf16.xpose.msra.mxu1 %v2660_v55  ;;  %v2612_v38 = vpop.permute.xlu0 %2611 }
 0x836   : > { %v2606_v61 = vpop.permute.xlu1 %2605  ;;  %v8854_v45 = vpop.eup %6715 }
 0x838   : > { %v2616_v20 = vpop.permute.xlu0 %2615 }
 0x83a   : > { %v2610_v52 = vpop.permute.xlu1 %2609 }
 0x83c   : > { %v2945_v63 = vpop.permute.xlu0 %2944 }
 0x83e   : > { %v2614_v24 = vpop.permute.xlu1 %2613 }
 0x840   : > { %v8856_v28 = vpop.eup %6717  ;;  %v2937_v18 = vpop.permute.xlu0 %2936 }
 0x841   : > { %v8858_v19 = vpop.eup %6719  ;;  %v2464_v50 = vpack.c.bf16 %v8856_v28, %v8852_v40 }
 0x842   : > { %v2618_v16 = vpop.permute.xlu1 %2617  ;;  %v2465_v15 = vpack.c.bf16 %v8854_v45, %v8858_v19 }
 0x843   : > { %6084 = vmatprep.mubr.bf16.mxu1 %v2464_v50 }
 0x844   : > { %6085 = vmatmul.mubr.bf16.gmra.mxu1 %v2465_v15 }
 0x845   : > { %6104 = vmatprep.mubr.msk.bf16.mxu1 %vm1236_vm0, %v2604_v58 }
 0x846   : > { %v2947_v0 = vpop.permute.xlu1 %2946 }
 0x847   : > { %6120 = vmatprep.subr.bf16.mxu0 %v2947_v0 }
 0x848   : > { %6121 = vmatpush3.bf16.msra.mxu0 %v2947_v0 }
 0x849   : > { %6122 = vmatprep.subr.bf16.mxu0 %v2945_v63 }
 0x84a   : > { %v2943_v10 = vpop.permute.xlu1 %2942 }
 0x84c   : > { %6105 = vmatmul.mubr.msk.bf16.vlgmr.msra.gmra.mxu1 %vm1236_vm0, %v2606_v61  ;;  %6123 = vmatpush3.bf16.msra.mxu0 %v2945_v63 }
 0x84d   : > { %6108 = vmatprep.mubr.msk.bf16.mxu1 %vm1236_vm0, %v2608_v47  ;;  %6124 = vmatprep.subr.bf16.mxu0 %v2943_v10 }
 0x84e   : > { %v2941_v41 = vpop.permute.xlu1 %2940 }
 0x850   : > { %6125 = vmatpush3.bf16.msra.mxu0 %v2943_v10 }
 0x851   : > { %6126 = vmatprep.subr.bf16.mxu0 %v2941_v41 }
 0x852   : > { %v2939_v26 = vpop.permute.xlu1 %2938 }
 0x854   : > { %6109 = vmatmul.mubr.msk.bf16.gmra.mxu1 %vm1236_vm0, %v2610_v52  ;;  %6127 = vmatpush3.bf16.msra.mxu0 %v2941_v41 }
 0x855   : > { %6112 = vmatprep.mubr.msk.bf16.mxu1 %vm1236_vm0, %v2612_v38  ;;  %6128 = vmatprep.subr.bf16.mxu0 %v2939_v26 }
 0x856   : > { %v2935_v1 = vpop.permute.xlu1 %2934 }
 0x858   : > { %6129 = vmatpush3.bf16.msra.mxu0 %v2939_v26 }
 0x859   : > { %6130 = vmatprep.subr.bf16.mxu0 %v2937_v18 }
 0x85a   : > { %v2933_v11 = vpop.permute.xlu1 %2932 }
 0x85c   : > { %6113 = vmatmul.mubr.msk.bf16.gmra.mxu1 %vm1236_vm0, %v2614_v24  ;;  %6131 = vmatpush3.bf16.msra.mxu0 %v2937_v18 }
 0x85d   : > { %6116 = vmatprep.mubr.msk.bf16.mxu1 %vm1236_vm0, %v2616_v20  ;;  %6132 = vmatprep.subr.bf16.mxu0 %v2935_v1 }
 0x860   : > { %6133 = vmatpush3.bf16.msra.mxu0 %v2935_v1 }
 0x861   : > { %6134 = vmatprep.subr.bf16.mxu0 %v2933_v11 }
 0x864   : > { %6117 = vmatmul.mubr.msk.bf16.gmra.mxu1 %vm1236_vm0, %v2618_v16  ;;  %6135 = vmatpush3.bf16.msra.mxu0 %v2933_v11 }
 0x865   : > { %3979 = vmatprep.mubr.bf16.mxu1 %v10719_v48 }
 0x871   : > { %v8873_v8 = vpop.xlane.xlu0 %1938 }
 0x875   : > { %v8877_v43 = vpop.xlane.xlu0 %1942 }
 0x879   : > { %v8881_v33 = vpop.xlane.xlu0 %1946 }
 0x87d   : > { %v8885_v62 = vpop.xlane.xlu0 %1950 }
 0x881   : > { %v2417_v49 = vpop.xlane.xlu0 %2416 }
 0x882   : > { %6721 = vrcp.f32 %v2417_v49 }
 0x885   : > { %v2413_v55 = vpop.xlane.xlu0 %2412 }
 0x88b   : > { %v8875_v27 = vpop.xlane.xlu1 %1936 }
 0x88f   : > { %v8879_v60 = vpop.xlane.xlu1 %1940  ;;  %v6722_v38 = vpop.eup %6721 }
 0x893   : > { %v8883_v13 = vpop.xlane.xlu1 %1944 }
 0x897   : > { %v8887_v58 = vpop.xlane.xlu1 %1948 }
 0x89b   : > { %v2415_v53 = vpop.xlane.xlu1 %2414 }
 0x89c   : > { %6723 = vrcp.f32 %v2415_v53 }
 0x89d   : > { %6725 = vrcp.f32 %v2413_v55 }
 0x89f   : > { %v2411_v47 = vpop.xlane.xlu1 %2410 }
 0x8a0   : > { %6727 = vrcp.f32 %v2411_v47 }
 0x8a1   : > { %6729 = vrcp.f32 %v8875_v27 }
 0x8a2   : > { %6731 = vrcp.f32 %v8873_v8 }
 0x8a3   : > { %6733 = vrcp.f32 %v8879_v60 }
 0x8a4   : > { %6735 = vrcp.f32 %v8877_v43 }
 0x8a5   : > { %6737 = vrcp.f32 %v8883_v13 }
 0x8a6   : > { %6739 = vrcp.f32 %v8881_v33 }
 0x8a9   : > { %v6724_v24 = vpop.eup %6723 }
 0x8aa   : > { %v6726_v20 = vpop.eup %6725 }
 0x8ad   : > { %v6728_v0 = vpop.eup %6727 }
 0x8b7   : > { %v6074_v61 = vpop.f32.mrf.mxu1 }
 0x8b8   : > { %v8889_v16 = vmul.f32 %v6724_v24, %v6074_v61 }
 0x8b9   : > { %v2524_v52 = vpop.f32.mrf.mxu1 }
 0x8ba   : > { %v8893_v10 = vmul.f32 %v6728_v0, %v2524_v52 }
 0x8bb   : > { %v6075_v50 = vpop.f32.mrf.mxu1 }
 0x8bc   : > { %v8891_v15 = vmul.f32 %v6722_v38, %v6075_v50 }
 0x8bd   : > { %v2527_v63 = vpop.f32.mrf.mxu1 }
 0x8be   : > { %v8897_v26 = vmul.f32 %v6726_v20, %v2527_v63  ;;  %v10738_v8 = vpack.i.bf16 %v8891_v15, %v8889_v16 }
 0x8bf   : > { %v8901_v1 = vpop.f32.mrf.mxu1 }
 0x8c1   : > { %v8903_v11 = vpop.f32.mrf.mxu1 }
 0x8c3   : > { %v8905_v49 = vpop.f32.mrf.mxu1 }
 0x8c5   : > { %v8907_v53 = vpop.f32.mrf.mxu1 }
 0x8cf   : > { %v8909_v55 = vpop.f32.mrf.mxu1 }
 0x8d0   : > { %10720 = vst [vmem:[#allocation32_spill] sm:$0xff] %v8909_v55 }
 0x8d1   : > { %v8911_v47 = vpop.f32.mrf.mxu1 }
 0x8d3   : > { %v8913_v61 = vpop.f32.mrf.mxu1 }
 0x8d4   : > { %10721 = vst [vmem:[#allocation25_spill] sm:$0xff] %v8913_v61 }
 0x8d5   : > { %v8915_v52 = vpop.f32.mrf.mxu1 }
 0x904   : > { %v8917_v38 = vpop.f32.mrf.mxu1 }
 0x906   : > { %v8919_v24 = vpop.f32.mrf.mxu1 }
 0x908   : > { %v8921_v50 = vpop.f32.mrf.mxu1 }
 0x90a   : > { %v8923_v20 = vpop.f32.mrf.mxu1 }
 0x90c   : > { %v6106_v0 = vpop.f32.mrf.mxu1 }
 0x90d   : > { %v8928_v63 = vsel %vm1222_vm1, %v6106_v0, -inf  ;;  %vm10722_vm1 = vcmp.le.s32.totalorder %v8024_v59, %v8182_v39  ;;  %v10730_v59 = vld [vmem:[#allocation41_spill] sm:$0xff] }
 0x90e   : > { %2800 = vmax.xlane.f32.xlu0 %v8928_v63  ;;  %v2717_v41 = vpop.f32.mrf.mxu1 }
 0x90f   : > { %v8934_v48 = vsel %vm1220_vm2, %v2717_v41, -inf  ;;  %vm10723_vm2 = vmmov %vm10679_vm13 }
 0x910   : > { %v6107_v18 = vpop.f32.mrf.mxu1 }
 0x911   : > { %v8946_v0 = vsel %vm1223_vm3, %v6107_v18, -inf  ;;  %vm10724_vm3 = vmmov %vm10713_vm12 }
 0x912   : > { %2796 = vmax.xlane.f32.xlu0 %v8934_v48  ;;  %v2720_v55 = vpop.f32.mrf.mxu1 }
 0x913   : > { %v8940_v61 = vsel %vm1221_vm4, %v2720_v55, -inf  ;;  %v10734_v55 = vld [vmem:[#allocation33_spill] sm:$0xff]  ;;  %vm3277_vm4 = vcmask 523264  }
 0x914   : > { %2798 = vmax.xlane.f32.xlu1 %v8940_v61  ;;  %v6110_v56 = vpop.f32.mrf.mxu1 }
 0x915   : > { %v8957_v37 = vsel %vm1226_vm5, %v6110_v56, -inf  ;;  %v10735_v56 = vld [vmem:[#allocation40_spill] sm:$0xff]  ;;  %vm3294_vm5 = vcmask 785408  }
 0x916   : > { %2802 = vmax.xlane.f32.xlu0 %v8946_v0  ;;  %v2733_v41 = vpop.f32.mrf.mxu1 }
 0x918   : > { %2418 = vadd.xlane.f32.xlu1 %v8799_v2  ;;  %v6111_v25 = vpop.f32.mrf.mxu1 }
 0x91a   : > { %2420 = vadd.xlane.f32.xlu0 %v8801_v14  ;;  %v2736_v32 = vpop.f32.mrf.mxu1 }
 0x91b   : > { %v8963_v2 = vsel %vm1225_vm8, %v2736_v32, -inf }
 0x91c   : > { %2422 = vadd.xlane.f32.xlu1 %v8805_v7  ;;  %v6114_v14 = vpop.f32.mrf.mxu1  ;;  %v8969_v7 = vsel %vm1224_vm6, %v2733_v41, -inf }
 0x91e   : > { %2424 = vadd.xlane.f32.xlu0 %v8810_v21  ;;  %v2749_v9 = vpop.f32.mrf.mxu1  ;;  %v8985_v21 = vsel %vm1230_vm14, %v6114_v14, -inf }
 0x920   : > { %1952 = vadd.xlane.f32.xlu1 %v8568_v44  ;;  %v8976_v44 = vsel %vm1227_vm7, %v6111_v25, -inf  ;;  %v6115_v51 = vpop.f32.mrf.mxu1 }
 0x921   : > { %v9009_v30 = vsel %vm10722_vm1, %v6115_v51, -inf }
 0x922   : > { %2808 = vmax.xlane.f32.xlu0 %v8957_v37  ;;  %v2752_v36 = vpop.f32.mrf.mxu1 }
 0x923   : > { %v8991_v25 = vsel %vm1229_vm9, %v2752_v36, -inf  ;;  %v10740_v36 = vld [vmem:[#allocation31_spill] sm:$0xff] }
 0x924   : > { %2806 = vmax.xlane.f32.xlu1 %v8963_v2  ;;  %v6118_v54 = vpop.f32.mrf.mxu1 }
 0x925   : > { %v9003_v22 = vsel %vm1234_vm10, %v6118_v54, -inf }
 0x926   : > { %2804 = vmax.xlane.f32.xlu0 %v8969_v7 }
 0x928   : > { %1956 = vadd.xlane.f32.xlu1 %v8576_v3  ;;  %v2765_v3 = vpop.f32.mrf.mxu1 }
 0x929   : > { %v9015_v34 = vsel %vm1232_vm11, %v2765_v3, -inf }
 0x92a   : > { %2810 = vmax.xlane.f32.xlu0 %v8976_v44  ;;  %v6119_v29 = vpop.f32.mrf.mxu1 }
 0x92b   : > { %v9025_v39 = vsel %vm10723_vm2, %v6119_v29, -inf }
 0x92c   : > { %2426 = vadd.xlane.f32.xlu1 %v8822_v46  ;;  %v2768_v46 = vpop.f32.mrf.mxu1 }
 0x92d   : > { %v9032_v12 = vsel %vm10724_vm3, %v2768_v46, -inf }
 0x92e   : > { %1954 = vadd.xlane.f32.xlu0 %v8574_v57  ;;  %v8997_v57 = vsel %vm1228_vm15, %v2749_v9, -inf  ;;  %v10739_v9 = vld [vmem:[#allocation27_spill] sm:$0xff] }
 0x930   : > { %2430 = vadd.xlane.f32.xlu1 %v8831_v42 }
 0x932   : > { %2816 = vmax.xlane.f32.xlu0 %v8985_v21 }
 0x934   : > { %2814 = vmax.xlane.f32.xlu1 %v8991_v25 }
 0x936   : > { %2812 = vmax.xlane.f32.xlu0 %v8997_v57 }
 0x938   : > { %2824 = vmax.xlane.f32.xlu1 %v9003_v22 }
 0x93a   : > { %2818 = vmax.xlane.f32.xlu0 %v9009_v30 }
 0x93c   : > { %2820 = vmax.xlane.f32.xlu1 %v9015_v34 }
 0x93e   : > { %1958 = vadd.xlane.f32.xlu0 %v8570_v4  ;;  %v10725_v4 = vld [vmem:[#allocation35_spill] sm:$0xff] }
 0x940   : > { %1960 = vadd.xlane.f32.xlu1 %v8586_v31  ;;  %v10727_v31 = vld [vmem:[#allocation37_spill] sm:$0xff] }
 0x942   : > { %2428 = vadd.xlane.f32.xlu0 %v8829_v17  ;;  %v10729_v17 = vld [vmem:[#allocation38_spill] sm:$0xff] }
 0x944   : > { %1964 = vadd.xlane.f32.xlu1 %v8590_v6  ;;  %v10728_v6 = vld [vmem:[#allocation26_spill] sm:$0xff] }
 0x946   : > { %2826 = vmax.xlane.f32.xlu0 %v9025_v39 }
 0x948   : > { %2434 = vadd.xlane.f32.xlu1 %v8852_v40  ;;  %v10732_v40 = vld [vmem:[#allocation34_spill] sm:$0xff] }
 0x94a   : > { %2822 = vmax.xlane.f32.xlu0 %v9032_v12 }
 0x94c   : > { %2438 = vadd.xlane.f32.xlu1 %v8858_v19  ;;  %v10733_v19 = vld [vmem:[#allocation28_spill] sm:$0xff] }
 0x94e   : > { %2432 = vadd.xlane.f32.xlu0 %v8826_v23  ;;  %v6730_v23 = vpop.eup %6729 }
 0x94f   : > { %v6732_v42 = vpop.eup %6731  ;;  %v2121_v18 = vmul.f32 %v6730_v23, %v10733_v19  ;;  %v10745_v19 = vld [vmem:[#allocation45_spill] sm:$0xff] }
 0x950   : > { %1478 = vadd.xlane.f32.xlu1 %v10725_v4  ;;  %v2122_v27 = vmul.f32 %v6732_v42, %v10734_v55  ;;  %v6734_v32 = vpop.eup %6733  ;;  %v10744_v42 = vld [vmem:[#allocation68_spill] sm:$0xff] }
 0x951   : > { %v6736_v14 = vpop.eup %6735  ;;  %v2123_v51 = vmul.f32 %v6734_v32, %v10739_v9 }
 0x952   : > { %1962 = vadd.xlane.f32.xlu0 %v10726_v5  ;;  %v6353_v41 = vpack.i.bf16 %v2122_v27, %v2121_v18  ;;  %v2124_v60 = vmul.f32 %v6736_v14, %v10740_v36  ;;  %v10746_v27 = vld [vmem:[#allocation46_spill] sm:$0xff] }
 0x954   : > { %1482 = vadd.xlane.f32.xlu1 %v10727_v31  ;;  %v6358_v54 = vpack.i.bf16 %v2124_v60, %v2123_v51 }
 0x956   : > { %1966 = vadd.xlane.f32.xlu0 %v10728_v6  ;;  %v6738_v6 = vpop.eup %6737 }
 0x958   : > { %1486 = vadd.xlane.f32.xlu1 %v10729_v17  ;;  %v6740_v17 = vpop.eup %6739 }
 0x95a   : > { %2436 = vadd.xlane.f32.xlu0 %v8856_v28  ;;  %v10736_v28 = vld [vmem:[#allocation39_spill] sm:$0xff] }
 0x95c   : > { %1490 = vadd.xlane.f32.xlu1 %v10730_v59  ;;  %v10742_v59 = vld [vmem:[#allocation43_spill] sm:$0xff] }
 0x95e   : > { %2440 = vadd.xlane.f32.xlu0 %v8854_v45  ;;  %v10737_v45 = vpack.i.bf16 %v8897_v26, %v8893_v10  ;;  %v10741_v26 = vld [vmem:[#allocation42_spill] sm:$0xff] }
 0x962   : > { %1480 = vadd.xlane.f32.xlu0 %v10731_v35 }
 0x966   : > { %1484 = vadd.xlane.f32.xlu0 %v10732_v40  ;;  %v2126_v40 = vmul.f32 %v6740_v17, %v10744_v42  ;;  %v10747_v17 = vld [vmem:[#allocation30_spill] sm:$0xff] }
 0x96a   : > { %1488 = vadd.xlane.f32.xlu0 %v10735_v56 }
 0x96d   : > { %6354 = vrot.lane.b32.xlu1 %v6353_v41, %s7337_s3 }
 0x96e   : > { %1492 = vadd.xlane.f32.xlu0 %v10736_v28 }
 0x971   : > { %6364 = vrot.lane.b32.xlu1 %v10737_v45, %s7336_s15 }
 0x975   : > { %6369 = vrot.lane.b32.xlu1 %v10738_v8, %s7336_s15 }
 0x984   : > { %6359 = vrot.lane.b32.xlu0 %v6358_v54, %s7337_s3 }
 0x997   : > { %v2801_v43 = vpop.xlane.xlu0 %2800 }
 0x998   : > { %v2830_v10 = vsub.f32 %v8928_v63, %v2801_v43 }
 0x999   : > { %1496 = vadd.xlane.f32.xlu1 %v10741_v26 }
 0x99a   : > { %v2848_v15 = vmul.f32 1.442695, %v2830_v10 }
 0x99b   : > { %v2797_v16 = vpop.xlane.xlu0 %2796 }
 0x99c   : > { %v2828_v3 = vsub.f32 %v8934_v48, %v2797_v16  ;;  %6741 = vpow2.f32 %v2848_v15  ;;  %v10743_v48 = vld [vmem:[#allocation66_spill] sm:$0xff] }
 0x99d   : > { %v2799_v29 = vpop.xlane.xlu1 %2798  ;;  %v2125_v23 = vmul.f32 %v6738_v6, %v10743_v48 }
 0x99e   : > { %v2844_v46 = vmul.f32 1.442695, %v2828_v3  ;;  %v2829_v4 = vsub.f32 %v8940_v61, %v2799_v29 }
 0x99f   : > { %v2803_v5 = vpop.xlane.xlu0 %2802  ;;  %v6373_v18 = vpack.i.bf16 %v2126_v40, %v2125_v23 }
 0x9a0   : > { %v2846_v31 = vmul.f32 1.442695, %v2829_v4  ;;  %v2831_v13 = vsub.f32 %v8946_v0, %v2803_v5  ;;  %6743 = vpow2.f32 %v2844_v46 }
 0x9a1   : > { %v2419_v33 = vpop.xlane.xlu1 %2418 }
 0x9a2   : > { %6745 = vpow2.f32 %v2846_v31  ;;  %v2850_v63 = vmul.f32 1.442695, %v2831_v13 }
 0x9a3   : > { %6747 = vrcp.f32 %v2419_v33  ;;  %1494 = vadd.xlane.f32.xlu0 %v10742_v59  ;;  %v2421_v35 = vpop.xlane.xlu0 %2420 }
 0x9a4   : > { %6749 = vpow2.f32 %v2850_v63 }
 0x9a5   : > { %6751 = vrcp.f32 %v2421_v35  ;;  %v2423_v61 = vpop.xlane.xlu1 %2422 }
 0x9a6   : > { %6753 = vrcp.f32 %v2423_v61 }
 0x9a7   : > { %1498 = vadd.xlane.f32.xlu0 %v10745_v19  ;;  %v2425_v0 = vpop.xlane.xlu0 %2424 }
 0x9a8   : > { %6755 = vrcp.f32 %v2425_v0 }
 0x9a9   : > { %v9078_v55 = vpop.xlane.xlu1 %1952  ;;  %6757 = vrcp.f32 %v8887_v58  ;;  %v9083_v41 = vpop.eup %6741 }
 0x9aa   : > { %6374 = vrot.lane.b32.xlu1 %v6373_v18, %s7337_s3  ;;  %6759 = vrcp.f32 %v8885_v62 }
 0x9ab   : > { %1500 = vadd.xlane.f32.xlu0 %v10746_v27  ;;  %v2809_v56 = vpop.xlane.xlu0 %2808 }
 0x9ac   : > { %v2834_v14 = vsub.f32 %v8957_v37, %v2809_v56 }
 0x9ad   : > { %v2807_v28 = vpop.xlane.xlu1 %2806  ;;  %v9086_v45 = vpop.eup %6743 }
 0x9ae   : > { %v2833_v8 = vsub.f32 %v8963_v2, %v2807_v28  ;;  %v2856_v37 = vmul.f32 1.442695, %v2834_v14 }
 0x9af   : > { %v9089_v32 = vpop.eup %6745  ;;  %v2805_v9 = vpop.xlane.xlu0 %2804 }
 0x9b0   : > { %v6748_v51 = vpop.eup %6747  ;;  %v2854_v36 = vmul.f32 1.442695, %v2833_v8  ;;  %v2832_v58 = vsub.f32 %v8969_v7, %v2805_v9  ;;  %v2924_v60 = vpack.c.bf16 %v9089_v32, %v9086_v45 }
 0x9b1   : > { %v9095_v54 = vpop.eup %6749  ;;  %v9097_v62 = vpop.xlane.xlu1 %1956  ;;  %v2591_v15 = vmul.f32 %v6748_v51, %v8903_v11 }
 0x9b2   : > { %v6752_v43 = vpop.eup %6751  ;;  %v2852_v10 = vmul.f32 1.442695, %v2832_v58  ;;  %6136 = vmatprep.mubr.bf16.mxu0 %v2924_v60  ;;  %v2925_v2 = vpack.c.bf16 %v9095_v54, %v9083_v41  ;;  %6761 = vpow2.f32 %v2854_v36 }
 0x9b3   : > { %v6754_v26 = vpop.eup %6753  ;;  %v2811_v16 = vpop.xlane.xlu0 %2810  ;;  %v2592_v7 = vmul.f32 %v6752_v43, %v8907_v53 }
 0x9b4   : > { %6763 = vpow2.f32 %v2852_v10  ;;  %v2835_v3 = vsub.f32 %v8976_v44, %v2811_v16  ;;  %6137 = vmatmul.mubr.bf16.vlgmr.msra.gmra.mxu0 %v2925_v2  ;;  %v2593_v31 = vmul.f32 %v6754_v26, %v8901_v1  ;;  %v10748_v1 = vld [vmem:[#allocation67_spill] sm:$0xff] }
 0x9b5   : > { %v6756_v29 = vpop.eup %6755  ;;  %v9104_v46 = vpop.xlane.xlu1 %2426  ;;  %v6383_v4 = vpack.i.bf16 %v2592_v7, %v2591_v15  ;;  %6765 = vpow2.f32 %v2856_v37 }
 0x9b6   : > { %v2858_v5 = vmul.f32 1.442695, %v2835_v3  ;;  %v2594_v13 = vmul.f32 %v6756_v29, %v8905_v49  ;;  %v6758_v11 = vpop.eup %6757 }
 0x9b7   : > { %6384 = vrot.lane.b32.xlu1 %v6383_v4, %s7336_s15  ;;  %v9109_v6 = vpop.xlane.xlu0 %1954  ;;  %v6760_v44 = vpop.eup %6759  ;;  %v2127_v59 = vmul.f32 %v6758_v11, %v10747_v17 }
 0x9b8   : > { %6767 = vpow2.f32 %v2858_v5  ;;  %v6388_v53 = vpack.i.bf16 %v2594_v13, %v2593_v31  ;;  %v2128_v48 = vmul.f32 %v6760_v44, %v10748_v1 }
 0x9b9   : > { %v9111_v33 = vpop.xlane.xlu1 %2430 }
 0x9ba   : > { %v6378_v42 = vpack.i.bf16 %v2128_v48, %v2127_v59 }
 0x9bb   : > { %6389 = vrot.lane.b32.xlu1 %v6388_v53, %s7336_s15  ;;  %v2817_v63 = vpop.xlane.xlu0 %2816 }
 0x9bc   : > { %v2838_v23 = vsub.f32 %v8985_v21, %v2817_v63 }
 0x9bd   : > { %v2815_v35 = vpop.xlane.xlu1 %2814 }
 0x9be   : > { %v2837_v49 = vsub.f32 %v8991_v25, %v2815_v35  ;;  %v2864_v8 = vmul.f32 1.442695, %v2838_v23  ;;  %v10749_v35 = vld [vmem:[#allocation47_spill] sm:$0xff] }
 0x9bf   : > { %v2813_v61 = vpop.xlane.xlu0 %2812  ;;  %v9118_v40 = vpop.eup %6761 }
 0x9c0   : > { %v2862_v19 = vmul.f32 1.442695, %v2837_v49  ;;  %v2836_v0 = vsub.f32 %v8997_v57, %v2813_v61 }
 0x9c1   : > { %v9121_v18 = vpop.eup %6763  ;;  %v2825_v27 = vpop.xlane.xlu1 %2824  ;;  %6379 = vrot.lane.b32.xlu0 %v6378_v42, %s7337_s3 }
 0x9c2   : > { %v2860_v56 = vmul.f32 1.442695, %v2836_v0  ;;  %v2926_v28 = vpack.c.bf16 %v9118_v40, %v9121_v18  ;;  %6769 = vpow2.f32 %v2862_v19  ;;  %v9126_v21 = vpop.eup %6765  ;;  %v2842_v10 = vsub.f32 %v9003_v22, %v2825_v27 }
 0x9c3   : > { %v2819_v25 = vpop.xlane.xlu0 %2818 }
 0x9c4   : > { %6771 = vpow2.f32 %v2860_v56  ;;  %v2839_v14 = vsub.f32 %v9009_v30, %v2819_v25  ;;  %6140 = vmatprep.mubr.bf16.mxu0 %v2926_v28  ;;  %v2872_v7 = vmul.f32 1.442695, %v2842_v10 }
 0x9c5   : > { %v9129_v9 = vpop.eup %6767  ;;  %v2821_v57 = vpop.xlane.xlu1 %2820  ;;  %6773 = vpow2.f32 %v2864_v8  ;;  %v10750_v8 = vld [vmem:[#allocation51_spill] sm:$0xff] }
 0x9c6   : > { %v2866_v51 = vmul.f32 1.442695, %v2839_v14  ;;  %v2927_v36 = vpack.c.bf16 %v9129_v9, %v9126_v21  ;;  %v2840_v30 = vsub.f32 %v9015_v34, %v2821_v57  ;;  %v10751_v57 = vld [vmem:[#allocation74_spill] sm:$0xff] }
 0x9c7   : > { %v9133_v58 = vpop.xlane.xlu0 %1958 }
 0x9c8   : > { %6775 = vpow2.f32 %v2866_v51  ;;  %6141 = vmatmul.mubr.bf16.gmra.mxu0 %v2927_v36  ;;  %v2868_v29 = vmul.f32 1.442695, %v2840_v30  ;;  %v10752_v36 = vld [vmem:[#allocation76_spill] sm:$0xff] }
 0x9c9   : > { %v1961_v60 = vpop.xlane.xlu1 %1960  ;;  %6777 = vpow2.f32 %v2872_v7  ;;  %v10753_v7 = vld [vmem:[#allocation73_spill] sm:$0xff] }
 0x9ca   : > { %6779 = vpow2.f32 %v2868_v29  ;;  %v10754_v29 = vld [vmem:[#allocation75_spill] sm:$0xff] }
 0x9cb   : > { %v9135_v43 = vpop.xlane.xlu0 %2428 }
 0x9cd   : > { %v1965_v2 = vpop.xlane.xlu1 %1964 }
 0x9cf   : > { %v2827_v26 = vpop.xlane.xlu0 %2826  ;;  %v9139_v37 = vpop.eup %6769 }
 0x9d0   : > { %v2843_v16 = vsub.f32 %v9025_v39, %v2827_v26 }
 0x9d1   : > { %v9142_v15 = vpop.eup %6771  ;;  %v2435_v3 = vpop.xlane.xlu1 %2434 }
 0x9d2   : > { %v2928_v4 = vpack.c.bf16 %v9139_v37, %v9142_v15  ;;  %v2874_v5 = vmul.f32 1.442695, %v2843_v16  ;;  %v9146_v13 = vpop.eup %6773 }
 0x9d3   : > { %v2823_v31 = vpop.xlane.xlu0 %2822 }
 0x9d4   : > { %v2841_v22 = vsub.f32 %v9032_v12, %v2823_v31  ;;  %6144 = vmatprep.mubr.bf16.mxu0 %v2928_v4  ;;  %6781 = vpow2.f32 %v2874_v5 }
 0x9d5   : > { %v9149_v34 = vpop.eup %6775  ;;  %v2439_v11 = vpop.xlane.xlu1 %2438 }
 0x9d6   : > { %v2870_v39 = vmul.f32 1.442695, %v2841_v22  ;;  %v2929_v53 = vpack.c.bf16 %v9149_v34, %v9146_v13  ;;  %v6778_v48 = vpop.eup %6777 }
 0x9d7   : > { %v9153_v44 = vpop.xlane.xlu0 %2432  ;;  %v9159_v49 = vpop.eup %6779 }
 0x9d8   : > { %6783 = vpow2.f32 %v2870_v39  ;;  %6145 = vmatmul.mubr.bf16.gmra.mxu0 %v2929_v53 }
 0x9d9   : > { %6785 = vrcp.f32 %v1961_v60  ;;  %v1479_v63 = vpop.xlane.xlu1 %1478 }
 0x9da   : > { %6787 = vrcp.f32 %v1479_v63 }
 0x9db   : > { %v1963_v17 = vpop.xlane.xlu0 %1962 }
 0x9dc   : > { %6789 = vrcp.f32 %v1963_v17 }
 0x9dd   : > { %v1483_v12 = vpop.xlane.xlu1 %1482  ;;  %6791 = vrcp.f32 %v1965_v2 }
 0x9df   : > { %2880 = vadd.xlane.f32.xlu1 %v9083_v41  ;;  %v1967_v59 = vpop.xlane.xlu0 %1966 }
 0x9e0   : > { %6793 = vrcp.f32 %v1967_v59  ;;  %1502 = vadd.xlane.f32.xlu0 %v10749_v35  ;;  %v10755_v35 = vld [vmem:[#allocation53_spill] sm:$0xff] }
 0x9e1   : > { %v9157_v1 = vpop.xlane.xlu1 %1486  ;;  %6795 = vrcp.f32 %v2435_v3  ;;  %v9162_v61 = vpop.eup %6781 }
 0x9e3   : > { %2876 = vadd.xlane.f32.xlu1 %v9086_v45  ;;  %v2437_v23 = vpop.xlane.xlu0 %2436  ;;  %v2931_v45 = vpack.c.bf16 %v9162_v61, %v6778_v48 }
 0x9e4   : > { %6797 = vrcp.f32 %v2437_v23  ;;  %2882 = vadd.xlane.f32.xlu0 %v9095_v54 }
 0x9e5   : > { %v9165_v42 = vpop.eup %6783  ;;  %v9167_v41 = vpop.xlane.xlu1 %1490  ;;  %6799 = vrcp.f32 %v2439_v11 }
 0x9e6   : > { %v6786_v19 = vpop.eup %6785  ;;  %v2930_v0 = vpack.c.bf16 %v9165_v42, %v9159_v49 }
 0x9e7   : > { %v6788_v27 = vpop.eup %6787  ;;  %2888 = vadd.xlane.f32.xlu1 %v9126_v21  ;;  %v2441_v56 = vpop.xlane.xlu0 %2440  ;;  %v9176_v51 = vmul.f32 %v6786_v19, %v10751_v57 }
 0x9e8   : > { %6801 = vrcp.f32 %v2441_v56  ;;  %2878 = vadd.xlane.f32.xlu0 %v9089_v32  ;;  %6148 = vmatprep.mubr.bf16.mxu0 %v2930_v0  ;;  %v1631_v25 = vmul.f32 %v6788_v27, %v10750_v8  ;;  %v10756_v27 = vld [vmem:[#allocation50_spill] sm:$0xff] }
 0x9e9   : > { %v6790_v54 = vpop.eup %6789  ;;  %v6355_v28 = vpop.permute.xlu1 %6354  ;;  %6149 = vmatmul.mubr.bf16.gmra.mxu0 %v2931_v45  ;;  %6803 = vrcp.f32 %v1483_v12 }
 0x9ea   : > { %v6356_v14 = vunpack.i.l.bf16 %v6355_v28  ;;  %v9179_v60 = vmul.f32 %v6790_v54, %v10752_v36  ;;  %v6792_v21 = vpop.eup %6791 }
 0x9eb   : > { %2884 = vadd.xlane.f32.xlu1 %v9121_v18  ;;  %v1481_v10 = vpop.xlane.xlu0 %1480  ;;  %v9187_v3 = vmul.f32 %v6792_v21, %v10753_v7  ;;  %v10758_v21 = vld [vmem:[#allocation49_spill] sm:$0xff] }
 0x9ec   : > { %v3261_v32 = vsel %vm1236_vm0, %v1631_v25, %v6356_v14  ;;  %6805 = vrcp.f32 %v1481_v10  ;;  %2890 = vadd.xlane.f32.xlu0 %v9129_v9  ;;  %v6443_v2 = vpack.i.bf16 %v9179_v60, %v9176_v51 }
 0x9ed   : > { %v6794_v30 = vpop.eup %6793  ;;  %v6365_v26 = vpop.permute.xlu1 %6364 }
 0x9ee   : > { %v6366_v16 = vunpack.i.l.bf16 %v6365_v26  ;;  %v9190_v4 = vmul.f32 %v6794_v30, %v10754_v29  ;;  %v6796_v18 = vpop.eup %6795  ;;  %v6367_v0 = vunpack.i.h.bf16 %v6365_v26 }
 0x9ef   : > { %2896 = vadd.xlane.f32.xlu1 %v9146_v13  ;;  %v1485_v5 = vpop.xlane.xlu0 %1484  ;;  %v9200_v11 = vmul.f32 %v6796_v18, %v8919_v24 }
 0x9f0   : > { %v9194_v31 = vsel %vm3277_vm4, %v3261_v32, %v6366_v16  ;;  %6807 = vrcp.f32 %v1485_v5  ;;  %2886 = vadd.xlane.f32.xlu0 %v9118_v40  ;;  %v6448_v9 = vpack.i.bf16 %v9190_v4, %v9187_v3  ;;  %v10759_v16 = vld [vmem:[#allocation55_spill] sm:$0xff]  ;;  %v10760_v5 = vld [vmem:[#allocation57_spill] sm:$0xff] }
 0x9f1   : > { %v6798_v22 = vpop.eup %6797  ;;  %v6370_v19 = vpop.permute.xlu1 %6369  ;;  %6809 = vrcp.f32 %v9157_v1 }
 0x9f2   : > { %v9203_v39 = vmul.f32 %v6798_v22, %v8923_v20  ;;  %v6800_v53 = vpop.eup %6799  ;;  %v6371_v54 = vunpack.i.l.bf16 %v6370_v19  ;;  %v6372_v57 = vunpack.i.h.bf16 %v6370_v19 }
 0x9f3   : > { %2892 = vadd.xlane.f32.xlu1 %v9142_v15  ;;  %v1489_v13 = vpop.xlane.xlu0 %1488  ;;  %v9210_v17 = vmul.f32 %v6800_v53, %v8917_v38 }
 0x9f4   : > { %2898 = vadd.xlane.f32.xlu0 %v9149_v34  ;;  %v6453_v63 = vpack.i.bf16 %v9203_v39, %v9200_v11  ;;  %v6357_v34 = vunpack.i.h.bf16 %v6355_v28  ;;  %v10757_v28 = vld [vmem:[#allocation52_spill] sm:$0xff]  ;;  %6811 = vrcp.f32 %v1489_v13 }
 0x9f5   : > { %v6802_v40 = vpop.eup %6801  ;;  %6813 = vrcp.f32 %v9167_v41 }
 0x9f6   : > { %v9213_v12 = vmul.f32 %v6802_v40, %v8921_v50  ;;  %v6804_v20 = vpop.eup %6803 }
 0x9f7   : > { %2904 = vadd.xlane.f32.xlu1 %v6778_v48  ;;  %v1493_v24 = vpop.xlane.xlu0 %1492  ;;  %v1633_v48 = vmul.f32 %v6804_v20, %v10756_v27  ;;  %v10762_v27 = vld [vmem:[#allocation56_spill] sm:$0xff] }
 0x9f8   : > { %2894 = vadd.xlane.f32.xlu0 %v9139_v37  ;;  %v6458_v15 = vpack.i.bf16 %v9213_v12, %v9210_v17  ;;  %6815 = vrcp.f32 %v1493_v24 }
 0x9f9   : > { %v6806_v59 = vpop.eup %6805 }
 0x9fa   : > { %v1632_v23 = vmul.f32 %v6806_v59, %v10755_v35 }
 0x9fb   : > { %2900 = vadd.xlane.f32.xlu1 %v9159_v49  ;;  %v6360_v38 = vpop.permute.xlu0 %6359 }
 0x9fc   : > { %v3262_v50 = vsel %vm1236_vm0, %v1632_v23, %v6357_v34  ;;  %v6361_v56 = vunpack.i.l.bf16 %v6360_v38  ;;  %2906 = vadd.xlane.f32.xlu0 %v9162_v61  ;;  %v6362_v25 = vunpack.i.h.bf16 %v6360_v38  ;;  %v10761_v38 = vld [vmem:[#allocation54_spill] sm:$0xff] }
 0x9fd   : > { %v6808_v37 = vpop.eup %6807  ;;  %v9224_v45 = vsel %vm3277_vm4, %v3262_v50, %v6367_v0 }
 0x9fe   : > { %v1634_v8 = vmul.f32 %v6808_v37, %v10757_v28  ;;  %v3263_v14 = vsel %vm1236_vm0, %v1633_v48, %v6361_v56  ;;  %v6810_v32 = vpop.eup %6809 }
 0x9ff   : > { %v9229_v49 = vsel %vm3277_vm4, %v3263_v14, %v6371_v54  ;;  %v1635_v7 = vmul.f32 %v6810_v32, %v10759_v16  ;;  %v6507_v32 = vld [vmem:[#allocation10 + $0x28] sm:$0xff]  }
 0xa00   : > { %v3264_v36 = vsel %vm1236_vm0, %v1634_v8, %v6362_v25  ;;  %2902 = vadd.xlane.f32.xlu0 %v9165_v42 }
 0xa01   : > { %v9234_v61 = vsel %vm3277_vm4, %v3264_v36, %v6372_v57  ;;  %v6812_v30 = vpop.eup %6811  ;;  %v6505_v36 = vld [vmem:[#allocation10 + $0x38] sm:$0xff]  }
 0xa02   : > { %v1636_v22 = vmul.f32 %v6812_v30, %v10760_v5  ;;  %v6814_v41 = vpop.eup %6813  ;;  %6152 = vmatprep.subr.bf16.mxu0 %v6505_v36  ;;  %v6508_v30 = vld [vmem:[#allocation10 + $0x20] sm:$0xff]  }
 0xa03   : > { %v1637_v50 = vmul.f32 %v6814_v41, %v10761_v38  ;;  %6153 = vmatpush3.bf16.msra.mxu0 %v6505_v36 }
 0xa04   : > { %1506 = vadd.xlane.f32.xlu0 %v10758_v21  ;;  %v6506_v21 = vld [vmem:[#allocation10 + $0x30] sm:$0xff]  }
 0xa05   : > { %v6816_v24 = vpop.eup %6815  ;;  %6154 = vmatprep.subr.bf16.mxu0 %v6506_v21 }
 0xa06   : > { %v1638_v48 = vmul.f32 %v6816_v24, %v10762_v27 }
 0xa07   : > { %6155 = vmatpush3.bf16.msra.mxu0 %v6506_v21 }
 0xa08   : > { %6156 = vmatprep.subr.bf16.mxu0 %v6507_v32 }
 0xa0b   : > { %6157 = vmatpush3.bf16.msra.mxu0 %v6507_v32 }
 0xa0c   : > { %6158 = vmatprep.subr.bf16.mxu0 %v6508_v30 }
 0xa0f   : > { %6159 = vmatpush3.bf16.msra.mxu0 %v6508_v30 }
 0xa22   : > { %v9238_v10 = vpop.xlane.xlu1 %1496 }
 0xa26   : > { %v6375_v26 = vpop.permute.xlu1 %6374 }
 0xa27   : > { %v6377_v29 = vunpack.i.h.bf16 %v6375_v26  ;;  %v6376_v18 = vunpack.i.l.bf16 %v6375_v26  ;;  %v6509_v26 = vld [vmem:[#allocation10 + $0x18] sm:$0xff]  }
 0xa28   : > { %6160 = vmatprep.subr.bf16.mxu0 %v6509_v26 }
 0xa29   : > { %v3265_v42 = vsel %vm1236_vm0, %v1635_v7, %v6376_v18  ;;  %v3266_v53 = vsel %vm1236_vm0, %v1636_v22, %v6377_v29  ;;  %v6510_v7 = vld [vmem:[#allocation10 + $0x10] sm:$0xff]   ;;  %6161 = vmatpush3.bf16.msra.mxu0 %v6509_v26 }
 0xa2a   : > { %v6385_v1 = vpop.permute.xlu1 %6384  ;;  %6162 = vmatprep.subr.bf16.mxu0 %v6510_v7 }
 0xa2b   : > { %v6387_v13 = vunpack.i.h.bf16 %v6385_v1  ;;  %v6386_v40 = vunpack.i.l.bf16 %v6385_v1 }
 0xa2c   : > { %v9245_v20 = vpop.xlane.xlu0 %1494 }
 0xa2d   : > { %v9248_v59 = vsel %vm3277_vm4, %v3265_v42, %v6386_v40  ;;  %v9251_v34 = vsel %vm3277_vm4, %v3266_v53, %v6387_v13  ;;  %6163 = vmatpush3.bf16.msra.mxu0 %v6510_v7  ;;  %v6511_v53 = vld [vmem:[#allocation10 + $0x8] sm:$0xff]   ;;  %v6512_v40 = vld [vmem:[#allocation10] sm:$0xff]  }
 0xa2e   : > { %v6390_v19 = vpop.permute.xlu1 %6389  ;;  %6164 = vmatprep.subr.bf16.mxu0 %v6511_v53 }
 0xa2f   : > { %v6392_v54 = vunpack.i.h.bf16 %v6390_v19  ;;  %v6391_v28 = vunpack.i.l.bf16 %v6390_v19 }
 0xa30   : > { %v9253_v35 = vpop.xlane.xlu0 %1498 }
 0xa31   : > { %6165 = vmatpush3.bf16.msra.mxu0 %v6511_v53 }
 0xa32   : > { %6166 = vmatprep.subr.bf16.mxu0 %v6512_v40 }
 0xa34   : > { %v9255_v23 = vpop.xlane.xlu0 %1500 }
 0xa35   : > { %6167 = vmatpush3.bf16.msra.mxu0 %v6512_v40 }
 0xa38   : > { %v6380_v0 = vpop.permute.xlu0 %6379 }
 0xa39   : > { %v6382_v56 = vunpack.i.h.bf16 %v6380_v0  ;;  %v6381_v37 = vunpack.i.l.bf16 %v6380_v0 }
 0xa3b   : > { %v3268_v8 = vsel %vm1236_vm0, %v1638_v48, %v6382_v56  ;;  %v3267_v25 = vsel %vm1236_vm0, %v1637_v50, %v6381_v37 }
 0xa3c   : > { %v9262_v14 = vsel %vm3277_vm4, %v3267_v25, %v6391_v28  ;;  %v9265_v57 = vsel %vm3277_vm4, %v3268_v8, %v6392_v54 }
 0xa68   : > { %v2881_v16 = vpop.xlane.xlu1 %2880 }
 0xa69   : > { %v9267_v29 = vpop.xlane.xlu0 %1502  ;;  %6817 = vrcp.f32 %v2881_v16 }
 0xa6c   : > { %v2877_v18 = vpop.xlane.xlu1 %2876 }
 0xa6d   : > { %v2883_v5 = vpop.xlane.xlu0 %2882 }
 0xa6e   : > { %6819 = vrcp.f32 %v2883_v5 }
 0xa6f   : > { %6821 = vrcp.f32 %v2877_v18 }
 0xa70   : > { %v2889_v1 = vpop.xlane.xlu1 %2888 }
 0xa71   : > { %v2879_v22 = vpop.xlane.xlu0 %2878 }
 0xa72   : > { %6823 = vrcp.f32 %v2879_v22 }
 0xa74   : > { %v6138_v42 = vpop.f32.mrf.mxu0  ;;  %v2885_v48 = vpop.xlane.xlu1 %2884 }
 0xa75   : > { %v2891_v41 = vpop.xlane.xlu0 %2890  ;;  %6825 = vrcp.f32 %v2885_v48 }
 0xa76   : > { %v2990_v13 = vpop.f32.mrf.mxu0  ;;  %v6818_v24 = vpop.eup %6817 }
 0xa77   : > { %v3055_v38 = vmul.f32 %v6818_v24, %v6138_v42  ;;  %v10763_v42 = vld [vmem:[#allocation44_spill] sm:$0xff] }
 0xa78   : > { %v6139_v0 = vpop.f32.mrf.mxu0 }
 0xa79   : > { %v2887_v37 = vpop.xlane.xlu0 %2886 }
 0xa7a   : > { %v2993_v28 = vpop.f32.mrf.mxu0  ;;  %6827 = vrcp.f32 %v2887_v37 }
 0xa7b   : > { %v6820_v19 = vpop.eup %6819  ;;  %6829 = vrcp.f32 %v2891_v41 }
 0xa7c   : > { %v3056_v50 = vmul.f32 %v6820_v19, %v6139_v0  ;;  %v6822_v27 = vpop.eup %6821  ;;  %6831 = vrcp.f32 %v9109_v6  ;;  %v2897_v19 = vpop.xlane.xlu1 %2896  ;;  %v10764_v0 = vld [vmem:[#allocation48_spill] sm:$0xff] }
 0xa7d   : > { %v3053_v8 = vmul.f32 %v6822_v27, %v2990_v13  ;;  %6833 = vrcp.f32 %v2889_v1  ;;  %v2899_v13 = vpop.xlane.xlu0 %2898 }
 0xa7e   : > { %v6393_v56 = vpack.i.bf16 %v3056_v50, %v3055_v38  ;;  %6835 = vrcp.f32 %v9078_v55  ;;  %v10766_v50 = vld [vmem:[#allocation70_spill] sm:$0xff] }
 0xa7f   : > { %v6824_v54 = vpop.eup %6823  ;;  %6837 = vrcp.f32 %v9135_v43  ;;  %v10765_v43 = vld [vmem:[#allocation72_spill] sm:$0xff] }
 0xa80   : > { %v3054_v25 = vmul.f32 %v6824_v54, %v2993_v28  ;;  %6394 = vrot.lane.b32.xlu1 %v6393_v56, %s7335_s9  ;;  %6839 = vrcp.f32 %v9104_v46  ;;  %v2893_v56 = vpop.xlane.xlu1 %2892 }
 0xa81   : > { %6841 = vrcp.f32 %v9153_v44 }
 0xa82   : > { %v6398_v36 = vpack.i.bf16 %v3054_v25, %v3053_v8  ;;  %v6826_v26 = vpop.eup %6825  ;;  %6843 = vrcp.f32 %v9111_v33  ;;  %v2895_v33 = vpop.xlane.xlu0 %2894 }
 0xa83   : > { %6845 = vrcp.f32 %v2899_v13 }
 0xa84   : > { %6399 = vrot.lane.b32.xlu0 %v6398_v36, %s7335_s9  ;;  %6847 = vrcp.f32 %v9133_v58 }
 0xa85   : > { %6849 = vrcp.f32 %v2897_v19 }
 0xa86   : > { %6851 = vrcp.f32 %v9097_v62  ;;  %v2907_v62 = vpop.xlane.xlu0 %2906 }
 0xa87   : > { %v6828_v16 = vpop.eup %6827  ;;  %6853 = vrcp.f32 %v2895_v33 }
 0xa88   : > { %v6142_v21 = vpop.f32.mrf.mxu0  ;;  %v6830_v53 = vpop.eup %6829  ;;  %6855 = vrcp.f32 %v2893_v56 }
 0xa89   : > { %v6832_v40 = vpop.eup %6831  ;;  %6857 = vrcp.f32 %v2907_v62 }
 0xa8a   : > { %v3006_v32 = vpop.f32.mrf.mxu0  ;;  %v6834_v41 = vpop.eup %6833  ;;  %v2130_v44 = vmul.f32 %v6832_v40, %v10765_v43 }
 0xa8b   : > { %v3057_v18 = vmul.f32 %v6826_v26, %v3006_v32  ;;  %v3059_v6 = vmul.f32 %v6834_v41, %v6142_v21  ;;  %v6836_v1 = vpop.eup %6835  ;;  %v10767_v32 = vld [vmem:[#allocation25_spill] sm:$0xff]  ;;  %v2905_v26 = vpop.xlane.xlu1 %2904  ;;  %v10769_v41 = vld [vmem:[#allocation71_spill] sm:$0xff] }
 0xa8c   : > { %v6143_v30 = vpop.f32.mrf.mxu0  ;;  %v6838_v38 = vpop.eup %6837  ;;  %v2129_v27 = vmul.f32 %v6836_v1, %v10766_v50  ;;  %6859 = vrcp.f32 %v2905_v26 }
 0xa8d   : > { %v3060_v24 = vmul.f32 %v6830_v53, %v6143_v30  ;;  %v6840_v48 = vpop.eup %6839  ;;  %v2596_v58 = vmul.f32 %v6838_v38, %v8915_v52  ;;  %v2903_v40 = vpop.xlane.xlu0 %2902 }
 0xa8e   : > { %v3009_v7 = vpop.f32.mrf.mxu0  ;;  %v6413_v54 = vpack.i.bf16 %v2130_v44, %v2129_v27  ;;  %v6842_v28 = vpop.eup %6841  ;;  %v2595_v8 = vmul.f32 %v6840_v48, %v8911_v47  ;;  %6861 = vrcp.f32 %v2903_v40  ;;  %v10771_v40 = vld [vmem:[#allocation59_spill] sm:$0xff] }
 0xa8f   : > { %v3058_v5 = vmul.f32 %v6828_v16, %v3009_v7  ;;  %v6403_v46 = vpack.i.bf16 %v3060_v24, %v3059_v6  ;;  %v6844_v25 = vpop.eup %6843  ;;  %v2598_v30 = vmul.f32 %v6842_v28, %v10767_v32  ;;  %v10768_v16 = vld [vmem:[#allocation32_spill] sm:$0xff]  ;;  %v2901_v6 = vpop.xlane.xlu1 %2900 }
 0xa90   : > { %v6423_v21 = vpack.i.bf16 %v2596_v58, %v2595_v8  ;;  %v2597_v7 = vmul.f32 %v6844_v25, %v10768_v16  ;;  %v6846_v52 = vpop.eup %6845  ;;  %6863 = vrcp.f32 %v2901_v6 }
 0xa91   : > { %v6408_v22 = vpack.i.bf16 %v3058_v5, %v3057_v18  ;;  %v6848_v5 = vpop.eup %6847  ;;  %v1507_v12 = vpop.xlane.xlu0 %1506  ;;  %6865 = vrcp.f32 %v9238_v10 }
 0xa92   : > { %v6850_v47 = vpop.eup %6849  ;;  %v2132_v19 = vmul.f32 %v6848_v5, %v10769_v41  ;;  %6867 = vrcp.f32 %v9245_v20 }
 0xa93   : > { %6409 = vrot.lane.b32.xlu0 %v6408_v22, %s7335_s9  ;;  %v6852_v13 = vpop.eup %6851  ;;  %6869 = vrcp.f32 %v9253_v35 }
 0xa94   : > { %v6854_v44 = vpop.eup %6853  ;;  %6871 = vrcp.f32 %v9255_v23 }
 0xa95   : > { %v6856_v50 = vpop.eup %6855  ;;  %6873 = vrcp.f32 %v9267_v29 }
 0xa96   : > { %6875 = vrcp.f32 %v1507_v12 }
 0xa98   : > { %v6146_v55 = vpop.f32.mrf.mxu0 }
 0xa99   : > { %v3063_v24 = vmul.f32 %v6850_v47, %v6146_v55  ;;  %v6858_v55 = vpop.eup %6857 }
 0xa9a   : > { %v3022_v37 = vpop.f32.mrf.mxu0  ;;  %v6860_v58 = vpop.eup %6859 }
 0xa9b   : > { %v3061_v27 = vmul.f32 %v6856_v50, %v3022_v37  ;;  %v6862_v3 = vpop.eup %6861 }
 0xa9c   : > { %v6147_v36 = vpop.f32.mrf.mxu0 }
 0xa9d   : > { %v3064_v22 = vmul.f32 %v6846_v52, %v6147_v36 }
 0xa9e   : > { %v3025_v18 = vpop.f32.mrf.mxu0 }
 0xa9f   : > { %v6438_v1 = vpack.i.bf16 %v3064_v22, %v3063_v24  ;;  %v3062_v38 = vmul.f32 %v6854_v44, %v3025_v18  ;;  %v10772_v24 = vld [vmem:[#allocation61_spill] sm:$0xff] }
 0xaa1   : > { %v6433_v56 = vpack.i.bf16 %v3062_v38, %v3061_v27 }
 0xaa4   : > { %1504 = vadd.xlane.f32.xlu1 %v10763_v42  ;;  %v6428_v42 = vpack.i.bf16 %v2598_v30, %v2597_v7 }
 0xaa9   : > { %v6150_v53 = vpop.f32.mrf.mxu0 }
 0xaaa   : > { %v3067_v28 = vmul.f32 %v6860_v58, %v6150_v53 }
 0xab2   : > { %1508 = vadd.xlane.f32.xlu0 %v10764_v0  ;;  %v3038_v0 = vpop.f32.mrf.mxu0 }
 0xab4   : > { %v6151_v48 = vpop.f32.mrf.mxu0 }
 0xab5   : > { %6404 = vrot.lane.b32.xlu1 %v6403_v46, %s7335_s9  ;;  %v10770_v46 = vld [vmem:[#allocation69_spill] sm:$0xff] }
 0xab6   : > { %v2131_v43 = vmul.f32 %v6852_v13, %v10770_v46  ;;  %v3041_v8 = vpop.f32.mrf.mxu0  ;;  %v10774_v46 = vld [vmem:[#allocation60_spill] sm:$0xff] }
 0xab7   : > { %v3066_v4 = vmul.f32 %v6862_v3, %v3041_v8 }
 0xab8   : > { %v6418_v33 = vpack.i.bf16 %v2132_v19, %v2131_v43 }
 0xab9   : > { %6414 = vrot.lane.b32.xlu1 %v6413_v54, %s7337_s3  ;;  %v3068_v54 = vmul.f32 %v6858_v55, %v6151_v48 }
 0xabb   : > { %v6468_v37 = vpack.i.bf16 %v3068_v54, %v3067_v28 }
 0xabd   : > { %6424 = vrot.lane.b32.xlu1 %v6423_v21, %s7336_s15 }
 0xac1   : > { %6429 = vrot.lane.b32.xlu1 %v6428_v42, %s7336_s15 }
 0xac5   : > { %6439 = vrot.lane.b32.xlu1 %v6438_v1, %s7335_s9  ;;  %v10773_v1 = vld [vmem:[#allocation58_spill] sm:$0xff] }
 0xac8   : > { %6419 = vrot.lane.b32.xlu0 %v6418_v33, %s7337_s3 }
 0xac9   : > { %6449 = vrot.lane.b32.xlu1 %v6448_v9, %s7337_s3  ;;  %v6864_v9 = vpop.eup %6863 }
 0xaca   : > { %v3065_v25 = vmul.f32 %v6864_v9, %v3038_v0  ;;  %v6866_v47 = vpop.eup %6865 }
 0xacb   : > { %v6868_v20 = vpop.eup %6867  ;;  %v1640_v41 = vmul.f32 %v6866_v47, %v10772_v24  ;;  %v10778_v47 = vld [vmem:[#allocation65_spill] sm:$0xff] }
 0xacc   : > { %6434 = vrot.lane.b32.xlu0 %v6433_v56, %s7335_s9  ;;  %v6463_v17 = vpack.i.bf16 %v3066_v4, %v3065_v25  ;;  %v6870_v23 = vpop.eup %6869 }
 0xacd   : > { %6459 = vrot.lane.b32.xlu1 %v6458_v15, %s7336_s15  ;;  %v6872_v53 = vpop.eup %6871  ;;  %v1641_v0 = vmul.f32 %v6870_v23, %v10773_v1 }
 0xace   : > { %v1642_v43 = vmul.f32 %v6872_v53, %v10774_v46 }
 0xad0   : > { %6444 = vrot.lane.b32.xlu0 %v6443_v2, %s7337_s3 }
 0xad1   : > { %6469 = vrot.lane.b32.xlu1 %v6468_v37, %s7335_s9 }
 0xad4   : > { %6454 = vrot.lane.b32.xlu0 %v6453_v63, %s7336_s15 }
 0xad8   : > { %6464 = vrot.lane.b32.xlu0 %v6463_v17, %s7335_s9  ;;  %s10397_s9 = scalar_lea.vmem [#allocation14], %s5427_s30  ;;  %s5575_s30 = sshll.u32 %s7432_s14, 11 }
 0xad9   : > { %s5284_s15 = sshll.u32 %s10397_s9, 4  ;;  %s10447_s17 = scalar_lea.hbm %s10507_s13, %s5575_s30  ;;  %s10449_s15 = int_to_ptr.vmem [resolvable:$true] %s5284_s15 }
 0xada   : > { %s7241_s1 = scalar_lea.vmem %s10449_s15, 2048  ;;  %s7338_s14 = smov [#allocation14]  }
 0xadb   : > { %p7242_p12 = scmp.ne.s32.totalorder %s10449_s15, %s7241_s1  ;;  %s7245_s11 = sshll.u32 %s7338_s14, 4  ;;  %s7246_s11 = int_to_ptr.vmem [resolvable:$false] %s7245_s11 }
 0xadc   : > { %s7247_s20 = scalar_lea.vmem %s7246_s11, 4096  ;;  %p7248_p5 = scmp.lt.s32.totalorder %s10449_s15, %s7246_s11 }
 0xadd   : > { %p7243_p0 = pnand %p7242_p12, %p10884_p13  ;;  %p7249_p8 = scmp.lt.s32.totalorder %s7247_s20, %s7241_s1 }
 0xadf   : > { %p7244_p2 = pneg %p7243_p0  ;;  %p7250_p7 = por %p7249_p8, %p7248_p5 }
 0xae1   : > { %p7251_p6 = pnand %p7250_p7, %p7244_p2 }
 0xaf2   : > { %v6395_v15 = vpop.permute.xlu1 %6394 }
 0xaf3   : > { %v6397_v62 = vunpack.i.h.bf16 %v6395_v15  ;;  %v6396_v51 = vunpack.i.l.bf16 %v6395_v15 }
 0xaf5   : > { %v3297_v60 = vsel %vm3294_vm5, %v9229_v49, %v6396_v51  ;;  %v3298_v2 = vsel %vm3294_vm5, %v9234_v61, %v6397_v62 }
 0xaf6   : > { %v3312_v36 = vpack.c.bf16 %v3298_v2, %v3297_v60  ;;  %v6400_v21 = vpop.permute.xlu0 %6399 }
 0xaf7   : > { %v6402_v32 = vunpack.i.h.bf16 %v6400_v21  ;;  %v6401_v30 = vunpack.i.l.bf16 %v6400_v21  ;;  %v6874_v21 = vpop.eup %6873 }
 0xaf9   : > { %v3295_v11 = vsel %vm3294_vm5, %v9194_v31, %v6401_v30  ;;  %v3296_v39 = vsel %vm3294_vm5, %v9224_v45, %v6402_v32 }
 0xafa   : > { %v3311_v63 = vpack.c.bf16 %v3296_v39, %v3295_v11  ;;  %v6876_v11 = vpop.eup %6875 }
 0xafc   : > { %6168 = vmatprep.mubr.bf16.mxu0 %v3311_v63 }
 0xafd   : > { %6169 = vmatmul.mubr.bf16.vlgmr.msra.gmra.mxu0 %v3312_v36 }
 0xb05   : > { %v6410_v26 = vpop.permute.xlu0 %6409 }
 0xb06   : > { %v6412_v16 = vunpack.i.h.bf16 %v6410_v26  ;;  %v6411_v7 = vunpack.i.l.bf16 %v6410_v26 }
 0xb08   : > { %v3299_v49 = vsel %vm3294_vm5, %v9248_v59, %v6411_v7  ;;  %v3300_v61 = vsel %vm3294_vm5, %v9251_v34, %v6412_v16  ;;  %v10775_v16 = vld [vmem:[#allocation64_spill] sm:$0xff] }
 0xb09   : > { %v3313_v52 = vpack.c.bf16 %v3300_v61, %v3299_v49 }
 0xb0b   : > { %6172 = vmatprep.mubr.bf16.mxu0 %v3313_v52 }
 0xb2d   : > { %v1505_v31 = vpop.xlane.xlu1 %1504 }
 0xb31   : > { %v6405_v45 = vpop.permute.xlu1 %6404 }
 0xb32   : > { %v6407_v18 = vunpack.i.h.bf16 %v6405_v45  ;;  %v6406_v5 = vunpack.i.l.bf16 %v6405_v45 }
 0xb34   : > { %v3301_v59 = vsel %vm3294_vm5, %v9262_v14, %v6406_v5  ;;  %v3302_v34 = vsel %vm3294_vm5, %v9265_v57, %v6407_v18  ;;  %v1639_v14 = vmul.f32 %v6868_v20, %v10771_v40  ;;  %v10776_v18 = vld [vmem:[#allocation62_spill] sm:$0xff] }
 0xb35   : > { %v6415_v22 = vpop.permute.xlu1 %6414  ;;  %v3314_v42 = vpack.c.bf16 %v3302_v34, %v3301_v59  ;;  %v1645_v5 = vmul.f32 %v6876_v11, %v10776_v18  ;;  %v10777_v59 = vld [vmem:[#allocation63_spill] sm:$0xff]  ;;  %v7045_v11 = vld [vmem:[%s7592_s21 + $0x20] sm:$0xff] }
 0xb36   : > { %v6417_v57 = vunpack.i.h.bf16 %v6415_v22  ;;  %v6416_v19 = vunpack.i.l.bf16 %v6415_v22  ;;  %v1643_v34 = vmul.f32 %v6874_v21, %v10777_v59 }
 0xb37   : > { %6173 = vmatmul.mubr.bf16.gmra.mxu0 %v3314_v42 }
 0xb38   : > { %v3270_v28 = vsel %vm1236_vm0, %v1640_v41, %v6417_v57  ;;  %v3269_v37 = vsel %vm1236_vm0, %v1639_v14, %v6416_v19 }
 0xb39   : > { %v6425_v10 = vpop.permute.xlu1 %6424 }
 0xb3a   : > { %v6427_v38 = vunpack.i.h.bf16 %v6425_v10  ;;  %v6426_v33 = vunpack.i.l.bf16 %v6425_v10 }
 0xb3b   : > { %v1509_v35 = vpop.xlane.xlu0 %1508 }
 0xb3c   : > { %6877 = vrcp.f32 %v1509_v35  ;;  %v3286_v15 = vsel %vm3277_vm4, %v3269_v37, %v6426_v33  ;;  %v3287_v62 = vsel %vm3277_vm4, %v3270_v28, %v6427_v38 }
 0xb3d   : > { %6879 = vrcp.f32 %v1505_v31  ;;  %v6430_v13 = vpop.permute.xlu1 %6429 }
 0xb3e   : > { %v6432_v50 = vunpack.i.h.bf16 %v6430_v13  ;;  %v6431_v27 = vunpack.i.l.bf16 %v6430_v13 }
 0xb3f   : > { %v6420_v6 = vpop.permute.xlu0 %6419 }
 0xb40   : > { %v6422_v29 = vunpack.i.h.bf16 %v6420_v6  ;;  %v6421_v44 = vunpack.i.l.bf16 %v6420_v6 }
 0xb41   : > { %v6440_v48 = vpop.permute.xlu1 %6439 }
 0xb42   : > { %v3272_v55 = vsel %vm1236_vm0, %v1642_v43, %v6422_v29  ;;  %v3271_v56 = vsel %vm1236_vm0, %v1641_v0, %v6421_v44  ;;  %v6442_v54 = vunpack.i.h.bf16 %v6440_v48  ;;  %v6441_v58 = vunpack.i.l.bf16 %v6440_v48 }
 0xb43   : > { %v6435_v8 = vpop.permute.xlu0 %6434  ;;  %v3288_v3 = vsel %vm3277_vm4, %v3271_v56, %v6431_v27  ;;  %v3289_v4 = vsel %vm3277_vm4, %v3272_v55, %v6432_v50  ;;  %v10779_v48 = vmov 0   ;;  %v9372_v56 = vld [vmem:[%s10500_s6] ss:$0 sm:$0xff] }
 0xb44   : > { %v6437_v9 = vunpack.i.h.bf16 %v6435_v8  ;;  %v6436_v25 = vunpack.i.l.bf16 %v6435_v8  ;;  %v3305_v17 = vsel %vm3294_vm5, %v3288_v3, %v6441_v58  ;;  %v3306_v12 = vsel %vm3294_vm5, %v3289_v4, %v6442_v54  ;;  %v7041_v8 = vld [vmem:[%s7592_s21] sm:$0xff] }
 0xb45   : > { %v6450_v51 = vpop.permute.xlu1 %6449  ;;  %v3316_v60 = vpack.c.bf16 %v3306_v12, %v3305_v17 }
 0xb46   : > { %v3303_v2 = vsel %vm3294_vm5, %v3286_v15, %v6436_v25  ;;  %v3304_v36 = vsel %vm3294_vm5, %v3287_v62, %v6437_v9  ;;  %v6452_v49 = vunpack.i.h.bf16 %v6450_v51  ;;  %v6451_v61 = vunpack.i.l.bf16 %v6450_v51  ;;  %v7042_v25 = vld [vmem:[%s7592_s21 + $0x10] sm:$0xff]  ;;  %v7043_v15 = vld [vmem:[%s7592_s21 + $0x8] sm:$0xff]  ;;  %v7044_v51 = vld [vmem:[%s7592_s21 + $0x18] sm:$0xff] }
 0xb47   : > { %v6445_v32 = vpop.permute.xlu0 %6444  ;;  %v3315_v30 = vpack.c.bf16 %v3304_v36, %v3303_v2 }
 0xb48   : > { %v6447_v52 = vunpack.i.h.bf16 %v6445_v32  ;;  %v6446_v31 = vunpack.i.l.bf16 %v6445_v32  ;;  %v3275_v14 = vsel %vm1236_vm0, %v1645_v5, %v6451_v61  ;;  %v7047_v61 = vld [vmem:[%s7592_s21 + $0x28] sm:$0xff] }
 0xb49   : > { %v6878_v39 = vpop.eup %6877  ;;  %v6460_v63 = vpop.permute.xlu1 %6459  ;;  %6176 = vmatprep.mubr.bf16.mxu0 %v3315_v30 }
 0xb4a   : > { %v6880_v26 = vpop.eup %6879  ;;  %v1646_v7 = vmul.f32 %v6878_v39, %v10775_v16  ;;  %6177 = vmatmul.mubr.bf16.gmra.mxu0 %v3316_v60  ;;  %v6462_v22 = vunpack.i.h.bf16 %v6460_v63  ;;  %v6461_v42 = vunpack.i.l.bf16 %v6460_v63  ;;  %v3273_v41 = vsel %vm1236_vm0, %v1643_v34, %v6446_v31  ;;  %v7046_v16 = vld [vmem:[%s7592_s21 + $0x30] sm:$0xff]  ;;  %v7048_v31 = vld [vmem:[%s7592_s21 + $0x38] sm:$0xff] }
 0xb4b   : > { %v6455_v45 = vpop.permute.xlu0 %6454  ;;  %v1644_v20 = vmul.f32 %v6880_v26, %v10778_v47 }
 0xb4c   : > { %v3276_v10 = vsel %vm1236_vm0, %v1646_v7, %v6452_v49  ;;  %v6457_v35 = vunpack.i.h.bf16 %v6455_v45  ;;  %v6456_v23 = vunpack.i.l.bf16 %v6455_v45  ;;  %v3292_v19 = vsel %vm3277_vm4, %v3275_v14, %v6461_v42  ;;  %v7049_v42 = vld [vmem:[%s7592_s21 + $0x40] sm:$0xff] }
 0xb4d   : > { %v6470_v53 = vpop.permute.xlu1 %6469  ;;  %v3274_v24 = vsel %vm1236_vm0, %v1644_v20, %v6447_v52  ;;  %v3293_v6 = vsel %vm3277_vm4, %v3276_v10, %v6462_v22 }
 0xb4e   : > { %v6472_v13 = vunpack.i.h.bf16 %v6470_v53  ;;  %v6471_v40 = vunpack.i.l.bf16 %v6470_v53  ;;  %v3290_v46 = vsel %vm3277_vm4, %v3273_v41, %v6456_v23  ;;  %v3291_v43 = vsel %vm3277_vm4, %v3274_v24, %v6457_v35  ;;  %v7050_v35 = vld [vmem:[%s7592_s21 + $0x50] sm:$0xff]  ;;  %v7052_v24 = vld [vmem:[%s7592_s21 + $0x58] sm:$0xff] }
 0xb4f   : > { %v6465_v57 = vpop.permute.xlu0 %6464 }
 0xb50   : > { %v6467_v1 = vunpack.i.h.bf16 %v6465_v57  ;;  %v6466_v0 = vunpack.i.l.bf16 %v6465_v57  ;;  %v3309_v29 = vsel %vm3294_vm5, %v3292_v19, %v6471_v40  ;;  %v3310_v44 = vsel %vm3294_vm5, %v3293_v6, %v6472_v13  ;;  %v7051_v13 = vld [vmem:[%s7592_s21 + $0x48] sm:$0xff] }
 0xb51   : > { %v3318_v27 = vpack.c.bf16 %v3310_v44, %v3309_v29  ;;  %v7054_v44 = vld [vmem:[%s7592_s21 + $0x70] sm:$0xff] }
 0xb52   : > { %v3307_v38 = vsel %vm3294_vm5, %v3290_v46, %v6466_v0  ;;  %v3308_v33 = vsel %vm3294_vm5, %v3291_v43, %v6467_v1  ;;  %v7053_v0 = vld [vmem:[%s7592_s21 + $0x60] sm:$0xff] }
 0xb53   : > { %v3317_v50 = vpack.c.bf16 %v3308_v33, %v3307_v38 }
 0xb55   : > { %6180 = vmatprep.mubr.bf16.mxu0 %v3317_v50  ;;  %v7055_v50 = vld [vmem:[%s7592_s21 + $0x68] sm:$0xff] }
 0xb56   : > { %6181 = vmatmul.mubr.bf16.gmra.mxu0 %v3318_v27 }
 0xb57   : > { %4092 = vmatprep.mubr.bf16.mxu0 %v10779_v48 }
 0xbbd   : > { %v6170_v55 = vpop.f32.mrf.mxu0 }
 0xbbe   : > { %v3433_v37 = vadd.f32 %v6170_v55, %v9372_v56  ;;  %v7056_v55 = vld [vmem:[%s7592_s21 + $0x78] sm:$0xff] }
 0xbbf   : > { %v3424_v54 = vpop.f32.mrf.mxu0 }
 0xbc0   : > { %v3425_v58 = vadd.f32 %v9372_v56, %v3424_v54  ;;  %v9382_v17 = vadd.f32 %v7042_v25, %v3433_v37  ;;  %v6516_v37 = vld [vmem:[#allocation11 + $0xe8] ss:$16 sps:$4 sm:$0xff]  }
 0xbc1   : > { %v6171_v28 = vpop.f32.mrf.mxu0 }
 0xbc2   : > { %v9377_v3 = vadd.f32 %v7041_v8, %v3425_v58  ;;  %10781 = vst [vmem:[#allocation22_spill] sm:$0xff] %v9382_v17  ;;  %v3436_v12 = vadd.f32 %v6171_v28, %v9372_v56  ;;  %v6513_v58 = vld [vmem:[#allocation11 + $0xe0] ss:$16 sps:$4 sm:$0xff]   ;;  %v6515_v28 = vld [vmem:[#allocation11 + $0xe4] ss:$16 sps:$4 sm:$0xff]  }
 0xbc3   : > { %v3427_v4 = vpop.f32.mrf.mxu0  ;;  %v6518_v8 = vld [vmem:[#allocation11 + $0xec] ss:$16 sps:$4 sm:$0xff]   ;;  %3947 = vmatprep.subr.bf16.mxu1 %v6515_v28 }
 0xbc4   : > { %10780 = vst [vmem:[#allocation23_spill] sm:$0xff] %v9377_v3  ;;  %v3428_v9 = vadd.f32 %v9372_v56, %v3427_v4  ;;  %3505 = vadd.xlane.f32.xlu0 %v9377_v3  ;;  %v9391_v60 = vadd.f32 %v7044_v51, %v3436_v12  ;;  %4060 = vmatprep.subr.bf16.mxu0 %v6518_v8 }
 0xbc5   : > { %3948 = vmatpush1.bf16.msra.mxu1 %v6513_v58  ;;  %4061 = vmatpush1.bf16.msra.mxu0 %v6516_v37  ;;  %v6560_v58 = vld [vmem:[#allocation11 + $0xc] ss:$16 sps:$4 sm:$0xff]  }
 0xbc6   : > { %v9386_v62 = vadd.f32 %v7043_v15, %v3428_v9  ;;  %10783 = vst [vmem:[#allocation35_spill] sm:$0xff] %v9391_v60 }
 0xbc8   : > { %10782 = vst [vmem:[#allocation29_spill] sm:$0xff] %v9386_v62  ;;  %3507 = vadd.xlane.f32.xlu1 %v9386_v62  ;;  %3509 = vadd.xlane.f32.xlu0 %v9382_v17 }
 0xbcc   : > { %3511 = vadd.xlane.f32.xlu0 %v9391_v60 }
 0xbf7   : > { %v6174_v2 = vpop.f32.mrf.mxu0 }
 0xbf8   : > { %v3449_v30 = vadd.f32 %v6174_v2, %v9372_v56 }
 0xbf9   : > { %v3440_v36 = vpop.f32.mrf.mxu0 }
 0xbfa   : > { %v3441_v21 = vadd.f32 %v9372_v56, %v3440_v36  ;;  %v9402_v7 = vadd.f32 %v7046_v16, %v3449_v30 }
 0xbfb   : > { %v6175_v32 = vpop.f32.mrf.mxu0 }
 0xbfc   : > { %v9397_v39 = vadd.f32 %v7045_v11, %v3441_v21  ;;  %10785 = vst [vmem:[#allocation37_spill] sm:$0xff] %v9402_v7  ;;  %v3452_v49 = vadd.f32 %v6175_v32, %v9372_v56 }
 0xbfd   : > { %v3443_v63 = vpop.f32.mrf.mxu0 }
 0xbfe   : > { %10784 = vst [vmem:[#allocation24_spill] sm:$0xff] %v9397_v39  ;;  %v3444_v26 = vadd.f32 %v9372_v56, %v3443_v63  ;;  %3513 = vadd.xlane.f32.xlu1 %v9397_v39  ;;  %v9411_v45 = vadd.f32 %v7048_v31, %v3452_v49  ;;  %v6521_v49 = vld [vmem:[#allocation11 + $0xc4] ss:$16 sps:$4 sm:$0xff]   ;;  %v6519_v31 = vld [vmem:[#allocation11 + $0xc0] ss:$16 sps:$4 sm:$0xff]  }
 0xbff   : > { %3949 = vmatprep.subr.bf16.mxu1 %v6521_v49 }
 0xc00   : > { %v9406_v52 = vadd.f32 %v7047_v61, %v3444_v26  ;;  %10787 = vst [vmem:[#allocation38_spill] sm:$0xff] %v9411_v45  ;;  %v6524_v61 = vld [vmem:[#allocation11 + $0xcc] ss:$16 sps:$4 sm:$0xff]   ;;  %3950 = vmatpush1.bf16.msra.mxu1 %v6519_v31 }
 0xc01   : > { %4062 = vmatprep.subr.bf16.mxu0 %v6524_v61 }
 0xc02   : > { %10786 = vst [vmem:[#allocation26_spill] sm:$0xff] %v9406_v52  ;;  %3517 = vadd.xlane.f32.xlu1 %v9402_v7  ;;  %3515 = vadd.xlane.f32.xlu0 %v9406_v52 }
 0xc06   : > { %3519 = vadd.xlane.f32.xlu0 %v9411_v45 }
 0xc0a   : > { %v6178_v18 = vpop.f32.mrf.mxu0 }
 0xc0b   : > { %v3465_v22 = vadd.f32 %v6178_v18, %v9372_v56  ;;  %v6522_v18 = vld [vmem:[#allocation11 + $0xc8] ss:$16 sps:$4 sm:$0xff]  }
 0xc0c   : > { %v3456_v5 = vpop.f32.mrf.mxu0  ;;  %4063 = vmatpush1.bf16.msra.mxu0 %v6522_v18 }
 0xc0d   : > { %v3457_v59 = vadd.f32 %v9372_v56, %v3456_v5  ;;  %v9422_v23 = vadd.f32 %v7050_v35, %v3465_v22  ;;  %v6527_v5 = vld [vmem:[#allocation11 + $0xa4] ss:$16 sps:$4 sm:$0xff]   ;;  %v6528_v22 = vld [vmem:[#allocation11 + $0xa8] ss:$16 sps:$4 sm:$0xff]  }
 0xc0e   : > { %v6179_v34 = vpop.f32.mrf.mxu0  ;;  %3951 = vmatprep.subr.bf16.mxu1 %v6527_v5  ;;  %v6534_v35 = vld [vmem:[#allocation11 + $0x88] ss:$16 sps:$4 sm:$0xff]  }
 0xc0f   : > { %v9417_v10 = vadd.f32 %v7049_v42, %v3457_v59  ;;  %10789 = vst [vmem:[#allocation36_spill] sm:$0xff] %v9422_v23  ;;  %v3468_v53 = vadd.f32 %v6179_v34, %v9372_v56  ;;  %v6530_v59 = vld [vmem:[#allocation11 + $0xac] ss:$16 sps:$4 sm:$0xff]   ;;  %v6525_v34 = vld [vmem:[#allocation11 + $0xa0] ss:$16 sps:$4 sm:$0xff]  }
 0xc10   : > { %v3459_v47 = vpop.f32.mrf.mxu0  ;;  %4064 = vmatprep.subr.bf16.mxu0 %v6530_v59  ;;  %3952 = vmatpush1.bf16.msra.mxu1 %v6525_v34  ;;  %v6533_v42 = vld [vmem:[#allocation11 + $0x84] ss:$16 sps:$4 sm:$0xff]  }
 0xc11   : > { %10788 = vst [vmem:[#allocation41_spill] sm:$0xff] %v9417_v10  ;;  %v3460_v20 = vadd.f32 %v9372_v56, %v3459_v47  ;;  %3521 = vadd.xlane.f32.xlu1 %v9417_v10  ;;  %v9431_v41 = vadd.f32 %v7052_v24, %v3468_v53  ;;  %4065 = vmatpush1.bf16.msra.mxu0 %v6528_v22  ;;  %v6536_v47 = vld [vmem:[#allocation11 + $0x8c] ss:$16 sps:$4 sm:$0xff]   ;;  %v6539_v53 = vld [vmem:[#allocation11 + $0x64] ss:$16 sps:$4 sm:$0xff]  }
 0xc12   : > { %3953 = vmatprep.subr.bf16.mxu1 %v6533_v42  ;;  %4066 = vmatprep.subr.bf16.mxu0 %v6536_v47  ;;  %v6540_v24 = vld [vmem:[#allocation11 + $0x68] ss:$16 sps:$4 sm:$0xff]  }
 0xc13   : > { %v9426_v40 = vadd.f32 %v7051_v13, %v3460_v20  ;;  %10791 = vst [vmem:[#allocation28_spill] sm:$0xff] %v9431_v41  ;;  %v6531_v20 = vld [vmem:[#allocation11 + $0x80] ss:$16 sps:$4 sm:$0xff]   ;;  %v6542_v13 = vld [vmem:[#allocation11 + $0x6c] ss:$16 sps:$4 sm:$0xff]  }
 0xc14   : > { %3954 = vmatpush1.bf16.msra.mxu1 %v6531_v20 }
 0xc15   : > { %10790 = vst [vmem:[#allocation34_spill] sm:$0xff] %v9426_v40  ;;  %3525 = vadd.xlane.f32.xlu1 %v9422_v23  ;;  %3523 = vadd.xlane.f32.xlu0 %v9426_v40 }
 0xc16   : > { %v6182_v14 = vpop.f32.mrf.mxu0  ;;  %4067 = vmatpush1.bf16.msra.mxu0 %v6534_v35  ;;  %3955 = vmatprep.subr.bf16.mxu1 %v6539_v53 }
 0xc17   : > { %v3481_v1 = vadd.f32 %v6182_v14, %v9372_v56  ;;  %v6537_v14 = vld [vmem:[#allocation11 + $0x60] ss:$16 sps:$4 sm:$0xff]   ;;  %4068 = vmatprep.subr.bf16.mxu0 %v6542_v13 }
 0xc18   : > { %v3472_v57 = vpop.f32.mrf.mxu0  ;;  %3956 = vmatpush1.bf16.msra.mxu1 %v6537_v14 }
 0xc19   : > { %v3473_v19 = vadd.f32 %v9372_v56, %v3472_v57  ;;  %3527 = vadd.xlane.f32.xlu0 %v9431_v41  ;;  %v9442_v38 = vadd.f32 %v7054_v44, %v3481_v1  ;;  %v6545_v57 = vld [vmem:[#allocation11 + $0x44] ss:$16 sps:$4 sm:$0xff]   ;;  %v6546_v1 = vld [vmem:[#allocation11 + $0x48] ss:$16 sps:$4 sm:$0xff]  }
 0xc1a   : > { %v6183_v6 = vpop.f32.mrf.mxu0  ;;  %4069 = vmatpush1.bf16.msra.mxu0 %v6540_v24  ;;  %3957 = vmatprep.subr.bf16.mxu1 %v6545_v57  ;;  %v6552_v44 = vld [vmem:[#allocation11 + $0x28] ss:$16 sps:$4 sm:$0xff]  }
 0xc1b   : > { %v9437_v46 = vadd.f32 %v7053_v0, %v3473_v19  ;;  %10793 = vst [vmem:[#allocation40_spill] sm:$0xff] %v9442_v38  ;;  %v3484_v33 = vadd.f32 %v6183_v6, %v9372_v56  ;;  %v6548_v19 = vld [vmem:[#allocation11 + $0x4c] ss:$16 sps:$4 sm:$0xff]   ;;  %v6543_v6 = vld [vmem:[#allocation11 + $0x40] ss:$16 sps:$4 sm:$0xff]  }
 0xc1c   : > { %v3475_v43 = vpop.f32.mrf.mxu0  ;;  %4070 = vmatprep.subr.bf16.mxu0 %v6548_v19  ;;  %3958 = vmatpush1.bf16.msra.mxu1 %v6543_v6  ;;  %v6551_v0 = vld [vmem:[#allocation11 + $0x24] ss:$16 sps:$4 sm:$0xff]  }
 0xc1d   : > { %10792 = vst [vmem:[#allocation33_spill] sm:$0xff] %v9437_v46  ;;  %v3476_v29 = vadd.f32 %v9372_v56, %v3475_v43  ;;  %3529 = vadd.xlane.f32.xlu1 %v9437_v46  ;;  %v9451_v54 = vadd.f32 %v7056_v55, %v3484_v33  ;;  %v6554_v43 = vld [vmem:[#allocation11 + $0x2c] ss:$16 sps:$4 sm:$0xff]   ;;  %3959 = vmatprep.subr.bf16.mxu1 %v6551_v0  ;;  %v6557_v33 = vld [vmem:[#allocation11 + $0x4] ss:$16 sps:$4 sm:$0xff]  }
 0xc1e   : > { %4071 = vmatpush1.bf16.msra.mxu0 %v6546_v1  ;;  %v6558_v55 = vld [vmem:[#allocation11 + $0x8] ss:$16 sps:$4 sm:$0xff]  }
 0xc1f   : > { %v9446_v27 = vadd.f32 %v7055_v50, %v3476_v29  ;;  %10795 = vst [vmem:[#allocation27_spill] sm:$0xff] %v9451_v54  ;;  %v6549_v29 = vld [vmem:[#allocation11 + $0x20] ss:$16 sps:$4 sm:$0xff]   ;;  %4072 = vmatprep.subr.bf16.mxu0 %v6554_v43 }
 0xc20   : > { %3960 = vmatpush1.bf16.msra.mxu1 %v6549_v29  ;;  %v6555_v50 = vld [vmem:[#allocation11] ss:$16 sps:$4 sm:$0xff]  }
 0xc21   : > { %10794 = vst [vmem:[#allocation39_spill] sm:$0xff] %v9446_v27  ;;  %3533 = vadd.xlane.f32.xlu1 %v9442_v38  ;;  %3531 = vadd.xlane.f32.xlu0 %v9446_v27 }
 0xc22   : > { %4073 = vmatpush1.bf16.msra.mxu0 %v6552_v44  ;;  %3961 = vmatprep.subr.bf16.mxu1 %v6557_v33 }
 0xc23   : > { %4074 = vmatprep.subr.bf16.mxu0 %v6560_v58 }
 0xc24   : > { %3962 = vmatpush1.bf16.msra.mxu1 %v6555_v50 }
 0xc25   : > { %3535 = vadd.xlane.f32.xlu0 %v9451_v54 }
 0xc26   : > { %4075 = vmatpush1.bf16.msra.mxu0 %v6558_v55 }
 0xc4d   : > { %v3506_v56 = vpop.xlane.xlu0 %3505 }
 0xc4e   : > { %v3537_v4 = vmul.f32 0.0078125, %v3506_v56 }
 0xc50   : > { %v9455_v9 = vsub.f32 %v9377_v3, %v3537_v4 }
 0xc51   : > { %v3508_v25 = vpop.xlane.xlu1 %3507  ;;  %v3510_v12 = vpop.xlane.xlu0 %3509 }
 0xc52   : > { %v3538_v15 = vmul.f32 0.0078125, %v3508_v25  ;;  %v3539_v51 = vmul.f32 0.0078125, %v3510_v12  ;;  %v3569_v2 = vmul.f32 %v9455_v9, %v9455_v9 }
 0xc54   : > { %v9460_v36 = vsub.f32 %v9386_v62, %v3538_v15  ;;  %v9463_v21 = vsub.f32 %v9382_v17, %v3539_v51  ;;  %3585 = vadd.xlane.f32.xlu1 %v3569_v2 }
 0xc55   : > { %v3512_v32 = vpop.xlane.xlu0 %3511 }
 0xc56   : > { %v3540_v30 = vmul.f32 0.0078125, %v3512_v32  ;;  %v3570_v11 = vmul.f32 %v9460_v36, %v9460_v36  ;;  %v3571_v63 = vmul.f32 %v9463_v21, %v9463_v21 }
 0xc58   : > { %v9470_v26 = vsub.f32 %v9391_v60, %v3540_v30  ;;  %3587 = vadd.xlane.f32.xlu0 %v3570_v11  ;;  %3589 = vadd.xlane.f32.xlu1 %v3571_v63 }
 0xc5a   : > { %v3572_v16 = vmul.f32 %v9470_v26, %v9470_v26 }
 0xc5c   : > { %3591 = vadd.xlane.f32.xlu0 %v3572_v16 }
 0xc87   : > { %v3514_v28 = vpop.xlane.xlu1 %3513 }
 0xc88   : > { %v3541_v37 = vmul.f32 0.0078125, %v3514_v28 }
 0xc8a   : > { %v9475_v8 = vsub.f32 %v9397_v39, %v3541_v37 }
 0xc8b   : > { %v3518_v56 = vpop.xlane.xlu1 %3517  ;;  %v3516_v4 = vpop.xlane.xlu0 %3515 }
 0xc8c   : > { %v3543_v25 = vmul.f32 0.0078125, %v3518_v56  ;;  %v3542_v12 = vmul.f32 0.0078125, %v3516_v4  ;;  %v3573_v15 = vmul.f32 %v9475_v8, %v9475_v8 }
 0xc8e   : > { %v9480_v51 = vsub.f32 %v9402_v7, %v3543_v25  ;;  %v9483_v2 = vsub.f32 %v9406_v52, %v3542_v12  ;;  %3593 = vadd.xlane.f32.xlu1 %v3573_v15 }
 0xc8f   : > { %v3520_v32 = vpop.xlane.xlu0 %3519 }
 0xc90   : > { %v3544_v30 = vmul.f32 0.0078125, %v3520_v32  ;;  %v3575_v11 = vmul.f32 %v9480_v51, %v9480_v51  ;;  %v3574_v63 = vmul.f32 %v9483_v2, %v9483_v2 }
 0xc92   : > { %v9490_v16 = vsub.f32 %v9411_v45, %v3544_v30  ;;  %3597 = vadd.xlane.f32.xlu1 %v3575_v11  ;;  %3595 = vadd.xlane.f32.xlu0 %v3574_v63 }
 0xc94   : > { %v3576_v49 = vmul.f32 %v9490_v16, %v9490_v16 }
 0xc96   : > { %3599 = vadd.xlane.f32.xlu0 %v3576_v49 }
 0xc9a   : > { %v3522_v61 = vpop.xlane.xlu1 %3521 }
 0xc9b   : > { %v3545_v31 = vmul.f32 0.0078125, %v3522_v61 }
 0xc9d   : > { %v9495_v18 = vsub.f32 %v9417_v10, %v3545_v31 }
 0xc9e   : > { %v3526_v5 = vpop.xlane.xlu1 %3525  ;;  %v3524_v59 = vpop.xlane.xlu0 %3523 }
 0xc9f   : > { %v3547_v34 = vmul.f32 0.0078125, %v3526_v5  ;;  %v3546_v22 = vmul.f32 0.0078125, %v3524_v59  ;;  %v3577_v42 = vmul.f32 %v9495_v18, %v9495_v18 }
 0xca1   : > { %v9500_v47 = vsub.f32 %v9422_v23, %v3547_v34  ;;  %v9503_v20 = vsub.f32 %v9426_v40, %v3546_v22  ;;  %3601 = vadd.xlane.f32.xlu1 %v3577_v42 }
 0xca2   : > { %v3528_v35 = vpop.xlane.xlu0 %3527 }
 0xca3   : > { %v3548_v53 = vmul.f32 0.0078125, %v3528_v35  ;;  %v3579_v13 = vmul.f32 %v9500_v47, %v9500_v47  ;;  %v3578_v14 = vmul.f32 %v9503_v20, %v9503_v20  ;;  %v9538_v35 = vld [vmem:[%s10501_s7] ss:$0 sm:$0xff] }
 0xca5   : > { %v9510_v24 = vsub.f32 %v9431_v41, %v3548_v53  ;;  %3605 = vadd.xlane.f32.xlu1 %v3579_v13  ;;  %3603 = vadd.xlane.f32.xlu0 %v3578_v14 }
 0xca6   : > { %v3530_v57 = vpop.xlane.xlu1 %3529 }
 0xca7   : > { %v3549_v19 = vmul.f32 0.0078125, %v3530_v57  ;;  %v3580_v6 = vmul.f32 %v9510_v24, %v9510_v24 }
 0xca9   : > { %v9515_v1 = vsub.f32 %v9437_v46, %v3549_v19  ;;  %3607 = vadd.xlane.f32.xlu0 %v3580_v6  ;;  %v9545_v19 = vld [vmem:[%s10502_s8] ss:$0 sm:$0xff] }
 0xcaa   : > { %v3534_v0 = vpop.xlane.xlu1 %3533  ;;  %v3532_v43 = vpop.xlane.xlu0 %3531 }
 0xcab   : > { %v3551_v29 = vmul.f32 0.0078125, %v3534_v0  ;;  %v3550_v44 = vmul.f32 0.0078125, %v3532_v43  ;;  %v3581_v33 = vmul.f32 %v9515_v1, %v9515_v1 }
 0xcad   : > { %v9520_v50 = vsub.f32 %v9442_v38, %v3551_v29  ;;  %v9523_v55 = vsub.f32 %v9446_v27, %v3550_v44  ;;  %3609 = vadd.xlane.f32.xlu1 %v3581_v33 }
 0xcae   : > { %v3536_v58 = vpop.xlane.xlu0 %3535 }
 0xcaf   : > { %v3552_v28 = vmul.f32 0.0078125, %v3536_v58  ;;  %v3583_v37 = vmul.f32 %v9520_v50, %v9520_v50  ;;  %v3582_v56 = vmul.f32 %v9523_v55, %v9523_v55 }
 0xcb1   : > { %v9530_v4 = vsub.f32 %v9451_v54, %v3552_v28  ;;  %3613 = vadd.xlane.f32.xlu1 %v3583_v37  ;;  %3611 = vadd.xlane.f32.xlu0 %v3582_v56 }
 0xcb3   : > { %v3584_v25 = vmul.f32 %v9530_v4, %v9530_v4 }
 0xcb5   : > { %3615 = vadd.xlane.f32.xlu0 %v3584_v25 }
 0xcdd   : > { %v3586_v12 = vpop.xlane.xlu1 %3585 }
 0xcde   : > { %v3617_v15 = vmul.f32 0.0078125, %v3586_v12 }
 0xce0   : > { %v3633_v32 = vadd.f32 1e-05, %v3617_v15 }
 0xce1   : > { %v3590_v30 = vpop.xlane.xlu1 %3589  ;;  %v3588_v11 = vpop.xlane.xlu0 %3587 }
 0xce2   : > { %6881 = vrsqrt.f32 %v3633_v32  ;;  %v3619_v63 = vmul.f32 0.0078125, %v3590_v30  ;;  %v3618_v49 = vmul.f32 0.0078125, %v3588_v11 }
 0xce4   : > { %v3634_v61 = vadd.f32 1e-05, %v3618_v49  ;;  %v3635_v31 = vadd.f32 1e-05, %v3619_v63 }
 0xce5   : > { %v3592_v5 = vpop.xlane.xlu0 %3591 }
 0xce6   : > { %v3620_v59 = vmul.f32 0.0078125, %v3592_v5  ;;  %6883 = vrsqrt.f32 %v3634_v61 }
 0xce7   : > { %6885 = vrsqrt.f32 %v3635_v31 }
 0xce8   : > { %v3636_v34 = vadd.f32 1e-05, %v3620_v59 }
 0xcea   : > { %6887 = vrsqrt.f32 %v3636_v34 }
 0xcef   : > { %v6882_v22 = vpop.eup %6881 }
 0xcf0   : > { %v3665_v42 = vmul.f32 %v6882_v22, %v9455_v9 }
 0xcf2   : > { %v3687_v14 = vmul.f32 %v9538_v35, %v3665_v42 }
 0xcf3   : > { %v6884_v53 = vpop.eup %6883 }
 0xcf4   : > { %v3666_v13 = vmul.f32 %v6884_v53, %v9460_v36  ;;  %v6886_v57 = vpop.eup %6885  ;;  %v3709_v43 = vadd.f32 %v9545_v19, %v3687_v14 }
 0xcf5   : > { %v3667_v44 = vmul.f32 %v6886_v57, %v9463_v21 }
 0xcf6   : > { %v3688_v0 = vmul.f32 %v9538_v35, %v3666_v13 }
 0xcf7   : > { %v6888_v6 = vpop.eup %6887  ;;  %v3689_v58 = vmul.f32 %v9538_v35, %v3667_v44 }
 0xcf8   : > { %v3668_v9 = vmul.f32 %v6888_v6, %v9470_v26  ;;  %v3710_v29 = vadd.f32 %v9545_v19, %v3688_v0 }
 0xcf9   : > { %v3711_v26 = vadd.f32 %v9545_v19, %v3689_v58 }
 0xcfa   : > { %v3725_v36 = vpack.c.bf16 %v3710_v29, %v3709_v43  ;;  %v3690_v33 = vmul.f32 %v9538_v35, %v3668_v9 }
 0xcfc   : > { %3980 = vmatmul.mubr.bf16.vlgmr.msra.gmra.mxu1 %v3725_v36  ;;  %4093 = vmatmul.mubr.bf16.vlgmr.msra.gmra.mxu0 %v3725_v36  ;;  %v3712_v28 = vadd.f32 %v9545_v19, %v3690_v33 }
 0xcfd   : > { %3989 = vmatprep.mubr.bf16.mxu1 %v10779_v48  ;;  %4102 = vmatprep.mubr.bf16.mxu0 %v10779_v48 }
 0xcfe   : > { %v3726_v37 = vpack.c.bf16 %v3712_v28, %v3711_v26 }
 0xd04   : > { %3990 = vmatmul.mubr.bf16.gmra.mxu1 %v3726_v37  ;;  %4103 = vmatmul.mubr.bf16.gmra.mxu0 %v3726_v37 }
 0xd05   : > { %3999 = vmatprep.mubr.bf16.mxu1 %v10779_v48  ;;  %4112 = vmatprep.mubr.bf16.mxu0 %v10779_v48 }
 0xd17   : > { %v3594_v21 = vpop.xlane.xlu1 %3593 }
 0xd18   : > { %v3621_v56 = vmul.f32 0.0078125, %v3594_v21 }
 0xd1a   : > { %v3637_v25 = vadd.f32 1e-05, %v3621_v56 }
 0xd1b   : > { %v3598_v12 = vpop.xlane.xlu1 %3597  ;;  %v3596_v15 = vpop.xlane.xlu0 %3595 }
 0xd1c   : > { %6889 = vrsqrt.f32 %v3637_v25  ;;  %v3623_v32 = vmul.f32 0.0078125, %v3598_v12  ;;  %v3622_v30 = vmul.f32 0.0078125, %v3596_v15 }
 0xd1e   : > { %v3638_v11 = vadd.f32 1e-05, %v3622_v30  ;;  %v3639_v63 = vadd.f32 1e-05, %v3623_v32 }
 0xd1f   : > { %v3600_v49 = vpop.xlane.xlu0 %3599 }
 0xd20   : > { %v3624_v61 = vmul.f32 0.0078125, %v3600_v49  ;;  %6891 = vrsqrt.f32 %v3638_v11 }
 0xd21   : > { %6893 = vrsqrt.f32 %v3639_v63 }
 0xd22   : > { %v3640_v31 = vadd.f32 1e-05, %v3624_v61 }
 0xd24   : > { %6895 = vrsqrt.f32 %v3640_v31 }
 0xd29   : > { %v6890_v5 = vpop.eup %6889 }
 0xd2a   : > { %v3602_v59 = vpop.xlane.xlu1 %3601  ;;  %v3669_v34 = vmul.f32 %v6890_v5, %v9475_v8 }
 0xd2b   : > { %v3625_v22 = vmul.f32 0.0078125, %v3602_v59 }
 0xd2c   : > { %v3691_v57 = vmul.f32 %v9538_v35, %v3669_v34 }
 0xd2d   : > { %v3641_v42 = vadd.f32 1e-05, %v3625_v22  ;;  %v6892_v53 = vpop.eup %6891 }
 0xd2e   : > { %v3606_v13 = vpop.xlane.xlu1 %3605  ;;  %v3604_v14 = vpop.xlane.xlu0 %3603  ;;  %v3670_v9 = vmul.f32 %v6892_v53, %v9483_v2  ;;  %v3713_v26 = vadd.f32 %v9545_v19, %v3691_v57 }
 0xd2f   : > { %6897 = vrsqrt.f32 %v3641_v42  ;;  %v3627_v6 = vmul.f32 0.0078125, %v3606_v13  ;;  %v3626_v0 = vmul.f32 0.0078125, %v3604_v14  ;;  %v6894_v43 = vpop.eup %6893 }
 0xd30   : > { %v3692_v36 = vmul.f32 %v9538_v35, %v3670_v9  ;;  %v3671_v21 = vmul.f32 %v6894_v43, %v9480_v51 }
 0xd31   : > { %v6896_v29 = vpop.eup %6895  ;;  %v3642_v44 = vadd.f32 1e-05, %v3626_v0  ;;  %v3643_v33 = vadd.f32 1e-05, %v3627_v6 }
 0xd32   : > { %v3608_v58 = vpop.xlane.xlu0 %3607  ;;  %v3672_v8 = vmul.f32 %v6896_v29, %v9490_v16  ;;  %v3714_v37 = vadd.f32 %v9545_v19, %v3692_v36  ;;  %v3693_v16 = vmul.f32 %v9538_v35, %v3671_v21  ;;  %v6565_v21 = vld [vmem:[#allocation13 + $0x70] sm:$0xff]  }
 0xd33   : > { %v3628_v28 = vmul.f32 0.0078125, %v3608_v58  ;;  %6899 = vrsqrt.f32 %v3642_v44  ;;  %v9584_v58 = vld [vmem:[#allocation13 + $0xf8] sm:$0xff]  }
 0xd34   : > { %v3727_v25 = vpack.c.bf16 %v3714_v37, %v3713_v26  ;;  %v3694_v2 = vmul.f32 %v9538_v35, %v3672_v8  ;;  %6901 = vrsqrt.f32 %v3643_v33  ;;  %v3715_v49 = vadd.f32 %v9545_v19, %v3693_v16  ;;  %v6561_v33 = vld [vmem:[#allocation13 + $0x78] sm:$0xff]   ;;  %5800 = vmatprep.subr.bf16.mxu0 %v9584_v58 }
 0xd35   : > { %v3644_v56 = vadd.f32 1e-05, %v3628_v28  ;;  %v6563_v28 = vld [vmem:[#allocation13 + $0x38] sm:$0xff]   ;;  %5736 = vmatprep.subr.bf16.mxu1 %v6561_v33  ;;  %v9637_v33 = vld [vmem:[#allocation13 + $0x90] sm:$0xff]  }
 0xd36   : > { %v3610_v12 = vpop.xlane.xlu1 %3609  ;;  %4000 = vmatmul.mubr.bf16.gmra.mxu1 %v3727_v25  ;;  %4113 = vmatmul.mubr.bf16.gmra.mxu0 %v3727_v25  ;;  %v3716_v32 = vadd.f32 %v9545_v19, %v3694_v2  ;;  %v9587_v26 = vld [vmem:[#allocation13 + $0xb8] sm:$0xff]   ;;  %v6567_v2 = vld [vmem:[#allocation13 + $0x30] sm:$0xff]  }
 0xd37   : > { %6903 = vrsqrt.f32 %v3644_v56  ;;  %v3629_v15 = vmul.f32 0.0078125, %v3610_v12  ;;  %4009 = vmatprep.mubr.bf16.mxu1 %v10779_v48  ;;  %4122 = vmatprep.mubr.bf16.mxu0 %v10779_v48  ;;  %v9595_v56 = vld [vmem:[#allocation13 + $0xf0] sm:$0xff]  }
 0xd38   : > { %v3728_v5 = vpack.c.bf16 %v3716_v32, %v3715_v49  ;;  %5737 = vmatpush3.bf16.msra.mxu1 %v6563_v28  ;;  %5801 = vmatpush3.bf16.msra.mxu0 %v9587_v26  ;;  %v9597_v12 = vld [vmem:[#allocation13 + $0xb0] sm:$0xff]   ;;  %v6587_v28 = vld [vmem:[#allocation13 + $0x8] sm:$0xff]  }
 0xd39   : > { %v3645_v51 = vadd.f32 1e-05, %v3629_v15  ;;  %5738 = vmatprep.subr.bf16.mxu1 %v6565_v21  ;;  %5802 = vmatprep.subr.bf16.mxu0 %v9595_v56  ;;  %v9650_v21 = vld [vmem:[#allocation13 + $0x80] sm:$0xff]  }
 0xd3a   : > { %v3612_v30 = vpop.xlane.xlu0 %3611  ;;  %v3614_v11 = vpop.xlane.xlu1 %3613 }
 0xd3b   : > { %v3630_v63 = vmul.f32 0.0078125, %v3612_v30  ;;  %6905 = vrsqrt.f32 %v3645_v51  ;;  %v3631_v59 = vmul.f32 0.0078125, %v3614_v11  ;;  %v6569_v11 = vld [vmem:[#allocation13 + $0x68] sm:$0xff]  }
 0xd3c   : > { %v6898_v61 = vpop.eup %6897  ;;  %5739 = vmatpush3.bf16.msra.mxu1 %v6567_v2  ;;  %5803 = vmatpush3.bf16.msra.mxu0 %v9597_v12  ;;  %v10796_v2 = vld [vmem:[#allocation21_spill] sm:$0xff] }
 0xd3d   : > { %v3646_v31 = vadd.f32 1e-05, %v3630_v63  ;;  %v3673_v22 = vmul.f32 %v6898_v61, %v9495_v18  ;;  %v3647_v14 = vadd.f32 1e-05, %v3631_v59  ;;  %v9605_v63 = vld [vmem:[#allocation13 + $0xe8] sm:$0xff]   ;;  %5740 = vmatprep.subr.bf16.mxu1 %v6569_v11 }
 0xd3e   : > { %v3616_v34 = vpop.xlane.xlu0 %3615  ;;  %4010 = vmatmul.mubr.bf16.gmra.mxu1 %v3728_v5  ;;  %4123 = vmatmul.mubr.bf16.gmra.mxu0 %v3728_v5  ;;  %v6571_v61 = vld [vmem:[#allocation13 + $0x28] sm:$0xff]  }
 0xd3f   : > { %v3632_v42 = vmul.f32 0.0078125, %v3616_v34  ;;  %6907 = vrsqrt.f32 %v3646_v31  ;;  %4019 = vmatprep.mubr.bf16.mxu1 %v10779_v48  ;;  %4132 = vmatprep.mubr.bf16.mxu0 %v10779_v48  ;;  %v3695_v6 = vmul.f32 %v9538_v35, %v3673_v22  ;;  %v9607_v31 = vld [vmem:[#allocation13 + $0xa8] sm:$0xff]   ;;  %v6573_v34 = vld [vmem:[#allocation13 + $0x60] sm:$0xff]  }
 0xd40   : > { %v6900_v53 = vpop.eup %6899  ;;  %5804 = vmatprep.subr.bf16.mxu0 %v9605_v63  ;;  %v9615_v22 = vld [vmem:[#allocation13 + $0xe0] sm:$0xff]   ;;  %5741 = vmatpush3.bf16.msra.mxu1 %v6571_v61  ;;  %v10799_v61 = vsub.s32 1, %v10796_v2 }
 0xd41   : > { %v3648_v13 = vadd.f32 1e-05, %v3632_v42  ;;  %v3674_v57 = vmul.f32 %v6900_v53, %v9503_v20  ;;  %v6902_v0 = vpop.eup %6901  ;;  %v3717_v29 = vadd.f32 %v9545_v19, %v3695_v6  ;;  %5805 = vmatpush3.bf16.msra.mxu0 %v9607_v31  ;;  %v6575_v42 = vld [vmem:[#allocation13 + $0x20] sm:$0xff]   ;;  %5742 = vmatprep.subr.bf16.mxu1 %v6573_v34  ;;  %v6577_v6 = vld [vmem:[#allocation13 + $0x58] sm:$0xff]  }
 0xd42   : > { %v3675_v36 = vmul.f32 %v6902_v0, %v9500_v47  ;;  %v9618_v53 = vld [vmem:[#allocation13 + $0xa0] sm:$0xff]   ;;  %5806 = vmatprep.subr.bf16.mxu0 %v9615_v22  ;;  %v9624_v0 = vld [vmem:[#allocation13 + $0xd8] sm:$0xff]  }
 0xd43   : > { %6909 = vrsqrt.f32 %v3648_v13  ;;  %v3696_v18 = vmul.f32 %v9538_v35, %v3674_v57 }
 0xd44   : > { %v6904_v9 = vpop.eup %6903  ;;  %6911 = vrsqrt.f32 %v3647_v14  ;;  %5743 = vmatpush3.bf16.msra.mxu1 %v6575_v42 }
 0xd45   : > { %v3676_v43 = vmul.f32 %v6904_v9, %v9510_v24  ;;  %v3718_v44 = vadd.f32 %v9545_v19, %v3696_v18  ;;  %v3697_v24 = vmul.f32 %v9538_v35, %v3675_v36  ;;  %5807 = vmatpush3.bf16.msra.mxu0 %v9618_v53  ;;  %v6579_v9 = vld [vmem:[#allocation13 + $0x18] sm:$0xff]   ;;  %5744 = vmatprep.subr.bf16.mxu1 %v6577_v6  ;;  %v6583_v36 = vld [vmem:[#allocation13 + $0x10] sm:$0xff]  }
 0xd46   : > { %v9627_v18 = vld [vmem:[#allocation13 + $0x98] sm:$0xff]   ;;  %5808 = vmatprep.subr.bf16.mxu0 %v9624_v0 }
 0xd47   : > { %v3729_v20 = vpack.c.bf16 %v3718_v44, %v3717_v29  ;;  %v3698_v8 = vmul.f32 %v9538_v35, %v3676_v43  ;;  %v3719_v15 = vadd.f32 %v9545_v19, %v3697_v24  ;;  %v6581_v29 = vld [vmem:[#allocation13 + $0x50] sm:$0xff]   ;;  %v9644_v24 = vld [vmem:[#allocation13 + $0x88] sm:$0xff]  }
 0xd48   : > { %v6906_v37 = vpop.eup %6905  ;;  %v9634_v44 = vld [vmem:[#allocation13 + $0xd0] sm:$0xff]   ;;  %5745 = vmatpush3.bf16.msra.mxu1 %v6579_v9 }
 0xd49   : > { %4020 = vmatmul.mubr.bf16.gmra.mxu1 %v3729_v20  ;;  %4133 = vmatmul.mubr.bf16.gmra.mxu0 %v3729_v20  ;;  %v3720_v47 = vadd.f32 %v9545_v19, %v3698_v8  ;;  %v3677_v16 = vmul.f32 %v6906_v37, %v9515_v1  ;;  %v6585_v20 = vld [vmem:[#allocation13 + $0x48] sm:$0xff]   ;;  %v6589_v37 = vld [vmem:[#allocation13 + $0x40] sm:$0xff]  }
 0xd4a   : > { %4029 = vmatprep.mubr.bf16.mxu1 %v10779_v48  ;;  %4142 = vmatprep.mubr.bf16.mxu0 %v10779_v48  ;;  %v9641_v8 = vld [vmem:[#allocation13 + $0xc8] sm:$0xff]  }
 0xd4b   : > { %v3730_v51 = vpack.c.bf16 %v3720_v47, %v3719_v15  ;;  %v3699_v1 = vmul.f32 %v9538_v35, %v3677_v16  ;;  %5809 = vmatpush3.bf16.msra.mxu0 %v9627_v18  ;;  %5746 = vmatprep.subr.bf16.mxu1 %v6581_v29  ;;  %v9646_v47 = vld [vmem:[#allocation13 + $0xc0] sm:$0xff]   ;;  %v3781_v15 = vsub.s32 3, %v10796_v2  ;;  %v10797_v16 = vsub.s32 0, %v10796_v2 }
 0xd4c   : > { %v6908_v25 = vpop.eup %6907  ;;  %5810 = vmatprep.subr.bf16.mxu0 %v9634_v44  ;;  %5747 = vmatpush3.bf16.msra.mxu1 %v6583_v36 }
 0xd4d   : > { %v3678_v32 = vmul.f32 %v6908_v25, %v9523_v55  ;;  %v3721_v13 = vadd.f32 %v9545_v19, %v3699_v1  ;;  %5748 = vmatprep.subr.bf16.mxu1 %v6585_v20  ;;  %v3765_v25 = vld [vmem:[%s10504_s10] sm:$0xf] }
 0xd4e   : > { %v9669_v1 = vrot.slane %v3765_v25, %v10799_v61 }
 0xd4f   : > { %v3700_v30 = vmul.f32 %v9538_v35, %v3678_v32  ;;  %5811 = vmatpush3.bf16.msra.mxu0 %v9637_v33  ;;  %v9661_v32 = vrot.slane %v3765_v25, %v10797_v16 }
 0xd50   : > { %v6910_v49 = vpop.eup %6909  ;;  %5812 = vmatprep.subr.bf16.mxu0 %v9641_v8  ;;  %5749 = vmatpush3.bf16.msra.mxu1 %v6587_v28 }
 0xd51   : > { %4030 = vmatmul.mubr.bf16.gmra.mxu1 %v3730_v51  ;;  %4143 = vmatmul.mubr.bf16.gmra.mxu0 %v3730_v51  ;;  %v6912_v55 = vpop.eup %6911  ;;  %v3722_v5 = vadd.f32 %v9545_v19, %v3700_v30  ;;  %v3680_v59 = vmul.f32 %v6910_v49, %v9530_v4  ;;  %v10798_v51 = vsub.s32 2, %v10796_v2 }
 0xd52   : > { %4039 = vmatprep.mubr.bf16.mxu1 %v10779_v48  ;;  %4152 = vmatprep.mubr.bf16.mxu0 %v10779_v48  ;;  %v3679_v14 = vmul.f32 %v6912_v55, %v9520_v50 }
 0xd53   : > { %v3731_v4 = vpack.c.bf16 %v3722_v5, %v3721_v13  ;;  %v3702_v57 = vmul.f32 %v9538_v35, %v3680_v59  ;;  %5813 = vmatpush3.bf16.msra.mxu0 %v9644_v24  ;;  %5750 = vmatprep.subr.bf16.mxu1 %v6589_v37  ;;  %v9665_v30 = vrot.slane %v3765_v25, %v10798_v51 }
 0xd54   : > { %v3701_v43 = vmul.f32 %v9538_v35, %v3679_v14  ;;  %5814 = vmatprep.subr.bf16.mxu0 %v9646_v47 }
 0xd55   : > { %v3724_v50 = vadd.f32 %v9545_v19, %v3702_v57 }
 0xd56   : > { %v3723_v35 = vadd.f32 %v9545_v19, %v3701_v43  ;;  %v6591_v19 = vld [vmem:[#allocation13] sm:$0xff]  }
 0xd57   : > { %5751 = vmatpush3.bf16.msra.mxu1 %v6591_v19  ;;  %5815 = vmatpush3.bf16.msra.mxu0 %v9650_v21 }
 0xd58   : > { %6184 = vmatprep.subr.bf16.mxu1 %v9584_v58  ;;  %v9671_v58 = vrot.slane %v3765_v25, %v3781_v15 }
 0xd59   : > { %4040 = vmatmul.mubr.bf16.gmra.mxu1 %v3731_v4  ;;  %4153 = vmatmul.mubr.bf16.gmra.mxu0 %v3731_v4 }
 0xd5a   : > { %4049 = vmatprep.mubr.bf16.mxu1 %v10779_v48  ;;  %4162 = vmatprep.mubr.bf16.mxu0 %v10779_v48  ;;  %v3732_v48 = vpack.c.bf16 %v3724_v50, %v3723_v35 }
 0xd61   : > { %4050 = vmatmul.mubr.bf16.gmra.mxu1 %v3732_v48  ;;  %4163 = vmatmul.mubr.bf16.gmra.mxu0 %v3732_v48 }
 0xdbc   : > { %v3981_v11 = vpop.f32.mrf.mxu1  ;;  %v4094_v49 = vpop.f32.mrf.mxu0 }
 0xdbd   : > { %v9674_v55 = vadd.f32 %v3981_v11, %v9661_v32  ;;  %v9677_v5 = vadd.f32 %v4094_v49, %v9665_v30 }
 0xdbe   : > { %v3983_v59 = vpop.f32.mrf.mxu1  ;;  %v4096_v34 = vpop.f32.mrf.mxu0 }
 0xdbf   : > { %v4237_v42 = vmul.f32 0.044715, %v9674_v55  ;;  %v4239_v13 = vmul.f32 0.044715, %v9677_v5  ;;  %v9682_v14 = vadd.f32 %v3983_v59, %v9669_v1  ;;  %v9685_v4 = vadd.f32 %v4096_v34, %v9671_v58 }
 0xdc0   : > { %v3985_v57 = vpop.f32.mrf.mxu1  ;;  %v4098_v6 = vpop.f32.mrf.mxu0 }
 0xdc1   : > { %v4301_v9 = vmul.f32 %v4237_v42, %v9674_v55  ;;  %v4303_v43 = vmul.f32 %v4239_v13, %v9677_v5  ;;  %v9690_v50 = vadd.f32 %v3985_v57, %v9661_v32  ;;  %v9693_v29 = vadd.f32 %v4098_v6, %v9665_v30 }
 0xdc2   : > { %v3987_v36 = vpop.f32.mrf.mxu1  ;;  %v4100_v35 = vpop.f32.mrf.mxu0  ;;  %v4238_v28 = vmul.f32 0.044715, %v9682_v14  ;;  %v4240_v19 = vmul.f32 0.044715, %v9685_v4 }
 0xdc3   : > { %v4365_v48 = vmul.f32 %v4301_v9, %v9674_v55  ;;  %v4367_v20 = vmul.f32 %v4303_v43, %v9677_v5  ;;  %v4241_v37 = vmul.f32 0.044715, %v9690_v50  ;;  %v4243_v25 = vmul.f32 0.044715, %v9693_v29 }
 0xdc4   : > { %v3991_v2 = vpop.f32.mrf.mxu1  ;;  %v4104_v15 = vpop.f32.mrf.mxu0  ;;  %v9705_v49 = vadd.f32 %v3987_v36, %v9669_v1  ;;  %v9709_v59 = vadd.f32 %v4100_v35, %v9671_v58  ;;  %v4302_v13 = vmul.f32 %v4238_v28, %v9682_v14 }
 0xdc5   : > { %v4429_v16 = vadd.f32 %v4365_v48, %v9674_v55  ;;  %v4431_v51 = vadd.f32 %v4367_v20, %v9677_v5  ;;  %v4305_v11 = vmul.f32 %v4241_v37, %v9690_v50  ;;  %v4307_v61 = vmul.f32 %v4243_v25, %v9693_v29 }
 0xdc6   : > { %v3993_v34 = vpop.f32.mrf.mxu1  ;;  %v4106_v42 = vpop.f32.mrf.mxu0  ;;  %v4242_v6 = vmul.f32 0.044715, %v9705_v49  ;;  %v9716_v48 = vadd.f32 %v3991_v2, %v9661_v32  ;;  %v9719_v36 = vadd.f32 %v4104_v15, %v9665_v30  ;;  %v4304_v37 = vmul.f32 %v4240_v19, %v9685_v4 }
 0xdc7   : > { %v4369_v57 = vmul.f32 %v4305_v11, %v9690_v50  ;;  %v4493_v9 = vmul.f32 0.7978846, %v4429_v16  ;;  %v4371_v43 = vmul.f32 %v4307_v61, %v9693_v29  ;;  %v4495_v35 = vmul.f32 0.7978846, %v4431_v51 }
 0xdc8   : > { %v3995_v20 = vpop.f32.mrf.mxu1  ;;  %v4108_v25 = vpop.f32.mrf.mxu0  ;;  %v4244_v28 = vmul.f32 0.044715, %v9709_v59  ;;  %v4245_v11 = vmul.f32 0.044715, %v9716_v48  ;;  %v9725_v54 = vadd.f32 %v3993_v34, %v9669_v1  ;;  %v4366_v16 = vmul.f32 %v4302_v13, %v9682_v14 }
 0xdc9   : > { %v4433_v2 = vadd.f32 %v4369_v57, %v9690_v50  ;;  %v4306_v61 = vmul.f32 %v4242_v6, %v9705_v49  ;;  %v4247_v15 = vmul.f32 0.044715, %v9719_v36  ;;  %6913 = vtanh.f32 %v4493_v9 }
 0xdca   : > { %v4435_v51 = vadd.f32 %v4371_v43, %v9693_v29  ;;  %v4309_v19 = vmul.f32 %v4245_v11, %v9716_v48  ;;  %v9734_v38 = vadd.f32 %v4106_v42, %v9671_v58  ;;  %v3997_v27 = vpop.f32.mrf.mxu1  ;;  %6915 = vtanh.f32 %v4495_v35  ;;  %v4110_v6 = vpop.f32.mrf.mxu0 }
 0xdcb   : > { %v4368_v34 = vmul.f32 %v4304_v37, %v9685_v4  ;;  %v4311_v13 = vmul.f32 %v4247_v15, %v9719_v36  ;;  %v9739_v57 = vadd.f32 %v3995_v20, %v9661_v32  ;;  %v4308_v46 = vmul.f32 %v4244_v28, %v9709_v59 }
 0xdcc   : > { %v4373_v9 = vmul.f32 %v4309_v19, %v9716_v48  ;;  %v4246_v43 = vmul.f32 0.044715, %v9725_v54  ;;  %v9745_v11 = vadd.f32 %v4108_v25, %v9665_v30  ;;  %v4497_v42 = vmul.f32 0.7978846, %v4433_v2 }
 0xdcd   : > { %v4370_v35 = vmul.f32 %v4306_v61, %v9705_v49  ;;  %v4249_v37 = vmul.f32 0.044715, %v9739_v57  ;;  %v9750_v15 = vadd.f32 %v3997_v27, %v9669_v1  ;;  %v4499_v20 = vmul.f32 0.7978846, %v4435_v51 }
 0xdce   : > { %v4248_v41 = vmul.f32 0.044715, %v9734_v38  ;;  %v4251_v28 = vmul.f32 0.044715, %v9745_v11  ;;  %v9755_v19 = vadd.f32 %v4110_v6, %v9671_v58  ;;  %v4437_v23 = vadd.f32 %v4373_v9, %v9716_v48 }
 0xdcf   : > { %v4375_v25 = vmul.f32 %v4311_v13, %v9719_v36  ;;  %v4313_v2 = vmul.f32 %v4249_v37, %v9739_v57  ;;  %v4250_v61 = vmul.f32 0.044715, %v9750_v15  ;;  %v4372_v40 = vmul.f32 %v4308_v46, %v9709_v59 }
 0xdd0   : > { %v4310_v27 = vmul.f32 %v4246_v43, %v9725_v54  ;;  %v4315_v51 = vmul.f32 %v4251_v28, %v9745_v11  ;;  %v4252_v10 = vmul.f32 0.044715, %v9755_v19  ;;  %6917 = vtanh.f32 %v4497_v42 }
 0xdd1   : > { %v4377_v6 = vmul.f32 %v4313_v2, %v9739_v57  ;;  %v4314_v45 = vmul.f32 %v4250_v61, %v9750_v15  ;;  %v4430_v9 = vadd.f32 %v4366_v16, %v9682_v14  ;;  %6919 = vtanh.f32 %v4499_v20 }
 0xdd2   : > { %v4312_v13 = vmul.f32 %v4248_v41, %v9734_v38  ;;  %v4379_v37 = vmul.f32 %v4315_v51, %v9745_v11  ;;  %v4434_v46 = vadd.f32 %v4370_v35, %v9705_v49  ;;  %v4501_v7 = vmul.f32 0.7978846, %v4437_v23 }
 0xdd3   : > { %v4439_v43 = vadd.f32 %v4375_v25, %v9719_v36  ;;  %v4441_v28 = vadd.f32 %v4377_v6, %v9739_v57  ;;  %v4494_v52 = vmul.f32 0.7978846, %v4430_v9  ;;  %v4374_v42 = vmul.f32 %v4310_v27, %v9725_v54 }
 0xdd4   : > { %v4443_v2 = vadd.f32 %v4379_v37, %v9745_v11  ;;  %v4316_v61 = vmul.f32 %v4252_v10, %v9755_v19  ;;  %v4498_v16 = vmul.f32 0.7978846, %v4434_v46  ;;  %v4378_v41 = vmul.f32 %v4314_v45, %v9750_v15 }
 0xdd5   : > { %v4505_v20 = vmul.f32 0.7978846, %v4441_v28  ;;  %6921 = vtanh.f32 %v4494_v52  ;;  %v4432_v51 = vadd.f32 %v4368_v34, %v9685_v4  ;;  %v4436_v23 = vadd.f32 %v4372_v40, %v9709_v59 }
 0xdd6   : > { %6923 = vtanh.f32 %v4498_v16  ;;  %v6914_v35 = vpop.eup %6913  ;;  %v4503_v25 = vmul.f32 0.7978846, %v4439_v43  ;;  %v4376_v6 = vmul.f32 %v4312_v13, %v9734_v38  ;;  %v4507_v37 = vmul.f32 0.7978846, %v4443_v2 }
 0xdd7   : > { %6925 = vtanh.f32 %v4501_v7  ;;  %v4496_v27 = vmul.f32 0.7978846, %v4432_v51  ;;  %v6916_v9 = vpop.eup %6915  ;;  %v4380_v10 = vmul.f32 %v4316_v61, %v9755_v19  ;;  %v4500_v46 = vmul.f32 0.7978846, %v4436_v23 }
 0xdd8   : > { %6927 = vtanh.f32 %v4505_v20  ;;  %v4438_v52 = vadd.f32 %v4374_v42, %v9725_v54  ;;  %v4442_v45 = vadd.f32 %v4378_v41, %v9750_v15  ;;  %v4440_v7 = vadd.f32 %v4376_v6, %v9734_v38 }
 0xdd9   : > { %6929 = vtanh.f32 %v4496_v27  ;;  %v4444_v13 = vadd.f32 %v4380_v10, %v9755_v19  ;;  %v4621_v41 = vadd.f32 1.0, %v6914_v35  ;;  %v4177_v51 = vmul.f32 0.5, %v9690_v50 }
 0xdda   : > { %6931 = vtanh.f32 %v4500_v46  ;;  %v4502_v40 = vmul.f32 0.7978846, %v4438_v52  ;;  %v4506_v34 = vmul.f32 0.7978846, %v4442_v45  ;;  %v4504_v43 = vmul.f32 0.7978846, %v4440_v7 }
 0xddb   : > { %6933 = vtanh.f32 %v4503_v25  ;;  %v4508_v2 = vmul.f32 0.7978846, %v4444_v13  ;;  %v4174_v6 = vmul.f32 0.5, %v9682_v14  ;;  %v4178_v27 = vmul.f32 0.5, %v9705_v49 }
 0xddc   : > { %6935 = vtanh.f32 %v4507_v37  ;;  %v4173_v46 = vmul.f32 0.5, %v9674_v55  ;;  %v4175_v50 = vmul.f32 0.5, %v9677_v5  ;;  %v4176_v49 = vmul.f32 0.5, %v9685_v4 }
 0xddd   : > { %6937 = vtanh.f32 %v4502_v40  ;;  %v6918_v28 = vpop.eup %6917  ;;  %v4182_v5 = vmul.f32 0.5, %v9725_v54  ;;  %v4185_v4 = vmul.f32 0.5, %v9739_v57 }
 0xdde   : > { %6939 = vtanh.f32 %v4506_v34  ;;  %v6920_v61 = vpop.eup %6919  ;;  %v4625_v42 = vadd.f32 1.0, %v6918_v28  ;;  %v4623_v34 = vadd.f32 1.0, %v6916_v9  ;;  %v4685_v35 = vmul.f32 %v4621_v41, %v4173_v46 }
 0xddf   : > { %6941 = vtanh.f32 %v4504_v43  ;;  %v4627_v45 = vadd.f32 1.0, %v6920_v61  ;;  %v4179_v28 = vmul.f32 0.5, %v9693_v29 }
 0xde0   : > { %6943 = vtanh.f32 %v4508_v2  ;;  %v4689_v52 = vmul.f32 %v4625_v42, %v4177_v51 }
 0xde1   : > { %v4691_v51 = vmul.f32 %v4627_v45, %v4179_v28  ;;  %v4181_v45 = vmul.f32 0.5, %v9716_v48 }
 0xde2   : > { %v6922_v16 = vpop.eup %6921  ;;  %v4749_v61 = vpack.c.bf16 %v4689_v52, %v4685_v35 }
 0xde3   : > { %v6924_v20 = vpop.eup %6923  ;;  %v4622_v23 = vadd.f32 1.0, %v6922_v16 }
 0xde4   : > { %v6926_v25 = vpop.eup %6925  ;;  %v4626_v37 = vadd.f32 1.0, %v6924_v20  ;;  %v4180_v20 = vmul.f32 0.5, %v9709_v59 }
 0xde5   : > { %v6928_v10 = vpop.eup %6927  ;;  %v4686_v7 = vmul.f32 %v4622_v23, %v4174_v6  ;;  %v4687_v6 = vmul.f32 %v4623_v34, %v4175_v50  ;;  %v4629_v59 = vadd.f32 1.0, %v6926_v25  ;;  %v4188_v25 = vmul.f32 0.5, %v9755_v19 }
 0xde6   : > { %v6930_v40 = vpop.eup %6929  ;;  %v4690_v13 = vmul.f32 %v4626_v37, %v4178_v27  ;;  %v4633_v9 = vadd.f32 1.0, %v6928_v10  ;;  %v4186_v37 = vmul.f32 0.5, %v9750_v15  ;;  %v4184_v10 = vmul.f32 0.5, %v9734_v38 }
 0xde7   : > { %v6932_v43 = vpop.eup %6931  ;;  %v4624_v2 = vadd.f32 1.0, %v6930_v40  ;;  %v4693_v28 = vmul.f32 %v4629_v59, %v4181_v45  ;;  %v4187_v38 = vmul.f32 0.5, %v9745_v11 }
 0xde8   : > { %v6934_v14 = vpop.eup %6933  ;;  %v4750_v16 = vpack.c.bf16 %v4690_v13, %v4686_v7  ;;  %v4628_v55 = vadd.f32 1.0, %v6932_v43  ;;  %v4751_v13 = vpack.c.bf16 %v4691_v51, %v4687_v6  ;;  %v4697_v43 = vmul.f32 %v4633_v9, %v4185_v4 }
 0xde9   : > { %v6936_v42 = vpop.eup %6935  ;;  %v4688_v41 = vmul.f32 %v4624_v2, %v4176_v49  ;;  %v4631_v48 = vadd.f32 1.0, %v6934_v14 }
 0xdea   : > { %v6938_v23 = vpop.eup %6937  ;;  %5076 = vmatprep.mubr.bf16.mxu1 %v4750_v16  ;;  %v4692_v27 = vmul.f32 %v4628_v55, %v4180_v20  ;;  %v4635_v35 = vadd.f32 1.0, %v6936_v42  ;;  %v4753_v49 = vpack.c.bf16 %v4697_v43, %v4693_v28  ;;  %v4183_v20 = vmul.f32 0.5, %v9719_v36 }
 0xdeb   : > { %v6940_v29 = vpop.eup %6939  ;;  %5077 = vmatmul.mubr.bf16.vlgmr.msra.gmra.mxu1 %v4749_v61  ;;  %v4630_v46 = vadd.f32 1.0, %v6938_v23 }
 0xdec   : > { %v6942_v40 = vpop.eup %6941  ;;  %v4752_v7 = vpack.c.bf16 %v4692_v27, %v4688_v41  ;;  %v4634_v52 = vadd.f32 1.0, %v6940_v29  ;;  %6192 = vmatpush3.bf16.msra.mxu1 %v9587_v26  ;;  %v4695_v19 = vmul.f32 %v4631_v48, %v4183_v20 }
 0xded   : > { %v6944_v34 = vpop.eup %6943  ;;  %v4632_v54 = vadd.f32 1.0, %v6942_v40  ;;  %6185 = vmatprep.subr.bf16.mxu1 %v9595_v56  ;;  %v4694_v15 = vmul.f32 %v4630_v46, %v4182_v5  ;;  %v4699_v56 = vmul.f32 %v4635_v35, %v4187_v38 }
 0xdee   : > { %5173 = vmatprep.mubr.bf16.mxu0 %v4752_v7  ;;  %v4698_v57 = vmul.f32 %v4634_v52, %v4186_v37  ;;  %v4636_v50 = vadd.f32 1.0, %v6944_v34 }
 0xdef   : > { %5174 = vmatmul.mubr.bf16.vlgmr.msra.gmra.mxu0 %v4751_v13  ;;  %v4696_v26 = vmul.f32 %v4632_v54, %v4184_v10  ;;  %v4755_v11 = vpack.c.bf16 %v4699_v56, %v4695_v19 }
 0xdf0   : > { %v4754_v2 = vpack.c.bf16 %v4698_v57, %v4694_v15  ;;  %v4700_v16 = vmul.f32 %v4636_v50, %v4188_v25  ;;  %6193 = vmatpush3.bf16.msra.mxu1 %v9597_v12 }
 0xdf1   : > { %6186 = vmatprep.subr.bf16.mxu1 %v9605_v63 }
 0xdf2   : > { %5084 = vmatprep.mubr.bf16.mxu1 %v4754_v2  ;;  %v4756_v55 = vpack.c.bf16 %v4700_v16, %v4696_v26 }
 0xdf3   : > { %5085 = vmatmul.mubr.bf16.gmra.mxu1 %v4753_v49 }
 0xdf4   : > { %5181 = vmatprep.mubr.bf16.mxu0 %v4756_v55  ;;  %6194 = vmatpush3.bf16.msra.mxu1 %v9607_v31 }
 0xdf5   : > { %6187 = vmatprep.subr.bf16.mxu1 %v9615_v22 }
 0xdf6   : > { %v4001_v42 = vpop.f32.mrf.mxu1  ;;  %v4114_v61 = vpop.f32.mrf.mxu0 }
 0xdf7   : > { %v4002_v14 = vadd.f32 %v4001_v42, %v9661_v32  ;;  %5182 = vmatmul.mubr.bf16.gmra.mxu0 %v4755_v11  ;;  %v4115_v36 = vadd.f32 %v4114_v61, %v9665_v30 }
 0xdf8   : > { %v4003_v12 = vpop.f32.mrf.mxu1  ;;  %v4116_v51 = vpop.f32.mrf.mxu0  ;;  %6195 = vmatpush3.bf16.msra.mxu1 %v9618_v53 }
 0xdf9   : > { %v4253_v23 = vmul.f32 0.044715, %v4002_v14  ;;  %6188 = vmatprep.subr.bf16.mxu1 %v9624_v0  ;;  %v4255_v31 = vmul.f32 0.044715, %v4115_v36  ;;  %v9820_v0 = vadd.f32 %v4003_v12, %v9669_v1  ;;  %v9823_v59 = vadd.f32 %v4116_v51, %v9671_v58 }
 0xdfa   : > { %v4005_v63 = vpop.f32.mrf.mxu1  ;;  %v4118_v9 = vpop.f32.mrf.mxu0  ;;  %v9852_v26 = vmul.f32 0.5, %v4002_v14  ;;  %v9854_v16 = vmul.f32 0.5, %v4115_v36 }
 0xdfb   : > { %v9812_v27 = vadd.f32 %v4005_v63, %v9661_v32  ;;  %v4317_v29 = vmul.f32 %v4253_v23, %v4002_v14  ;;  %v9817_v37 = vadd.f32 %v4118_v9, %v9665_v30  ;;  %v4319_v4 = vmul.f32 %v4255_v31, %v4115_v36 }
 0xdfc   : > { %v4007_v6 = vpop.f32.mrf.mxu1  ;;  %v4120_v41 = vpop.f32.mrf.mxu0  ;;  %6196 = vmatpush3.bf16.msra.mxu1 %v9627_v18  ;;  %v4254_v13 = vmul.f32 0.044715, %v9820_v0  ;;  %v4256_v54 = vmul.f32 0.044715, %v9823_v59  ;;  %v9860_v56 = vmul.f32 0.5, %v9820_v0 }
 0xdfd   : > { %6189 = vmatprep.subr.bf16.mxu1 %v9634_v44  ;;  %v4257_v40 = vmul.f32 0.044715, %v9812_v27  ;;  %v4381_v18 = vmul.f32 %v4317_v29, %v4002_v14  ;;  %v4259_v10 = vmul.f32 0.044715, %v9817_v37  ;;  %v4383_v34 = vmul.f32 %v4319_v4, %v4115_v36 }
 0xdfe   : > { %v4011_v5 = vpop.f32.mrf.mxu1  ;;  %v4124_v22 = vpop.f32.mrf.mxu0  ;;  %v9840_v35 = vadd.f32 %v4007_v6, %v9669_v1  ;;  %v4318_v49 = vmul.f32 %v4254_v13, %v9820_v0 }
 0xdff   : > { %v9828_v7 = vadd.f32 %v4011_v5, %v9661_v32  ;;  %v9833_v45 = vadd.f32 %v4124_v22, %v9665_v30  ;;  %v4445_v43 = vadd.f32 %v4381_v18, %v4002_v14  ;;  %v4323_v25 = vmul.f32 %v4259_v10, %v9817_v37 }
 0xe00   : > { %v4013_v53 = vpop.f32.mrf.mxu1  ;;  %v4126_v46 = vpop.f32.mrf.mxu0  ;;  %6197 = vmatpush3.bf16.msra.mxu1 %v9637_v33  ;;  %v4321_v33 = vmul.f32 %v4257_v40, %v9812_v27  ;;  %v4447_v38 = vadd.f32 %v4383_v34, %v4115_v36  ;;  %v4258_v19 = vmul.f32 0.044715, %v9840_v35  ;;  %v9886_v5 = vmul.f32 %v4318_v49, %v9820_v0 }
 0xe01   : > { %10800 = vst [vmem:[#allocation31_spill] sm:$0xff] %v9828_v7  ;;  %6190 = vmatprep.subr.bf16.mxu1 %v9641_v8  ;;  %10801 = vst [vmem:[#allocation42_spill] sm:$0xff] %v9833_v45  ;;  %v4261_v8 = vmul.f32 0.044715, %v9828_v7  ;;  %v4263_v50 = vmul.f32 0.044715, %v9833_v45  ;;  %v4387_v12 = vmul.f32 %v4323_v25, %v9817_v37  ;;  %v9880_v23 = vadd.f32 %v4013_v53, %v9669_v1 }
 0xe02   : > { %v4015_v44 = vpop.f32.mrf.mxu1  ;;  %v4128_v52 = vpop.f32.mrf.mxu0  ;;  %v4385_v20 = vmul.f32 %v4321_v33, %v9812_v27  ;;  %v4509_v55 = vmul.f32 0.7978846, %v4445_v43  ;;  %v4511_v63 = vmul.f32 0.7978846, %v4447_v38  ;;  %v9893_v4 = vadd.f32 %v4126_v46, %v9671_v58 }
 0xe03   : > { %v9847_v28 = vadd.f32 %v4015_v44, %v9661_v32  ;;  %v4325_v42 = vmul.f32 %v4261_v8, %v9828_v7  ;;  %v9866_v61 = vadd.f32 %v4128_v52, %v9665_v30  ;;  %v4327_v51 = vmul.f32 %v4263_v50, %v9833_v45 }
 0xe04   : > { %6198 = vmatpush3.bf16.msra.mxu1 %v9644_v24  ;;  %v4017_v15 = vpop.f32.mrf.mxu1  ;;  %v4130_v57 = vpop.f32.mrf.mxu0  ;;  %v9850_v24 = vadd.f32 %v4120_v41, %v9671_v58  ;;  %v4449_v29 = vadd.f32 %v4385_v20, %v9812_v27  ;;  %10806 = vst [vmem:[#allocation46_spill] sm:$0xff] %v9893_v4  ;;  %6945 = vtanh.f32 %v4509_v55  ;;  %v4322_v53 = vmul.f32 %v4258_v19, %v9840_v35 }
 0xe05   : > { %6191 = vmatprep.subr.bf16.mxu1 %v9646_v47  ;;  %10802 = vst [vmem:[#allocation43_spill] sm:$0xff] %v9847_v28  ;;  %v4320_v47 = vmul.f32 %v4256_v54, %v9823_v59  ;;  %10803 = vst [vmem:[#allocation66_spill] sm:$0xff] %v9866_v61  ;;  %v4265_v36 = vmul.f32 0.044715, %v9847_v28  ;;  %v4389_v40 = vmul.f32 %v4325_v42, %v9828_v7  ;;  %v4267_v18 = vmul.f32 0.044715, %v9866_v61 }
 0xe06   : > { %v4260_v9 = vmul.f32 0.044715, %v9850_v24  ;;  %v4451_v10 = vadd.f32 %v4387_v12, %v9817_v37  ;;  %v4391_v34 = vmul.f32 %v4327_v51, %v9833_v45  ;;  %6947 = vtanh.f32 %v4511_v63 }
 0xe07   : > { %v9889_v22 = vmul.f32 %v4320_v47, %v9823_v59  ;;  %v4329_v13 = vmul.f32 %v4265_v36, %v9847_v28  ;;  %v4262_v33 = vmul.f32 0.044715, %v9880_v23  ;;  %v4513_v50 = vmul.f32 0.7978846, %v4449_v29 }
 0xe08   : > { %6199 = vmatpush3.bf16.msra.mxu1 %v9650_v21  ;;  %v9876_v21 = vmul.f32 0.5, %v9823_v59  ;;  %v4324_v54 = vmul.f32 %v4260_v9, %v9850_v24  ;;  %v4264_v38 = vmul.f32 0.044715, %v9893_v4  ;;  %v4331_v47 = vmul.f32 %v4267_v18, %v9866_v61 }
 0xe09   : > { %v4021_v48 = vpop.f32.mrf.mxu1  ;;  %v4134_v2 = vpop.f32.mrf.mxu0  ;;  %v9921_v20 = vadd.f32 %v4130_v57, %v9671_v58  ;;  %v4515_v12 = vmul.f32 0.7978846, %v4451_v10  ;;  %v4393_v51 = vmul.f32 %v4329_v13, %v9847_v28  ;;  %v9934_v63 = vmul.f32 %v4322_v53, %v9840_v35 }
 0xe0a   : > { %10804 = vst [vmem:[#allocation68_spill] sm:$0xff] %v9876_v21  ;;  %v9883_v6 = vadd.f32 %v4021_v48, %v9661_v32  ;;  %v9906_v46 = vadd.f32 %v4134_v2, %v9665_v30  ;;  %v9913_v48 = vadd.f32 %v4017_v15, %v9669_v1  ;;  %v4453_v2 = vadd.f32 %v4389_v40, %v9828_v7 }
 0xe0b   : > { %v9868_v11 = vpop.f32.mrf.mxu1  ;;  %v9870_v14 = vpop.f32.mrf.mxu0  ;;  %10809 = vst [vmem:[#allocation47_spill] sm:$0xff] %v9921_v20  ;;  %v4455_v15 = vadd.f32 %v4391_v34, %v9833_v45  ;;  %v9937_v57 = vmul.f32 %v4324_v54, %v9850_v24  ;;  %v4326_v9 = vmul.f32 %v4262_v33, %v9880_v23  ;;  %6949 = vtanh.f32 %v4513_v50 }
 0xe0c   : > { %10805 = vst [vmem:[#allocation45_spill] sm:$0xff] %v9883_v6  ;;  %10807 = vst [vmem:[#allocation30_spill] sm:$0xff] %v9906_v46  ;;  %v4269_v43 = vmul.f32 0.044715, %v9883_v6  ;;  %v4271_v36 = vmul.f32 0.044715, %v9906_v46  ;;  %v4328_v29 = vmul.f32 %v4264_v38, %v9893_v4  ;;  %v4395_v53 = vmul.f32 %v4331_v47, %v9866_v61 }
 0xe0d   : > { %v4025_v41 = vpop.f32.mrf.mxu1  ;;  %v4138_v31 = vpop.f32.mrf.mxu0  ;;  %v4266_v40 = vmul.f32 0.044715, %v9913_v48  ;;  %v4517_v34 = vmul.f32 0.7978846, %v4453_v2  ;;  %v4268_v13 = vmul.f32 0.044715, %v9921_v20  ;;  %6951 = vtanh.f32 %v4515_v12 }
 0xe0e   : > { %v9916_v49 = vadd.f32 %v4025_v41, %v9661_v32  ;;  %v9924_v55 = vadd.f32 %v4138_v31, %v9665_v30  ;;  %v4333_v41 = vmul.f32 %v4269_v43, %v9883_v6  ;;  %v4519_v33 = vmul.f32 0.7978846, %v4455_v15 }
 0xe0f   : > { %v9898_v44 = vpop.f32.mrf.mxu1  ;;  %v9900_v52 = vpop.f32.mrf.mxu0  ;;  %v4457_v43 = vadd.f32 %v4393_v51, %v9847_v28  ;;  %v4335_v50 = vmul.f32 %v4271_v36, %v9906_v46  ;;  %v9952_v38 = vmul.f32 %v4326_v9, %v9880_v23  ;;  %v9957_v2 = vadd.f32 %v9868_v11, %v9669_v1 }
 0xe10   : > { %10808 = vst [vmem:[#allocation67_spill] sm:$0xff] %v9916_v49  ;;  %10810 = vst [vmem:[#allocation51_spill] sm:$0xff] %v9924_v55  ;;  %v4273_v18 = vmul.f32 0.044715, %v9916_v49  ;;  %v4275_v54 = vmul.f32 0.044715, %v9924_v55  ;;  %v4397_v60 = vmul.f32 %v4333_v41, %v9883_v6  ;;  %v9961_v47 = vadd.f32 %v9870_v14, %v9671_v58 }
 0xe11   : > { %v4031_v8 = vpop.f32.mrf.mxu1  ;;  %v4144_v25 = vpop.f32.mrf.mxu0  ;;  %v9964_v12 = vmul.f32 %v4328_v29, %v9893_v4  ;;  %v4330_v15 = vmul.f32 %v4266_v40, %v9913_v48  ;;  %6953 = vtanh.f32 %v4517_v34  ;;  %v4459_v11 = vadd.f32 %v4395_v53, %v9866_v61 }
 0xe12   : > { %10811 = vst [vmem:[#allocation74_spill] sm:$0xff] %v9961_v47  ;;  %v4337_v51 = vmul.f32 %v4273_v18, %v9916_v49  ;;  %v9969_v36 = vadd.f32 %v4031_v8, %v9661_v32  ;;  %v4332_v41 = vmul.f32 %v4268_v13, %v9921_v20  ;;  %v4339_v14 = vmul.f32 %v4275_v54, %v9924_v55  ;;  %v9976_v17 = vpop.eup %6945 }
 0xe13   : > { %v9926_v19 = vpop.f32.mrf.mxu1  ;;  %v9928_v42 = vpop.f32.mrf.mxu0  ;;  %10812 = vst [vmem:[#allocation76_spill] sm:$0xff] %v9964_v12  ;;  %6955 = vtanh.f32 %v4519_v33  ;;  %v4521_v29 = vmul.f32 0.7978846, %v4457_v43  ;;  %v4399_v40 = vmul.f32 %v4335_v50, %v9906_v46  ;;  %v9980_v18 = vadd.f32 %v4144_v25, %v9665_v30 }
 0xe14   : > { %10813 = vst [vmem:[#allocation73_spill] sm:$0xff] %v9969_v36  ;;  %v4461_v62 = vadd.f32 %v4397_v60, %v9883_v6  ;;  %v4270_v34 = vmul.f32 0.044715, %v9957_v2  ;;  %v4272_v53 = vmul.f32 0.044715, %v9961_v47  ;;  %v9987_v13 = vadd.f32 %v9898_v44, %v9669_v1  ;;  %v9989_v54 = vpop.eup %6947 }
 0xe15   : > { %v4035_v31 = vpop.f32.mrf.mxu1  ;;  %v4148_v10 = vpop.f32.mrf.mxu0  ;;  %10814 = vst [vmem:[#allocation75_spill] sm:$0xff] %v9980_v18  ;;  %v9992_v33 = vmul.f32 %v4330_v15, %v9913_v48  ;;  %v4401_v43 = vmul.f32 %v4337_v51, %v9916_v49  ;;  %v9997_v25 = vadd.f32 %v9900_v52, %v9671_v58  ;;  %v4277_v60 = vmul.f32 0.044715, %v9969_v36 }
 0xe16   : > { %v4523_v3 = vmul.f32 0.7978846, %v4459_v11  ;;  %v10001_v6 = vmul.f32 %v4332_v41, %v9921_v20  ;;  %v4403_v44 = vmul.f32 %v4339_v14, %v9924_v55  ;;  %v10005_v61 = vadd.f32 %v4035_v31, %v9661_v32 }
 0xe17   : > { %v9949_v39 = vpop.f32.mrf.mxu1  ;;  %v9971_v9 = vpop.f32.mrf.mxu0  ;;  %6957 = vtanh.f32 %v4521_v29  ;;  %v4463_v15 = vadd.f32 %v4399_v40, %v9906_v46  ;;  %v4279_v51 = vmul.f32 0.044715, %v9980_v18  ;;  %v10010_v52 = vadd.f32 %v4148_v10, %v9665_v30 }
 0xe18   : > { %10815 = vst [vmem:[#allocation53_spill] sm:$0xff] %v10001_v6  ;;  %10816 = vst [vmem:[#allocation50_spill] sm:$0xff] %v10005_v61  ;;  %v4525_v28 = vmul.f32 0.7978846, %v4461_v62  ;;  %v4334_v11 = vmul.f32 %v4270_v34, %v9957_v2  ;;  %v4336_v41 = vmul.f32 %v4272_v53, %v9961_v47  ;;  %v4274_v14 = vmul.f32 0.044715, %v9987_v13  ;;  %v10026_v7 = vpop.eup %6949 }
 0xe19   : > { %v4041_v8 = vpop.f32.mrf.mxu1  ;;  %v4154_v50 = vpop.f32.mrf.mxu0  ;;  %10817 = vst [vmem:[#allocation52_spill] sm:$0xff] %v10010_v52  ;;  %v4465_v31 = vadd.f32 %v4401_v43, %v9916_v49  ;;  %v4276_v29 = vmul.f32 0.044715, %v9997_v25  ;;  %v4341_v40 = vmul.f32 %v4277_v60, %v9969_v36  ;;  %v10022_v46 = vadd.f32 %v9926_v19, %v9669_v1 }
 0xe1a   : > { %6959 = vtanh.f32 %v4523_v3  ;;  %v4467_v62 = vadd.f32 %v4403_v44, %v9924_v55  ;;  %v10031_v34 = vadd.f32 %v9928_v42, %v9671_v58  ;;  %v4281_v53 = vmul.f32 0.044715, %v10005_v61  ;;  %v10039_v20 = vpop.eup %6951 }
 0xe1b   : > { %v10012_v45 = vpop.f32.mrf.mxu1  ;;  %v10024_v10 = vpop.f32.mrf.mxu0  ;;  %v4527_v43 = vmul.f32 0.7978846, %v4463_v15  ;;  %v4343_v60 = vmul.f32 %v4279_v51, %v9980_v18  ;;  %v4283_v49 = vmul.f32 0.044715, %v10010_v52  ;;  %v10037_v19 = vadd.f32 %v4041_v8, %v9661_v32 }
 0xe1c   : > { %6961 = vtanh.f32 %v4525_v28  ;;  %v10042_v3 = vmul.f32 %v4334_v11, %v9957_v2  ;;  %v10045_v42 = vmul.f32 %v4336_v41, %v9961_v47  ;;  %v4338_v44 = vmul.f32 %v4274_v14, %v9987_v13 }
 0xe1d   : > { %10818 = vst [vmem:[#allocation49_spill] sm:$0xff] %v10037_v19  ;;  %v4045_v6 = vpop.f32.mrf.mxu1  ;;  %v4529_v15 = vmul.f32 0.7978846, %v4465_v31  ;;  %v4340_v51 = vmul.f32 %v4276_v29, %v9997_v25  ;;  %v4405_v55 = vmul.f32 %v4341_v40, %v9969_v36  ;;  %v4278_v8 = vmul.f32 0.044715, %v10022_v46  ;;  %v4158_v12 = vpop.f32.mrf.mxu0 }
 0xe1e   : > { %10819 = vst [vmem:[#allocation55_spill] sm:$0xff] %v10045_v42  ;;  %v4531_v4 = vmul.f32 0.7978846, %v4467_v62  ;;  %v4280_v21 = vmul.f32 0.044715, %v10031_v34  ;;  %v4345_v28 = vmul.f32 %v4281_v53, %v10005_v61  ;;  %v10054_v11 = vadd.f32 %v4045_v6, %v9661_v32  ;;  %v10056_v41 = vpop.eup %6953 }
 0xe1f   : > { %10821 = vst [vmem:[#allocation54_spill] sm:$0xff] %v10056_v41  ;;  %6963 = vtanh.f32 %v4527_v43  ;;  %v4407_v14 = vmul.f32 %v4343_v60, %v9980_v18  ;;  %v4347_v31 = vmul.f32 %v4283_v49, %v10010_v52  ;;  %v4285_v29 = vmul.f32 0.044715, %v10037_v19  ;;  %v10074_v43 = vpop.f32.mrf.mxu1 }
 0xe20   : > { %10820 = vst [vmem:[#allocation57_spill] sm:$0xff] %v10054_v11  ;;  %v10061_v40 = vpop.eup %6955  ;;  %v10064_v62 = vmul.f32 %v4338_v44, %v9987_v13  ;;  %v10068_v53 = vadd.f32 %v9949_v39, %v9669_v1  ;;  %v4289_v6 = vmul.f32 0.044715, %v10054_v11  ;;  %v10072_v41 = vadd.f32 %v4158_v12, %v9665_v30 }
 0xe21   : > { %10822 = vst [vmem:[#allocation56_spill] sm:$0xff] %v10061_v40  ;;  %6965 = vtanh.f32 %v4529_v15  ;;  %v10077_v49 = vmul.f32 %v4340_v51, %v9997_v25  ;;  %v4469_v60 = vadd.f32 %v4405_v55, %v9969_v36  ;;  %v4342_v44 = vmul.f32 %v4278_v8, %v10022_v46 }
 0xe22   : > { %10823 = vst [vmem:[#allocation44_spill] sm:$0xff] %v10072_v41  ;;  %6967 = vtanh.f32 %v4531_v4  ;;  %v4344_v40 = vmul.f32 %v4280_v21, %v10031_v34  ;;  %v4409_v39 = vmul.f32 %v4345_v28, %v10005_v61  ;;  %v10084_v42 = vadd.f32 %v4154_v50, %v9665_v30  ;;  %v4051_v28 = vpop.f32.mrf.mxu1 }
 0xe23   : > { %v4471_v12 = vadd.f32 %v4407_v14, %v9980_v18  ;;  %v4411_v47 = vmul.f32 %v4347_v31, %v10010_v52  ;;  %v4349_v15 = vmul.f32 %v4285_v29, %v10037_v19  ;;  %v4446_v51 = vadd.f32 %v9886_v5, %v9820_v0 }
 0xe24   : > { %10824 = vst [vmem:[#allocation48_spill] sm:$0xff] %v10084_v42  ;;  %v10091_v55 = vpop.eup %6957  ;;  %v4282_v4 = vmul.f32 0.044715, %v10068_v53  ;;  %v4353_v21 = vmul.f32 %v4289_v6, %v10054_v11  ;;  %v4291_v8 = vmul.f32 0.044715, %v10072_v41  ;;  %v4450_v50 = vadd.f32 %v9934_v63, %v9840_v35 }
 0xe25   : > { %10825 = vst [vmem:[#allocation72_spill] sm:$0xff] %v10091_v55  ;;  %v4533_v14 = vmul.f32 0.7978846, %v4469_v60  ;;  %v10100_v31 = vadd.f32 %v9971_v9, %v9671_v58  ;;  %v4510_v29 = vmul.f32 0.7978846, %v4446_v51  ;;  %v4448_v0 = vadd.f32 %v9889_v22, %v9823_v59 }
 0xe26   : > { %v4473_v5 = vadd.f32 %v4409_v39, %v10005_v61  ;;  %v4287_v18 = vmul.f32 0.044715, %v10084_v42  ;;  %v4514_v6 = vmul.f32 0.7978846, %v4450_v50  ;;  %v4452_v36 = vadd.f32 %v9937_v57, %v9850_v24  ;;  %v10114_v39 = vpop.f32.mrf.mxu1 }
 0xe27   : > { %v10108_v55 = vpop.eup %6959  ;;  %v4475_v63 = vadd.f32 %v4411_v47, %v10010_v52  ;;  %v4413_v60 = vmul.f32 %v4349_v15, %v10037_v19  ;;  %6969 = vtanh.f32 %v4510_v29  ;;  %v4512_v9 = vmul.f32 0.7978846, %v4448_v0  ;;  %v4160_v15 = vpop.f32.mrf.mxu0 }
 0xe28   : > { %v4417_v51 = vmul.f32 %v4353_v21, %v10054_v11  ;;  %v4355_v59 = vmul.f32 %v4291_v8, %v10072_v41  ;;  %6971 = vtanh.f32 %v4514_v6  ;;  %v4516_v22 = vmul.f32 0.7978846, %v4452_v36 }
 0xe29   : > { %v10116_v50 = vpop.eup %6961  ;;  %v4535_v61 = vmul.f32 0.7978846, %v4471_v12  ;;  %v10120_v57 = vadd.f32 %v10012_v45, %v9669_v1  ;;  %v10124_v47 = vadd.f32 %v10024_v10, %v9671_v58  ;;  %6973 = vtanh.f32 %v4512_v9  ;;  %v4055_v9 = vpop.f32.mrf.mxu1 }
 0xe2a   : > { %v4537_v21 = vmul.f32 0.7978846, %v4473_v5  ;;  %v4346_v8 = vmul.f32 %v4282_v4, %v10068_v53  ;;  %v4284_v36 = vmul.f32 0.044715, %v10100_v31  ;;  %v4351_v29 = vmul.f32 %v4287_v18, %v10084_v42 }
 0xe2b   : > { %v10130_v0 = vmul.f32 %v4342_v44, %v10022_v46  ;;  %v4539_v12 = vmul.f32 0.7978846, %v4475_v63  ;;  %v4477_v45 = vadd.f32 %v4413_v60, %v10037_v19  ;;  %6975 = vtanh.f32 %v4516_v22  ;;  %v4164_v60 = vpop.f32.mrf.mxu0 }
 0xe2c   : > { %v10133_v6 = vpop.eup %6963  ;;  %6977 = vtanh.f32 %v4533_v14  ;;  %v4481_v10 = vadd.f32 %v4417_v51, %v10054_v11  ;;  %v4419_v5 = vmul.f32 %v4355_v59, %v10072_v41  ;;  %v10138_v4 = vadd.f32 %v4051_v28, %v9661_v32 }
 0xe2d   : > { %10826 = vst [vmem:[#allocation70_spill] sm:$0xff] %v10133_v6  ;;  %6979 = vtanh.f32 %v4535_v61  ;;  %v10141_v18 = vmul.f32 %v4344_v40, %v10031_v34  ;;  %v4286_v44 = vmul.f32 0.044715, %v10120_v57  ;;  %v4288_v63 = vmul.f32 0.044715, %v10124_v47 }
 0xe2e   : > { %10827 = vst [vmem:[#allocation25_spill] sm:$0xff] %v10138_v4  ;;  %v10145_v22 = vpop.eup %6965  ;;  %6981 = vtanh.f32 %v4537_v21  ;;  %v10148_v14 = vmul.f32 %v4346_v8, %v10068_v53  ;;  %v10151_v51 = vmul.f32 %v4284_v36, %v10100_v31  ;;  %v4415_v28 = vmul.f32 %v4351_v29, %v10084_v42 }
 0xe2f   : > { %v10154_v61 = vpop.eup %6967  ;;  %6983 = vtanh.f32 %v4539_v12  ;;  %v4541_v40 = vmul.f32 0.7978846, %v4477_v45  ;;  %v4641_v59 = vadd.f32 1.0, %v10026_v7  ;;  %v10158_v19 = vadd.f32 %v4055_v9, %v9661_v32  ;;  %v4166_v45 = vpop.f32.mrf.mxu0 }
 0xe30   : > { %10828 = vst [vmem:[#allocation32_spill] sm:$0xff] %v10154_v61  ;;  %v4545_v11 = vmul.f32 0.7978846, %v4481_v10  ;;  %v4483_v21 = vadd.f32 %v4419_v5, %v10072_v41  ;;  %v4637_v8 = vadd.f32 1.0, %v9976_v17  ;;  %v4293_v52 = vmul.f32 0.044715, %v10138_v4 }
 0xe31   : > { %v10164_v36 = vmul.f32 %v4286_v44, %v10120_v57  ;;  %v10167_v29 = vmul.f32 %v4288_v63, %v10124_v47  ;;  %v4193_v12 = vmul.f32 0.5, %v9812_v27  ;;  %v4297_v7 = vmul.f32 0.044715, %v10158_v19 }
 0xe32   : > { %v10172_v32 = vadd.f32 %v4415_v28, %v10084_v42  ;;  %v4194_v10 = vmul.f32 0.5, %v9840_v35  ;;  %v4639_v17 = vadd.f32 1.0, %v9989_v54  ;;  %v4643_v5 = vadd.f32 1.0, %v10039_v20  ;;  %v4168_v54 = vpop.f32.mrf.mxu0 }
 0xe33   : > { %6985 = vtanh.f32 %v4541_v40  ;;  %v4196_v9 = vmul.f32 0.5, %v9850_v24  ;;  %v4705_v44 = vmul.f32 %v4641_v59, %v4193_v12  ;;  %v4195_v63 = vmul.f32 0.5, %v9817_v37 }
 0xe34   : > { %v6970_v41 = vpop.eup %6969  ;;  %6987 = vtanh.f32 %v4545_v11  ;;  %v4547_v27 = vmul.f32 0.7978846, %v4483_v21  ;;  %v4701_v61 = vmul.f32 %v4637_v8, %v9852_v26  ;;  %v4357_v28 = vmul.f32 %v4293_v52, %v10138_v4 }
 0xe35   : > { %v6972_v42 = vpop.eup %6971  ;;  %v4638_v6 = vadd.f32 1.0, %v6970_v41  ;;  %v10183_v35 = vadd.f32 %v10074_v43, %v9669_v1  ;;  %v10186_v20 = vadd.f32 %v4160_v15, %v9671_v58  ;;  %v4361_v24 = vmul.f32 %v4297_v7, %v10158_v19 }
 0xe36   : > { %v6974_v37 = vpop.eup %6973  ;;  %v4642_v40 = vadd.f32 1.0, %v6972_v42  ;;  %v4703_v11 = vmul.f32 %v4639_v17, %v9854_v16  ;;  %v4707_v59 = vmul.f32 %v4643_v5, %v4195_v63  ;;  %v10191_v26 = vadd.f32 %v4164_v60, %v9665_v30 }
 0xe37   : > { %v4640_v52 = vadd.f32 1.0, %v6974_v37  ;;  %v4757_v41 = vpack.c.bf16 %v4705_v44, %v4701_v61  ;;  %v10195_v43 = vadd.f32 %v10114_v39, %v9669_v1  ;;  %v10198_v15 = vadd.f32 %v4166_v45, %v9671_v58  ;;  %v10832_v44 = vld [vmem:[#allocation68_spill] sm:$0xff] }
 0xe38   : > { %v6976_v21 = vpop.eup %6975  ;;  %v4702_v8 = vmul.f32 %v4638_v6, %v9860_v56  ;;  %v4706_v12 = vmul.f32 %v4642_v40, %v4194_v10  ;;  %v4421_v42 = vmul.f32 %v4357_v28, %v10138_v4  ;;  %v10203_v16 = vadd.f32 %v4168_v54, %v9665_v30 }
 0xe39   : > { %v10205_v60 = vpop.eup %6977  ;;  %v4644_v7 = vadd.f32 1.0, %v6976_v21  ;;  %v4290_v61 = vmul.f32 0.044715, %v10183_v35  ;;  %v4292_v39 = vmul.f32 0.044715, %v10186_v20  ;;  %v4425_v17 = vmul.f32 %v4361_v24, %v10158_v19 }
 0xe3a   : > { %10829 = vst [vmem:[#allocation71_spill] sm:$0xff] %v10205_v60  ;;  %v10210_v45 = vpop.eup %6979  ;;  %v4758_v5 = vpack.c.bf16 %v4706_v12, %v4702_v8  ;;  %v4295_v56 = vmul.f32 0.044715, %v10191_v26  ;;  %v4454_v6 = vadd.f32 %v9952_v38, %v9880_v23  ;;  %v4458_v30 = vadd.f32 %v9992_v33, %v9913_v48 }
 0xe3b   : > { %10830 = vst [vmem:[#allocation69_spill] sm:$0xff] %v10210_v45  ;;  %v10217_v10 = vpop.eup %6981  ;;  %v4704_v63 = vmul.f32 %v4640_v52, %v10832_v44  ;;  %v4708_v28 = vmul.f32 %v4644_v7, %v4196_v9  ;;  %v4294_v54 = vmul.f32 0.044715, %v10195_v43  ;;  %v4296_v24 = vmul.f32 0.044715, %v10198_v15  ;;  %v10834_v45 = vld [vmem:[#allocation46_spill] sm:$0xff] }
 0xe3c   : > { %10831 = vst [vmem:[#allocation59_spill] sm:$0xff] %v10217_v10  ;;  %v10222_v37 = vpop.eup %6983  ;;  %5092 = vmatprep.mubr.bf16.mxu1 %v4758_v5  ;;  %v4485_v40 = vadd.f32 %v4421_v42, %v10138_v4  ;;  %v4299_v21 = vmul.f32 0.044715, %v10203_v16  ;;  %v4518_v38 = vmul.f32 0.7978846, %v4454_v6  ;;  %v4489_v33 = vadd.f32 %v4425_v17, %v10158_v19  ;;  %v10835_v52 = vld [vmem:[#allocation76_spill] sm:$0xff] }
 0xe3d   : > { %10833 = vst [vmem:[#allocation61_spill] sm:$0xff] %v10222_v37  ;;  %v4522_v8 = vmul.f32 0.7978846, %v4458_v30  ;;  %v4760_v12 = vpack.c.bf16 %v4708_v28, %v4704_v63  ;;  %5093 = vmatmul.mubr.bf16.gmra.mxu1 %v4757_v41  ;;  %v4456_v9 = vadd.f32 %v10835_v52, %v10834_v45  ;;  %v10836_v7 = vld [vmem:[#allocation47_spill] sm:$0xff]  ;;  %v10837_v44 = vld [vmem:[#allocation53_spill] sm:$0xff]  ;;  %v4759_v10 = vpack.c.bf16 %v4707_v59, %v4703_v11  ;;  %v10838_v52 = vld [vmem:[#allocation74_spill] sm:$0xff] }
 0xe3e   : > { %v4460_v60 = vadd.f32 %v10837_v44, %v10836_v7  ;;  %v4354_v37 = vmul.f32 %v4290_v61, %v10183_v35  ;;  %v4356_v5 = vmul.f32 %v4292_v39, %v10186_v20  ;;  %6989 = vtanh.f32 %v4518_v38 }
 0xe3f   : > { %5189 = vmatprep.mubr.bf16.mxu0 %v4760_v12  ;;  %v4359_v42 = vmul.f32 %v4295_v56, %v10191_v26  ;;  %6991 = vtanh.f32 %v4522_v8  ;;  %v4520_v6 = vmul.f32 0.7978846, %v4456_v9  ;;  %v10238_v17 = vmul.f32 %v10151_v51, %v10100_v31  ;;  %v4170_v8 = vpop.f32.mrf.mxu0 }
 0xe40   : > { %v4524_v41 = vmul.f32 0.7978846, %v4460_v60  ;;  %v10234_v30 = vpop.eup %6985  ;;  %6993 = vtanh.f32 %v4547_v27  ;;  %5190 = vmatmul.mubr.bf16.gmra.mxu0 %v4759_v10  ;;  %v4549_v11 = vmul.f32 0.7978846, %v4485_v40  ;;  %v4358_v59 = vmul.f32 %v4294_v54, %v10195_v43 }
 0xe41   : > { %v10241_v61 = vpop.eup %6987  ;;  %v4360_v39 = vmul.f32 %v4296_v24, %v10198_v15  ;;  %v4553_v63 = vmul.f32 0.7978846, %v4489_v33  ;;  %v4363_v56 = vmul.f32 %v4299_v21, %v10203_v16  ;;  %6995 = vtanh.f32 %v4520_v6  ;;  %v4057_v24 = vpop.f32.mrf.mxu1 }
 0xe42   : > { %v10246_v60 = vmul.f32 0.7978846, %v10172_v32  ;;  %v10250_v51 = vmul.f32 %v10164_v36, %v10120_v57  ;;  %v10254_v27 = vmul.f32 %v10167_v29, %v10124_v47  ;;  %6997 = vtanh.f32 %v4524_v41  ;;  %v10841_v41 = vld [vmem:[#allocation31_spill] sm:$0xff] }
 0xe43   : > { %v10257_v10 = vmul.f32 %v4354_v37, %v10183_v35  ;;  %v10260_v28 = vmul.f32 %v4356_v5, %v10186_v20  ;;  %v10263_v54 = vmul.f32 %v4359_v42, %v10191_v26  ;;  %v4198_v32 = vmul.f32 0.5, %v9880_v23  ;;  %v10840_v5 = vld [vmem:[#allocation54_spill] sm:$0xff] }
 0xe44   : > { %6999 = vtanh.f32 %v4549_v11  ;;  %v10267_v36 = vmul.f32 %v4358_v59, %v10195_v43  ;;  %v4462_v29 = vadd.f32 %v10042_v3, %v9957_v2  ;;  %v4466_v37 = vadd.f32 %v10064_v62, %v9987_v13  ;;  %v10839_v3 = vld [vmem:[#allocation55_spill] sm:$0xff]  ;;  %v10842_v11 = vld [vmem:[#allocation72_spill] sm:$0xff] }
 0xe45   : > { %v10274_v40 = vmul.f32 %v4360_v39, %v10198_v15  ;;  %7001 = vtanh.f32 %v4553_v63  ;;  %v10277_v21 = vmul.f32 %v4363_v56, %v10203_v16  ;;  %v4202_v23 = vmul.f32 0.5, %v9913_v48  ;;  %v10843_v39 = vld [vmem:[#allocation56_spill] sm:$0xff] }
 0xe46   : > { %v10281_v38 = vadd.f32 %v4057_v24, %v9669_v1  ;;  %v4526_v12 = vmul.f32 0.7978846, %v4462_v29  ;;  %v4530_v33 = vmul.f32 0.7978846, %v4466_v37  ;;  %v4464_v9 = vadd.f32 %v10839_v3, %v10838_v52  ;;  %v10844_v24 = vld [vmem:[#allocation43_spill] sm:$0xff] }
 0xe47   : > { %v4200_v62 = vmul.f32 0.5, %v10834_v45  ;;  %v4204_v44 = vmul.f32 0.5, %v10836_v7  ;;  %v4645_v42 = vadd.f32 1.0, %v10840_v5  ;;  %v4468_v6 = vadd.f32 %v10077_v49, %v9997_v25  ;;  %v10845_v5 = vld [vmem:[#allocation42_spill] sm:$0xff] }
 0xe48   : > { %v4197_v48 = vmul.f32 0.5, %v10841_v41  ;;  %v4649_v1 = vadd.f32 1.0, %v10842_v11  ;;  %7003 = vtanh.f32 %v4526_v12  ;;  %v4528_v59 = vmul.f32 0.7978846, %v4464_v9  ;;  %v10846_v12 = vld [vmem:[#allocation66_spill] sm:$0xff] }
 0xe49   : > { %v4647_v63 = vadd.f32 1.0, %v10843_v39  ;;  %v10294_v56 = vadd.f32 %v4170_v8, %v9671_v58  ;;  %7005 = vtanh.f32 %v4530_v33  ;;  %v4532_v45 = vmul.f32 0.7978846, %v4468_v6 }
 0xe4a   : > { %v4201_v7 = vmul.f32 0.5, %v10844_v24  ;;  %v4651_v29 = vadd.f32 1.0, %v10108_v55  ;;  %v4298_v37 = vmul.f32 0.044715, %v10281_v38  ;;  %7007 = vtanh.f32 %v4528_v59 }
 0xe4b   : > { %v6990_v49 = vpop.eup %6989  ;;  %v4709_v3 = vmul.f32 %v4645_v42, %v4197_v48  ;;  %v4199_v41 = vmul.f32 0.5, %v10845_v5  ;;  %v4203_v9 = vmul.f32 0.5, %v10846_v12  ;;  %7009 = vtanh.f32 %v4532_v45 }
 0xe4c   : > { %v6992_v11 = vpop.eup %6991  ;;  %v4646_v39 = vadd.f32 1.0, %v6990_v49  ;;  %v4713_v58 = vmul.f32 %v4649_v1, %v4201_v7  ;;  %v4206_v8 = vmul.f32 0.5, %v9957_v2  ;;  %v4470_v33 = vadd.f32 %v10130_v0, %v10022_v46 }
 0xe4d   : > { %v10304_v6 = vpop.eup %6993  ;;  %v4650_v55 = vadd.f32 1.0, %v6992_v11  ;;  %v4711_v24 = vmul.f32 %v4647_v63, %v4199_v41  ;;  %v4300_v59 = vmul.f32 0.044715, %v10294_v56  ;;  %v4474_v42 = vadd.f32 %v10148_v14, %v10068_v53 }
 0xe4e   : > { %10847 = vst [vmem:[#allocation58_spill] sm:$0xff] %v10304_v6  ;;  %v6996_v48 = vpop.eup %6995  ;;  %v4715_v5 = vmul.f32 %v4651_v29, %v4203_v9  ;;  %v4362_v45 = vmul.f32 %v4298_v37, %v10281_v38  ;;  %v4210_v1 = vmul.f32 0.5, %v9987_v13  ;;  %v4534_v7 = vmul.f32 0.7978846, %v4470_v33 }
 0xe4f   : > { %v6998_v2 = vpop.eup %6997  ;;  %v4710_v49 = vmul.f32 %v4646_v39, %v4198_v32  ;;  %v4714_v12 = vmul.f32 %v4650_v55, %v4202_v23  ;;  %v4648_v0 = vadd.f32 1.0, %v6996_v48  ;;  %v4538_v4 = vmul.f32 0.7978846, %v4474_v42 }
 0xe50   : > { %v4652_v6 = vadd.f32 1.0, %v6998_v2  ;;  %7011 = vtanh.f32 %v4534_v7  ;;  %v4472_v63 = vadd.f32 %v10141_v18, %v10031_v34  ;;  %v4476_v14 = vadd.f32 %v10238_v17, %v10100_v31 }
 0xe51   : > { %v10315_v41 = vpop.eup %6999  ;;  %v4762_v29 = vpack.c.bf16 %v4714_v12, %v4710_v49  ;;  %v4761_v37 = vpack.c.bf16 %v4713_v58, %v4709_v3  ;;  %v4364_v13 = vmul.f32 %v4300_v59, %v10294_v56  ;;  %7013 = vtanh.f32 %v4538_v4 }
 0xe52   : > { %v10318_v9 = vpop.eup %7001  ;;  %v4712_v32 = vmul.f32 %v4648_v0, %v4200_v62  ;;  %v4716_v23 = vmul.f32 %v4652_v6, %v4204_v44  ;;  %v4536_v11 = vmul.f32 0.7978846, %v4472_v63  ;;  %v4540_v39 = vmul.f32 0.7978846, %v4476_v14  ;;  %v10848_v44 = vld [vmem:[#allocation45_spill] sm:$0xff] }
 0xe53   : > { %5100 = vmatprep.mubr.bf16.mxu1 %v4762_v29  ;;  %v4763_v33 = vpack.c.bf16 %v4715_v5, %v4711_v24  ;;  %v4208_v18 = vmul.f32 0.5, %v10838_v52  ;;  %v4212_v55 = vmul.f32 0.5, %v9997_v25  ;;  %v4653_v17 = vadd.f32 1.0, %v10116_v50  ;;  %v10849_v24 = vld [vmem:[#allocation67_spill] sm:$0xff]  ;;  %v10850_v50 = vld [vmem:[#allocation30_spill] sm:$0xff] }
 0xe54   : > { %v4764_v42 = vpack.c.bf16 %v4716_v23, %v4712_v32  ;;  %5101 = vmatmul.mubr.bf16.gmra.mxu1 %v4761_v37  ;;  %v4426_v3 = vmul.f32 %v4362_v45, %v10281_v38  ;;  %v4657_v4 = vadd.f32 1.0, %v10145_v22  ;;  %7015 = vtanh.f32 %v4536_v11  ;;  %v10851_v5 = vld [vmem:[#allocation70_spill] sm:$0xff]  ;;  %v10852_v45 = vld [vmem:[#allocation32_spill] sm:$0xff]  ;;  %v10853_v32 = vld [vmem:[#allocation51_spill] sm:$0xff] }
 0xe55   : > { %v7004_v58 = vpop.eup %7003  ;;  %v10326_v62 = vmul.f32 %v4364_v13, %v10294_v56  ;;  %v4205_v6 = vmul.f32 0.5, %v10848_v44  ;;  %v4209_v59 = vmul.f32 0.5, %v10849_v24  ;;  %7017 = vtanh.f32 %v4540_v39 }
 0xe56   : > { %v7006_v52 = vpop.eup %7005  ;;  %5197 = vmatprep.mubr.bf16.mxu0 %v4764_v42  ;;  %v4654_v25 = vadd.f32 1.0, %v7004_v58  ;;  %v4207_v48 = vmul.f32 0.5, %v10850_v50  ;;  %v4655_v7 = vadd.f32 1.0, %v10851_v5  ;;  %v4659_v2 = vadd.f32 1.0, %v10852_v45  ;;  %v10855_v5 = vld [vmem:[#allocation50_spill] sm:$0xff] }
 0xe57   : > { %v7008_v22 = vpop.eup %7007  ;;  %5198 = vmatmul.mubr.bf16.gmra.mxu0 %v4763_v33  ;;  %v4658_v49 = vadd.f32 1.0, %v7006_v52  ;;  %v4717_v12 = vmul.f32 %v4653_v17, %v4205_v6  ;;  %v4478_v0 = vadd.f32 %v10250_v51, %v10120_v57  ;;  %v4482_v63 = vadd.f32 %v10257_v10, %v10183_v35 }
 0xe58   : > { %v7010_v14 = vpop.eup %7009  ;;  %v4718_v29 = vmul.f32 %v4654_v25, %v4206_v8  ;;  %v4656_v37 = vadd.f32 1.0, %v7008_v22  ;;  %v4721_v13 = vmul.f32 %v4657_v4, %v4209_v59  ;;  %v4211_v23 = vmul.f32 0.5, %v10853_v32  ;;  %v10854_v4 = vld [vmem:[#allocation59_spill] sm:$0xff]  ;;  %v10857_v22 = vld [vmem:[#allocation73_spill] sm:$0xff] }
 0xe59   : > { %v4722_v11 = vmul.f32 %v4658_v49, %v4210_v1  ;;  %v4660_v39 = vadd.f32 1.0, %v7010_v14  ;;  %v4542_v42 = vmul.f32 0.7978846, %v4478_v0  ;;  %v4546_v58 = vmul.f32 0.7978846, %v4482_v63  ;;  %v10858_v63 = vld [vmem:[#allocation52_spill] sm:$0xff] }
 0xe5a   : > { %v4719_v44 = vmul.f32 %v4655_v7, %v4207_v48  ;;  %v4723_v33 = vmul.f32 %v4659_v2, %v4211_v23  ;;  %v4214_v17 = vmul.f32 0.5, %v10022_v46  ;;  %v4218_v6 = vmul.f32 0.5, %v10068_v53  ;;  %v10859_v14 = vld [vmem:[#allocation69_spill] sm:$0xff] }
 0xe5b   : > { %v4766_v51 = vpack.c.bf16 %v4722_v11, %v4718_v29  ;;  %v4720_v24 = vmul.f32 %v4656_v37, %v4208_v18  ;;  %v4724_v52 = vmul.f32 %v4660_v39, %v4212_v55  ;;  %7019 = vtanh.f32 %v4542_v42  ;;  %v10860_v29 = vld [vmem:[#allocation61_spill] sm:$0xff] }
 0xe5c   : > { %v4765_v10 = vpack.c.bf16 %v4721_v13, %v4717_v12  ;;  %v4216_v8 = vmul.f32 0.5, %v10031_v34  ;;  %v4665_v59 = vadd.f32 1.0, %v10854_v4  ;;  %7021 = vtanh.f32 %v4546_v58  ;;  %v10856_v34 = vld [vmem:[#allocation71_spill] sm:$0xff] }
 0xe5d   : > { %v7012_v1 = vpop.eup %7011  ;;  %5108 = vmatprep.mubr.bf16.mxu1 %v4766_v51  ;;  %v4768_v25 = vpack.c.bf16 %v4724_v52, %v4720_v24  ;;  %v4220_v50 = vmul.f32 0.5, %v10100_v31  ;;  %v4486_v46 = vadd.f32 %v10267_v36, %v10195_v43  ;;  %v4490_v53 = vadd.f32 %v4426_v3, %v10281_v38  ;;  %v10861_v24 = vld [vmem:[#allocation75_spill] sm:$0xff] }
 0xe5e   : > { %v7014_v48 = vpop.eup %7013  ;;  %5109 = vmatmul.mubr.bf16.gmra.mxu1 %v4765_v10  ;;  %v4767_v18 = vpack.c.bf16 %v4723_v33, %v4719_v44  ;;  %v4662_v55 = vadd.f32 1.0, %v7012_v1  ;;  %v4217_v7 = vmul.f32 0.5, %v10855_v5  ;;  %v4661_v45 = vadd.f32 1.0, %v10856_v34 }
 0xe5f   : > { %5205 = vmatprep.mubr.bf16.mxu0 %v4768_v25  ;;  %v4666_v2 = vadd.f32 1.0, %v7014_v48  ;;  %v4213_v49 = vmul.f32 0.5, %v10857_v22  ;;  %v4550_v12 = vmul.f32 0.7978846, %v4486_v46  ;;  %v4554_v0 = vmul.f32 0.7978846, %v4490_v53 }
 0xe60   : > { %5206 = vmatmul.mubr.bf16.gmra.mxu0 %v4767_v18  ;;  %v4729_v31 = vmul.f32 %v4665_v59, %v4217_v7  ;;  %v4219_v36 = vmul.f32 0.5, %v10858_v63  ;;  %v4663_v3 = vadd.f32 1.0, %v10859_v14  ;;  %v4667_v37 = vadd.f32 1.0, %v10860_v29  ;;  %v10862_v7 = vld [vmem:[#allocation57_spill] sm:$0xff] }
 0xe61   : > { %v7016_v13 = vpop.eup %7015  ;;  %v4726_v32 = vmul.f32 %v4662_v55, %v4214_v17  ;;  %v4730_v23 = vmul.f32 %v4666_v2, %v4218_v6  ;;  %7023 = vtanh.f32 %v4550_v12  ;;  %v4480_v11 = vadd.f32 %v10254_v27, %v10124_v47  ;;  %v10863_v22 = vld [vmem:[#allocation49_spill] sm:$0xff] }
 0xe62   : > { %v7018_v39 = vpop.eup %7017  ;;  %v4664_v42 = vadd.f32 1.0, %v7016_v13  ;;  %v4725_v58 = vmul.f32 %v4661_v45, %v4213_v49  ;;  %7025 = vtanh.f32 %v4554_v0  ;;  %v4484_v44 = vadd.f32 %v10260_v28, %v10186_v20 }
 0xe63   : > { %v4770_v33 = vpack.c.bf16 %v4730_v23, %v4726_v32  ;;  %v4668_v51 = vadd.f32 1.0, %v7018_v39  ;;  %v4215_v52 = vmul.f32 0.5, %v10861_v24  ;;  %v4544_v10 = vmul.f32 0.7978846, %v4480_v11 }
 0xe64   : > { %v4769_v4 = vpack.c.bf16 %v4729_v31, %v4725_v58  ;;  %v4731_v59 = vmul.f32 %v4667_v37, %v4219_v36  ;;  %v4548_v17 = vmul.f32 0.7978846, %v4484_v44  ;;  %v4488_v6 = vadd.f32 %v10274_v40, %v10198_v15  ;;  %v10864_v44 = vld [vmem:[#allocation25_spill] sm:$0xff] }
 0xe65   : > { %5116 = vmatprep.mubr.bf16.mxu1 %v4770_v33  ;;  %v4728_v27 = vmul.f32 %v4664_v42, %v4216_v8  ;;  %v4732_v1 = vmul.f32 %v4668_v51, %v4220_v50  ;;  %7027 = vtanh.f32 %v4544_v10  ;;  %v4492_v25 = vadd.f32 %v10326_v62, %v10294_v56 }
 0xe66   : > { %5117 = vmatmul.mubr.bf16.gmra.mxu1 %v4769_v4  ;;  %v4727_v28 = vmul.f32 %v4663_v3, %v4215_v52  ;;  %7029 = vtanh.f32 %v4548_v17  ;;  %v4552_v46 = vmul.f32 0.7978846, %v4488_v6  ;;  %v4491_v53 = vadd.f32 %v10277_v21, %v10203_v16  ;;  %v10865_v6 = vld [vmem:[#allocation58_spill] sm:$0xff] }
 0xe67   : > { %v4772_v48 = vpack.c.bf16 %v4732_v1, %v4728_v27  ;;  %v4673_v18 = vadd.f32 1.0, %v10241_v61  ;;  %v4556_v55 = vmul.f32 0.7978846, %v4492_v25  ;;  %7031 = vtanh.f32 %v10246_v60 }
 0xe68   : > { %v7020_v5 = vpop.eup %7019  ;;  %v4487_v40 = vadd.f32 %v10263_v54, %v10191_v26  ;;  %v4771_v8 = vpack.c.bf16 %v4731_v59, %v4727_v28  ;;  %v4225_v34 = vmul.f32 0.5, %v10862_v7  ;;  %v4669_v45 = vadd.f32 1.0, %v10234_v30 }
 0xe69   : > { %v7022_v50 = vpop.eup %7021  ;;  %5213 = vmatprep.mubr.bf16.mxu0 %v4772_v48  ;;  %v4670_v62 = vadd.f32 1.0, %v7020_v5  ;;  %7033 = vtanh.f32 %v4556_v55  ;;  %v4222_v21 = vmul.f32 0.5, %v10120_v57  ;;  %v4226_v61 = vmul.f32 0.5, %v10183_v35 }
 0xe6a   : > { %5214 = vmatmul.mubr.bf16.gmra.mxu0 %v4771_v8  ;;  %v4674_v2 = vadd.f32 1.0, %v7022_v50  ;;  %7035 = vtanh.f32 %v4552_v46  ;;  %v4555_v60 = vmul.f32 0.7978846, %v4491_v53  ;;  %v4221_v49 = vmul.f32 0.5, %v10863_v22  ;;  %v10866_v53 = vld [vmem:[#allocation44_spill] sm:$0xff] }
 0xe6b   : > { %v4737_v54 = vmul.f32 %v4673_v18, %v4225_v34  ;;  %v4734_v12 = vmul.f32 %v4670_v62, %v4222_v21  ;;  %v4551_v31 = vmul.f32 0.7978846, %v4487_v40  ;;  %v4681_v57 = vadd.f32 1.0, %v10318_v9  ;;  %v10867_v18 = vld [vmem:[#allocation48_spill] sm:$0xff] }
 0xe6c   : > { %v4738_v0 = vmul.f32 %v4674_v2, %v4226_v61  ;;  %v4733_v63 = vmul.f32 %v4669_v45, %v4221_v49  ;;  %7037 = vtanh.f32 %v4555_v60  ;;  %v4230_v35 = vmul.f32 0.5, %v10195_v43 }
 0xe6d   : > { %v4234_v37 = vmul.f32 0.5, %v10281_v38  ;;  %7039 = vtanh.f32 %v4551_v31  ;;  %v4233_v32 = vmul.f32 0.5, %v10158_v19  ;;  %v4677_v23 = vadd.f32 1.0, %v10315_v41 }
 0xe6e   : > { %v7024_v36 = vpop.eup %7023  ;;  %v4774_v14 = vpack.c.bf16 %v4738_v0, %v4734_v12  ;;  %v4773_v30 = vpack.c.bf16 %v4737_v54, %v4733_v63  ;;  %v4229_v33 = vmul.f32 0.5, %v10864_v44  ;;  %v4224_v43 = vmul.f32 0.5, %v10124_v47 }
 0xe6f   : > { %v7026_v3 = vpop.eup %7025  ;;  %v4678_v29 = vadd.f32 1.0, %v7024_v36  ;;  %v4745_v51 = vmul.f32 %v4681_v57, %v4233_v32  ;;  %v4228_v38 = vmul.f32 0.5, %v10186_v20  ;;  %v4675_v27 = vadd.f32 1.0, %v10865_v6 }
 0xe70   : > { %5124 = vmatprep.mubr.bf16.mxu1 %v4774_v14  ;;  %v4682_v13 = vadd.f32 1.0, %v7026_v3  ;;  %v4741_v4 = vmul.f32 %v4677_v23, %v4229_v33  ;;  %v4227_v48 = vmul.f32 0.5, %v10866_v53  ;;  %v4236_v47 = vmul.f32 0.5, %v10294_v56  ;;  %v10868_v23 = vld [vmem:[#allocation23_spill] sm:$0xff] }
 0xe71   : > { %5125 = vmatmul.mubr.bf16.gmra.mxu1 %v4773_v30  ;;  %v4742_v39 = vmul.f32 %v4678_v29, %v4230_v35  ;;  %v4223_v55 = vmul.f32 0.5, %v10867_v18  ;;  %v4232_v8 = vmul.f32 0.5, %v10198_v15  ;;  %v4235_v2 = vmul.f32 0.5, %v10203_v16  ;;  %v10390_v15 = vld [vmem:[%s10506_s12] ss:$0 sm:$0xff] }
 0xe72   : > { %v7028_v11 = vpop.eup %7027  ;;  %v4746_v42 = vmul.f32 %v4682_v13, %v4234_v37  ;;  %v4777_v1 = vpack.c.bf16 %v4745_v51, %v4741_v4  ;;  %v4739_v5 = vmul.f32 %v4675_v27, %v4227_v48  ;;  %v4231_v56 = vmul.f32 0.5, %v10191_v26 }
 0xe73   : > { %v7030_v58 = vpop.eup %7029  ;;  %v4672_v9 = vadd.f32 1.0, %v7028_v11 }
 0xe74   : > { %v4778_v24 = vpack.c.bf16 %v4746_v42, %v4742_v39  ;;  %v4676_v52 = vadd.f32 1.0, %v7030_v58  ;;  %v7032_v10 = vpop.eup %7031 }
 0xe75   : > { %v4736_v19 = vmul.f32 %v4672_v9, %v4224_v43  ;;  %v4671_v46 = vadd.f32 1.0, %v7032_v10  ;;  %v10869_v43 = vld [vmem:[#allocation29_spill] sm:$0xff] }
 0xe76   : > { %v7034_v59 = vpop.eup %7033  ;;  %5132 = vmatprep.mubr.bf16.mxu1 %v4778_v24  ;;  %v4740_v41 = vmul.f32 %v4676_v52, %v4228_v38 }
 0xe77   : > { %v7036_v17 = vpop.eup %7035  ;;  %v4684_v28 = vadd.f32 1.0, %v7034_v59  ;;  %v4735_v62 = vmul.f32 %v4671_v46, %v4223_v55 }
 0xe78   : > { %v4776_v25 = vpack.c.bf16 %v4740_v41, %v4736_v19  ;;  %v4680_v20 = vadd.f32 1.0, %v7036_v17  ;;  %v10870_v17 = vld [vmem:[#allocation22_spill] sm:$0xff] }
 0xe79   : > { %5133 = vmatmul.mubr.bf16.gmra.mxu1 %v4777_v1  ;;  %v7038_v40 = vpop.eup %7037  ;;  %v4748_v50 = vmul.f32 %v4684_v28, %v4236_v47  ;;  %v4775_v45 = vpack.c.bf16 %v4739_v5, %v4735_v62 }
 0xe7a   : > { %5221 = vmatprep.mubr.bf16.mxu1 %v4776_v25  ;;  %v7040_v7 = vpop.eup %7039  ;;  %v4744_v34 = vmul.f32 %v4680_v20, %v4232_v8  ;;  %v4683_v21 = vadd.f32 1.0, %v7038_v40  ;;  %v10871_v25 = vld [vmem:[#allocation35_spill] sm:$0xff] }
 0xe7b   : > { %v4679_v60 = vadd.f32 1.0, %v7040_v7 }
 0xe7c   : > { %v4780_v61 = vpack.c.bf16 %v4748_v50, %v4744_v34  ;;  %v4747_v22 = vmul.f32 %v4683_v21, %v4235_v2 }
 0xe7d   : > { %v4743_v49 = vmul.f32 %v4679_v60, %v4231_v56  ;;  %v10873_v60 = vld [vmem:[#allocation26_spill] sm:$0xff] }
 0xe7f   : > { %v4779_v54 = vpack.c.bf16 %v4747_v22, %v4743_v49 }
 0xe81   : > { %5222 = vmatmul.mubr.bf16.vlgmr.msra.gmra.mxu1 %v4775_v45  ;;  %v10872_v45 = vld [vmem:[#allocation24_spill] sm:$0xff] }
 0xe82   : > { %5229 = vmatprep.mubr.bf16.mxu1 %v4780_v61 }
 0xe89   : > { %5230 = vmatmul.mubr.bf16.gmra.mxu1 %v4779_v54 }
 0xeab   : > { %v5752_v12 = vpop.f32.mrf.mxu1 }
 0xead   : > { %v5753_v0 = vpop.f32.mrf.mxu1 }
 0xeae   : > { %v5754_v31 = vadd.f32 %v5753_v0, %v5752_v12 }
 0xeaf   : > { %v5816_v63 = vpop.f32.mrf.mxu0  ;;  %v5755_v36 = vpop.f32.mrf.mxu1 }
 0xeb0   : > { %v5079_v16 = vadd.f32 %v5754_v31, %v10390_v15 }
 0xeb1   : > { %v5817_v14 = vpop.f32.mrf.mxu0  ;;  %v5756_v3 = vpop.f32.mrf.mxu1 }
 0xeb2   : > { %v5818_v26 = vadd.f32 %v5817_v14, %v5816_v63  ;;  %v5757_v30 = vadd.f32 %v5756_v3, %v5755_v36 }
 0xeb3   : > { %v5819_v29 = vpop.f32.mrf.mxu0  ;;  %v5758_v57 = vpop.f32.mrf.mxu1 }
 0xeb4   : > { %v5176_v35 = vadd.f32 %v5818_v26, %v5079_v16  ;;  %v5082_v37 = vadd.f32 %v5757_v30, %v10390_v15 }
 0xeb5   : > { %v5820_v13 = vpop.f32.mrf.mxu0  ;;  %v5759_v32 = vpop.f32.mrf.mxu1 }
 0xeb6   : > { %v5238_v11 = vadd.f32 %v5176_v35, %v10868_v23  ;;  %v5821_v39 = vadd.f32 %v5820_v13, %v5819_v29  ;;  %v5760_v42 = vadd.f32 %v5759_v32, %v5758_v57  ;;  %v10874_v57 = vld [vmem:[#allocation37_spill] sm:$0xff] }
 0xeb7   : > { %v5822_v58 = vpop.f32.mrf.mxu0  ;;  %v5761_v44 = vpop.f32.mrf.mxu1 }
 0xeb8   : > { %5254 = vst [vmem:[%s10397_s9] sm:$0xff] %v5238_v11  ;;  %v5179_v33 = vadd.f32 %v5821_v39, %v5082_v37  ;;  %v5087_v51 = vadd.f32 %v5760_v42, %v10390_v15  ;;  %v10875_v42 = vld [vmem:[#allocation38_spill] sm:$0xff] }
 0xeb9   : > { %v5823_v9 = vpop.f32.mrf.mxu0  ;;  %v5762_v24 = vpop.f32.mrf.mxu1 }
 0xeba   : > { %v5239_v38 = vadd.f32 %v5179_v33, %v10869_v43  ;;  %v5824_v52 = vadd.f32 %v5823_v9, %v5822_v58  ;;  %v5763_v10 = vadd.f32 %v5762_v24, %v5761_v44 }
 0xebb   : > { %v5825_v4 = vpop.f32.mrf.mxu0 }
 0xebc   : > { %5255 = vst [vmem:[%s10397_s9 + $0x8] sm:$0xff] %v5239_v38  ;;  %v5184_v59 = vadd.f32 %v5824_v52, %v5087_v51  ;;  %v5090_v19 = vadd.f32 %v5763_v10, %v10390_v15 }
 0xebd   : > { %v5826_v41 = vpop.f32.mrf.mxu0 }
 0xebe   : > { %v5240_v6 = vadd.f32 %v5184_v59, %v10870_v17  ;;  %v5827_v27 = vadd.f32 %v5826_v41, %v5825_v4  ;;  %v10876_v59 = vld [vmem:[#allocation41_spill] sm:$0xff] }
 0xec0   : > { %5256 = vst [vmem:[%s10397_s9 + $0x10] sm:$0xff] %v5240_v6  ;;  %v5187_v1 = vadd.f32 %v5827_v27, %v5090_v19 }
 0xec2   : > { %v5241_v28 = vadd.f32 %v5187_v1, %v10871_v25 }
 0xec4   : > { %5257 = vst [vmem:[%s10397_s9 + $0x18] sm:$0xff] %v5241_v28 }
 0xefd   : > { %v5764_v46 = vpop.f32.mrf.mxu1 }
 0xeff   : > { %v5765_v53 = vpop.f32.mrf.mxu1 }
 0xf00   : > { %v5828_v48 = vpop.f32.mrf.mxu0  ;;  %v5766_v47 = vadd.f32 %v5765_v53, %v5764_v46  ;;  %v10877_v46 = vld [vmem:[#allocation34_spill] sm:$0xff] }
 0xf01   : > { %v5767_v20 = vpop.f32.mrf.mxu1 }
 0xf02   : > { %v5095_v18 = vadd.f32 %v5766_v47, %v10390_v15  ;;  %v5829_v55 = vpop.f32.mrf.mxu0 }
 0xf03   : > { %v5830_v5 = vadd.f32 %v5829_v55, %v5828_v48  ;;  %v5768_v40 = vpop.f32.mrf.mxu1 }
 0xf04   : > { %v5831_v8 = vpop.f32.mrf.mxu0  ;;  %v5769_v50 = vadd.f32 %v5768_v40, %v5767_v20 }
 0xf05   : > { %v5192_v62 = vadd.f32 %v5830_v5, %v5095_v18 }
 0xf06   : > { %v5098_v7 = vadd.f32 %v5769_v50, %v10390_v15  ;;  %v5832_v34 = vpop.f32.mrf.mxu0 }
 0xf07   : > { %v5242_v21 = vadd.f32 %v5192_v62, %v10872_v45  ;;  %v5833_v61 = vadd.f32 %v5832_v34, %v5831_v8  ;;  %v10878_v62 = vld [vmem:[#allocation36_spill] sm:$0xff] }
 0xf09   : > { %5258 = vst [vmem:[%s10397_s9 + $0x20] sm:$0xff] %v5242_v21  ;;  %v5195_v2 = vadd.f32 %v5833_v61, %v5098_v7 }
 0xf0b   : > { %v5243_v56 = vadd.f32 %v5195_v2, %v10873_v60  ;;  %v10879_v2 = vld [vmem:[#allocation28_spill] sm:$0xff] }
 0xf0d   : > { %5259 = vst [vmem:[%s10397_s9 + $0x28] sm:$0xff] %v5243_v56 }
 0xf14   : > { %v5770_v22 = vpop.f32.mrf.mxu1 }
 0xf16   : > { %v5771_v49 = vpop.f32.mrf.mxu1 }
 0xf17   : > { %v5834_v54 = vpop.f32.mrf.mxu0  ;;  %v5772_v12 = vadd.f32 %v5771_v49, %v5770_v22 }
 0xf18   : > { %v5773_v0 = vpop.f32.mrf.mxu1 }
 0xf19   : > { %v5103_v31 = vadd.f32 %v5772_v12, %v10390_v15  ;;  %v5835_v63 = vpop.f32.mrf.mxu0 }
 0xf1a   : > { %v5836_v36 = vadd.f32 %v5835_v63, %v5834_v54  ;;  %v5774_v16 = vpop.f32.mrf.mxu1 }
 0xf1b   : > { %v5837_v14 = vpop.f32.mrf.mxu0  ;;  %v5775_v3 = vadd.f32 %v5774_v16, %v5773_v0 }
 0xf1c   : > { %v5200_v26 = vadd.f32 %v5836_v36, %v5103_v31 }
 0xf1d   : > { %v5106_v30 = vadd.f32 %v5775_v3, %v10390_v15  ;;  %v5838_v29 = vpop.f32.mrf.mxu0 }
 0xf1e   : > { %v5244_v35 = vadd.f32 %v5200_v26, %v10874_v57  ;;  %v5839_v37 = vadd.f32 %v5838_v29, %v5837_v14  ;;  %v5776_v13 = vpop.f32.mrf.mxu1 }
 0xf20   : > { %5260 = vst [vmem:[%s10397_s9 + $0x30] sm:$0xff] %v5244_v35  ;;  %v5203_v32 = vadd.f32 %v5839_v37, %v5106_v30  ;;  %v5840_v23 = vpop.f32.mrf.mxu0  ;;  %v5777_v11 = vpop.f32.mrf.mxu1  ;;  %v10880_v37 = vld [vmem:[#allocation33_spill] sm:$0xff] }
 0xf21   : > { %v5778_v39 = vadd.f32 %v5777_v11, %v5776_v13 }
 0xf22   : > { %v5245_v58 = vadd.f32 %v5203_v32, %v10875_v42  ;;  %v5841_v44 = vpop.f32.mrf.mxu0  ;;  %v5779_v33 = vpop.f32.mrf.mxu1 }
 0xf23   : > { %v5111_v51 = vadd.f32 %v5778_v39, %v10390_v15  ;;  %v5842_v9 = vadd.f32 %v5841_v44, %v5840_v23  ;;  %v10881_v44 = vld [vmem:[#allocation39_spill] sm:$0xff] }
 0xf24   : > { %5261 = vst [vmem:[%s10397_s9 + $0x38] sm:$0xff] %v5245_v58  ;;  %v5843_v24 = vpop.f32.mrf.mxu0  ;;  %v5780_v43 = vpop.f32.mrf.mxu1 }
 0xf25   : > { %v5208_v38 = vadd.f32 %v5842_v9, %v5111_v51  ;;  %v5781_v52 = vadd.f32 %v5780_v43, %v5779_v33 }
 0xf26   : > { %v5844_v10 = vpop.f32.mrf.mxu0  ;;  %v5782_v4 = vpop.f32.mrf.mxu1 }
 0xf27   : > { %v5246_v19 = vadd.f32 %v5208_v38, %v10876_v59  ;;  %v5114_v41 = vadd.f32 %v5781_v52, %v10390_v15  ;;  %v5845_v17 = vadd.f32 %v5844_v10, %v5843_v24  ;;  %v10882_v52 = vld [vmem:[#allocation40_spill] sm:$0xff] }
 0xf28   : > { %v5783_v6 = vpop.f32.mrf.mxu1 }
 0xf29   : > { %5262 = vst [vmem:[%s10397_s9 + $0x40] sm:$0xff] %v5246_v19  ;;  %v5211_v27 = vadd.f32 %v5845_v17, %v5114_v41  ;;  %v5784_v1 = vadd.f32 %v5783_v6, %v5782_v4  ;;  %v10883_v19 = vld [vmem:[#allocation27_spill] sm:$0xff] }
 0xf2a   : > { %v5846_v25 = vpop.f32.mrf.mxu0  ;;  %v5785_v28 = vpop.f32.mrf.mxu1 }
 0xf2b   : > { %v5247_v53 = vadd.f32 %v5211_v27, %v10877_v46  ;;  %v5119_v48 = vadd.f32 %v5784_v1, %v10390_v15 }
 0xf2c   : > { %v5847_v47 = vpop.f32.mrf.mxu0  ;;  %v5786_v20 = vpop.f32.mrf.mxu1 }
 0xf2d   : > { %5263 = vst [vmem:[%s10397_s9 + $0x48] sm:$0xff] %v5247_v53  ;;  %v5848_v18 = vadd.f32 %v5847_v47, %v5846_v25  ;;  %v5787_v55 = vadd.f32 %v5786_v20, %v5785_v28 }
 0xf2e   : > { %v5849_v5 = vpop.f32.mrf.mxu0 }
 0xf2f   : > { %v5216_v40 = vadd.f32 %v5848_v18, %v5119_v48  ;;  %v5122_v8 = vadd.f32 %v5787_v55, %v10390_v15 }
 0xf30   : > { %v5850_v50 = vpop.f32.mrf.mxu0 }
 0xf31   : > { %v5248_v7 = vadd.f32 %v5216_v40, %v10878_v62  ;;  %v5851_v34 = vadd.f32 %v5850_v50, %v5849_v5  ;;  %v5788_v45 = vpop.f32.mrf.mxu1 }
 0xf33   : > { %5264 = vst [vmem:[%s10397_s9 + $0x50] sm:$0xff] %v5248_v7  ;;  %v5219_v21 = vadd.f32 %v5851_v34, %v5122_v8  ;;  %v5789_v61 = vpop.f32.mrf.mxu1 }
 0xf34   : > { %v5790_v31 = vadd.f32 %v5789_v61, %v5788_v45 }
 0xf35   : > { %v5249_v60 = vadd.f32 %v5219_v21, %v10879_v2  ;;  %v5791_v56 = vpop.f32.mrf.mxu1 }
 0xf36   : > { %v5127_v16 = vadd.f32 %v5790_v31, %v10390_v15 }
 0xf37   : > { %5265 = vst [vmem:[%s10397_s9 + $0x58] sm:$0xff] %v5249_v60  ;;  %v5792_v22 = vpop.f32.mrf.mxu1 }
 0xf38   : > { %v5793_v14 = vadd.f32 %v5792_v22, %v5791_v56 }
 0xf39   : > { %v5794_v49 = vpop.f32.mrf.mxu1 }
 0xf3a   : > { %v5130_v57 = vadd.f32 %v5793_v14, %v10390_v15 }
 0xf3b   : > { %v5795_v54 = vpop.f32.mrf.mxu1 }
 0xf3c   : > { %v5796_v35 = vadd.f32 %v5795_v54, %v5794_v49 }
 0xf3d   : > { %v5797_v12 = vpop.f32.mrf.mxu1 }
 0xf3e   : > { %v5135_v42 = vadd.f32 %v5796_v35, %v10390_v15 }
 0xf3f   : > { %v5798_v0 = vpop.f32.mrf.mxu1 }
 0xf40   : > { %v5799_v58 = vadd.f32 %v5798_v0, %v5797_v12 }
 0xf41   : > { %v5852_v63 = vpop.f32.mrf.mxu1 }
 0xf42   : > { %v5138_v38 = vadd.f32 %v5799_v58, %v10390_v15 }
 0xf43   : > { %v5853_v36 = vpop.f32.mrf.mxu1 }
 0xf44   : > { %v5854_v3 = vadd.f32 %v5853_v36, %v5852_v63 }
 0xf45   : > { %v5855_v26 = vpop.f32.mrf.mxu1 }
 0xf46   : > { %v5224_v30 = vadd.f32 %v5854_v3, %v5127_v16 }
 0xf47   : > { %v5856_v29 = vpop.f32.mrf.mxu1 }
 0xf48   : > { %v5250_v13 = vadd.f32 %v5224_v30, %v10880_v37  ;;  %v5857_v32 = vadd.f32 %v5856_v29, %v5855_v26 }
 0xf49   : > { %v5858_v23 = vpop.f32.mrf.mxu1 }
 0xf4a   : > { %5266 = vst [vmem:[%s10397_s9 + $0x60] sm:$0xff] %v5250_v13  ;;  %v5227_v11 = vadd.f32 %v5857_v32, %v5130_v57 }
 0xf4b   : > { %v5859_v39 = vpop.f32.mrf.mxu1 }
 0xf4c   : > { %v5251_v33 = vadd.f32 %v5227_v11, %v10881_v44  ;;  %v5860_v51 = vadd.f32 %v5859_v39, %v5858_v23 }
 0xf4d   : > { %v5861_v9 = vpop.f32.mrf.mxu1 }
 0xf4e   : > { %5267 = vst [vmem:[%s10397_s9 + $0x68] sm:$0xff] %v5251_v33  ;;  %v5232_v24 = vadd.f32 %v5860_v51, %v5135_v42 }
 0xf4f   : > { %v5862_v43 = vpop.f32.mrf.mxu1 }
 0xf50   : > { %v5252_v10 = vadd.f32 %v5232_v24, %v10882_v52  ;;  %v5863_v4 = vadd.f32 %v5862_v43, %v5861_v9 }
 0xf52   : > { %5268 = vst [vmem:[%s10397_s9 + $0x70] sm:$0xff] %v5252_v10  ;;  %v5235_v59 = vadd.f32 %v5863_v4, %v5138_v38 }
 0xf54   : > { %v5253_v41 = vadd.f32 %v5235_v59, %v10883_v19 }
 0xf56   : > { %5269 = vst [vmem:[%s10397_s9 + $0x78] sm:$0xff] %v5253_v41 }
 0xf57   : > { %7254 = shalt.err (!%p7251_p6)
}
 0xf58   : > { %s7255_s23 = scalar_lea.hbm %s10447_s17, 2048  ;;  %s7259_s5 = scalar_lea.hbm %s10507_s13, 4096 }
 0xf59   : > { %p7256_p4 = scmp.ne.s32.totalorder %s10447_s17, %s7255_s23  ;;  %p7260_p9 = scmp.lt.s32.totalorder %s10447_s17, %s10507_s13 }
 0xf5a   : > { %p7261_p11 = scmp.lt.s32.totalorder %s7259_s5, %s7255_s23 }
 0xf5b   : > { %p7257_p1 = pnand %p7256_p4, %p10884_p13 }
 0xf5c   : > { %p7262_p10 = por %p7261_p11, %p7260_p9 }
 0xf5d   : > { %p7258_p3 = pneg %p7257_p1 }
 0xf5f   : > { %p7263_p12 = pnand %p7262_p10, %p7258_p3 }
 0xf61   : > { %7266 = shalt.err (!%p7263_p12)
}
 0xf62   : > { %s7339_s3 = smov 128   ;;  %s7340_s29 = smov 8  }
 0xf63   : > { %6258 = dma.vmem_to_hbm [thread:$0]  (%p10884_p13), %s10449_s15, 2048, %s10447_s17, %s5271_s16, %s7339_s3, %s7339_s3, %s7340_s29  }
 0xf64 PF: > { %s5299_s1 = sand.u32 1, %s7305_s25   ;;  %p10885_p0 = scmp.ne.s32.totalorder %s10624_s22, 0 }
 0xf65   : > { %p10886_p2 = scmp.ge.s32.totalorder %s7317_s28, 2  ;;  %s5300_s14 = scalar_lea.sflag [#allocation4], %s5299_s1 }
 0xf67   : > { %p6284_p5 = pnand %p10886_p2, %p10885_p0 }
 0xf69   : > { %p6285_p8 = pneg %p6284_p5 }
 0xf6b   : > { %7300 = dma.done.wait (%p6285_p8), %s5300_s14, 2048  }
 0xf6c   : > { %7302 = vsyncadd (%p6285_p8), %s5300_s14, 4294965248  ;;  %s10887_s11 = sld [smem:[#allocation20_spill]]  ;;  %p29_p7 = scmp.ge.s32.totalorder %s7514_s18, 4  }
 0xf6d   : > { %s10888_s25 = smov %s7309_s26  ;;  %s10889_s26 = smov %s7313_s27 }
 0xf6e   : > { %s10891_s28 = smov %s7514_s18  ;;  %31 = sbr.rel (!%p29_p7) target bundleno = 15 (0xf), region = 141 }
 0xf72   : > { %s10890_s27 = smov %s10887_s11 }
 0xf73   :  { %5305 = vsyncpa [#allocation3], 1 }
 0xf74   :  { %5307 = vsyncpa [#allocation3 + $0x1], 1 }
 0xf75   :  { %5308 = vsyncpa [#allocation6], 1 }
 0xf76   :  { %5309 = vsyncpa [#allocation9], 1 }
 0xf77   :  { %5310 = vsyncpa [#allocation12], 1 }
 0xf78   :  { %5311 = vsyncpa [#allocation4], 1 }
 0xf79   :  { %5313 = vsyncpa [#allocation4 + $0x1], 1 }

</bundles_post_ra>
